<compile_context>
chip_gen: v6e
topology: v6e:2x2x1
jax: 0.10.0
libtpu: 0.0.40
codegen_flags: <defaults>
</compile_context>

<pallas_src>
import functools

import jax
import jax.numpy as jnp
from jax import lax
from jax.experimental import pallas as pl
from jax.experimental.pallas import tpu as pltpu


def bottleneck_kernel(x_ref, m_ref, w1_ref, b1_ref, w2_ref, b2_ref, w3_ref,
                      b3_ref, o_ref, slab_ref, acc_ref, *, H, W, G):
    # x_ref : (Cin, R) one batch element, channel-first, R = D*H*W on lanes
    # m_ref : (32, R)  f32 {0,1} boundary masks, row t = tap kd*9+kh*3+kw
    # w1_ref: (Cwp, Cin)      bf16 folded conv1*bn1 weight (width padded)
    # w2_ref: (Cwp, 27*Cwp)   bf16 folded im2col conv2*bn2 weight
    # w3_ref: (Cout, Cwp)     bf16 folded conv3*bn3 weight
    # b*_ref: (C, 1)          f32 BatchNorm biases
    # slab_ref: (G*Cwp, R) bf16 scratch — one tap-group of im2col patches
    # acc_ref : (Cwp, R)   f32 scratch — conv2 accumulator
    Cin, R = x_ref.shape
    Cwp = w1_ref.shape[0]
    HW = H * W

    x = x_ref[...]                                              # (Cin, R) f32

    # ---- conv1 (1x1x1, BN scale pre-folded) + bias + relu ----
    y1 = jnp.dot(w1_ref[...], x.astype(jnp.bfloat16),
                 preferred_element_type=jnp.float32)
    y1 = jnp.maximum(y1 + b1_ref[...], 0.0)                     # (Cwp, R) f32

    # ---- conv2 (3x3x3, stride=1, pad=1): tap-grouped im2col matmuls ----
    NTAP = 27
    n_groups = -(-NTAP // G)
    acc_ref[...] = jnp.zeros_like(acc_ref)
    for g in range(n_groups):
        ntap = min(G, NTAP - g * G)
        for local in range(ntap):
            t = g * G + local
            kd, kh, kw = t // 9, (t // 3) % 3, t % 3
            off = (kd - 1) * HW + (kh - 1) * W + (kw - 1)
            if off == 0:                                        # center tap
                blk = y1
            else:
                # lane-roll then zero out positions that cross the volume
                # boundary (mask precomputed on the host)
                blk = pltpu.roll(y1, (-off) % R, axis=1) * m_ref[t:t + 1, :]
            slab_ref[local * Cwp:(local + 1) * Cwp, :] = blk.astype(
                jnp.bfloat16)
        acc_ref[...] += jnp.dot(
            w2_ref[:, g * G * Cwp:(g * G + ntap) * Cwp],
            slab_ref[0:ntap * Cwp, :],
            preferred_element_type=jnp.float32)
    y2 = jnp.maximum(acc_ref[...] + b2_ref[...], 0.0)           # (Cwp, R) f32

    # ---- conv3 (1x1x1, BN scale pre-folded) + bias ----
    y3 = jnp.dot(w3_ref[...], y2.astype(jnp.bfloat16),
                 preferred_element_type=jnp.float32)

    # ---- residual add (downsample=None => Cin == Cout) + relu ----
    o_ref[...] = jnp.maximum(y3 + b3_ref[...] + x, 0.0)


def bottleneck_pallas(x_ncdhw, masks, w1p, b1p, w2p, b2p, w3p, b3p):
    N, Cin, D, H, W = x_ncdhw.shape
    R = D * H * W
    Cwp = w1p.shape[0]
    K2 = w2p.shape[1]
    Cout = w3p.shape[0]
    Mrows = masks.shape[0]
    assert Cin == Cout, "downsample=None path requires Cin == Cout"

    # Tap-group size so G*Cwp matches the MXU K depth (256 on v6e/v7x).
    # TODO(synk): use 128 // Cwp on v5e (4x128x128 MXU).
    G = max(1, min(27, 256 // Cwp))

    x2 = x_ncdhw.reshape(N, Cin, R)

    out = pl.pallas_call(
        functools.partial(bottleneck_kernel, H=H, W=W, G=G),
        out_shape=jax.ShapeDtypeStruct((N, Cout, R), jnp.float32),
        grid_spec=pltpu.PrefetchScalarGridSpec(
            num_scalar_prefetch=0,
            grid=(N,),
            in_specs=[
                pl.BlockSpec((None, Cin, R), lambda n: (n, 0, 0)),
                # Grid-invariant operands (constant index_map -> DMA'd once).
                pl.BlockSpec((Mrows, R), lambda n: (0, 0)),
                pl.BlockSpec((Cwp, Cin), lambda n: (0, 0)),
                pl.BlockSpec((Cwp, 1), lambda n: (0, 0)),
                pl.BlockSpec((Cwp, K2), lambda n: (0, 0)),
                pl.BlockSpec((Cwp, 1), lambda n: (0, 0)),
                pl.BlockSpec((Cout, Cwp), lambda n: (0, 0)),
                pl.BlockSpec((Cout, 1), lambda n: (0, 0)),
            ],
            out_specs=pl.BlockSpec((None, Cout, R), lambda n: (n, 0, 0)),
            scratch_shapes=[
                pltpu.VMEM((G * Cwp, R), jnp.bfloat16),   # tap-group slab
                pltpu.VMEM((Cwp, R), jnp.float32),        # conv2 accumulator
            ],
        ),
        compiler_params=pltpu.CompilerParams(
            dimension_semantics=("parallel",),
            vmem_limit_bytes=64 * 1024 * 1024),
    )(x2, masks, w1p, b1p, w2p, b2p, w3p, b3p)
    return out.reshape(N, Cout, D, H, W)


# -------- host-side packing --------
def fold_bn(gamma, beta, mean, var, eps=1e-5):
    scale = gamma / jnp.sqrt(var + eps)
    bias = beta - mean * scale
    return scale, bias


def build_masks(D, H, W):
    """(32, R) f32 {0,1} boundary-validity masks, row t = tap kd*9+kh*3+kw."""
    R = D * H * W
    r = jnp.arange(R, dtype=jnp.int32)
    d = r // (H * W)
    h = (r // W) % H
    w = r % W
    rows = []
    for kd in range(3):
        for kh in range(3):
            for kw in range(3):
                dd, dh, dw = kd - 1, kh - 1, kw - 1
                m = jnp.ones((R,), jnp.bool_)
                if dd == -1:
                    m = m & (d >= 1)
                elif dd == 1:
                    m = m & (d <= D - 2)
                if dh == -1:
                    m = m & (h >= 1)
                elif dh == 1:
                    m = m & (h <= H - 2)
                if dw == -1:
                    m = m & (w >= 1)
                elif dw == 1:
                    m = m & (w <= W - 2)
                rows.append(m)
    masks = jnp.stack(rows, axis=0).astype(jnp.float32)          # (27, R)
    return jnp.concatenate(
        [masks, jnp.zeros((32 - 27, R), jnp.float32)], axis=0)   # (32, R)


def pack_params(w1c, w2c, w3c, s1, b1, s2, b2, s3, b3):
    """Fold BN scales into conv weights, pad width to 16, cast weights bf16."""
    width, inplanes = w1c.shape[0], w1c.shape[1]
    cout = w3c.shape[0]
    Cwp = ((width + 15) // 16) * 16          # bf16 (16,128)-tile alignment

    # conv1: (Cw, Cin) scaled per output channel, zero-padded to (Cwp, Cin)
    w1 = w1c[:, :, 0, 0, 0] * s1[:, None]
    w1p = jnp.zeros((Cwp, inplanes), jnp.float32).at[:width].set(w1)
    b1p = jnp.zeros((Cwp, 1), jnp.float32).at[:width, 0].set(b1)

    # conv2: im2col weight (Cwp, 27*Cwp); column index = tap*Cwp + ci,
    # tap = kd*9 + kh*3 + kw (matches the kernel's tap order)
    w2 = jnp.transpose(w2c, (0, 2, 3, 4, 1)) * s2[:, None, None, None, None]
    w2full = jnp.zeros((Cwp, 27, Cwp), jnp.float32)
    w2full = w2full.at[:width, :, :width].set(w2.reshape(width, 27, width))
    w2p = w2full.reshape(Cwp, 27 * Cwp)
    b2p = jnp.zeros((Cwp, 1), jnp.float32).at[:width, 0].set(b2)

    # conv3: (Cout, Cw) scaled per output channel, K padded to Cwp
    w3 = w3c[:, :, 0, 0, 0] * s3[:, None]
    w3p = jnp.zeros((cout, Cwp), jnp.float32).at[:, :width].set(w3)
    b3p = b3.reshape(cout, 1)
    return (w1p.astype(jnp.bfloat16), b1p,
            w2p.astype(jnp.bfloat16), b2p,
            w3p.astype(jnp.bfloat16), b3p)


# -------- pure-JAX reference (mirrors the PyTorch module, eval-mode BN) --------
def _conv3d(x, w, pad):
    return lax.conv_general_dilated(
        x, w, window_strides=(1, 1, 1),
        padding=[(pad, pad)] * 3,
        dimension_numbers=('NCDHW', 'OIDHW', 'NCDHW'))


def bottleneck_ref(x, w1c, w2c, w3c, s1, b1, s2, b2, s3, b3):
    def bn(y, s, b):
        return y * s[None, :, None, None, None] + b[None, :, None, None, None]
    y = jnp.maximum(bn(_conv3d(x, w1c, 0), s1, b1), 0.0)
    y = jnp.maximum(bn(_conv3d(y, w2c, 1), s2, b2), 0.0)
    y = bn(_conv3d(y, w3c, 0), s3, b3)
    return jnp.maximum(y + x, 0.0)


if __name__ == "__main__":
    key = jax.random.PRNGKey(0)
    ks = jax.random.split(key, 8)

    # Module config: Bottleneck(inplanes=16, planes=4) -> width=4, out=16
    inplanes, planes = 16, 4
    width = planes                     # base_width=64, groups=1
    cout = planes * 4                  # expansion=4; equals inplanes (downsample=None)
    N, D, H, W = 2, 8, 8, 8

    x_ncdhw = jax.random.normal(ks[0], (N, inplanes, D, H, W), jnp.float32)

    # Conv weights in PyTorch layout (Cout, Cin, kd, kh, kw).
    w1c = 0.2 * jax.random.normal(ks[1], (width, inplanes, 1, 1, 1), jnp.float32)
    w2c = 0.2 * jax.random.normal(ks[2], (width, width, 3, 3, 3), jnp.float32)
    w3c = 0.2 * jax.random.normal(ks[3], (cout, width, 1, 1, 1), jnp.float32)

    # BatchNorm params (eval mode): gamma, beta, running_mean, running_var.
    def bn_params(k, c):
        k1, k2, k3, k4 = jax.random.split(k, 4)
        gamma = 1.0 + 0.1 * jax.random.normal(k1, (c,), jnp.float32)
        beta = 0.1 * jax.random.normal(k2, (c,), jnp.float32)
        mean = 0.1 * jax.random.normal(k3, (c,), jnp.float32)
        var = jax.random.uniform(k4, (c,), jnp.float32, 0.5, 1.5)
        return gamma, beta, mean, var

    g1, be1, m1, v1 = bn_params(ks[4], width)
    g2, be2, m2, v2 = bn_params(ks[5], width)
    g3, be3, m3, v3 = bn_params(ks[6], cout)
    s1, b1 = fold_bn(g1, be1, m1, v1)
    s2, b2 = fold_bn(g2, be2, m2, v2)
    s3, b3 = fold_bn(g3, be3, m3, v3)

    w1p, b1p, w2p, b2p, w3p, b3p = pack_params(
        w1c, w2c, w3c, s1, b1, s2, b2, s3, b3)
    masks = build_masks(D, H, W)

    out = bottleneck_pallas(x_ncdhw, masks, w1p, b1p, w2p, b2p, w3p, b3p)
    out = jax.block_until_ready(out)

    ref = bottleneck_ref(x_ncdhw, w1c, w2c, w3c, s1, b1, s2, b2, s3, b3)
    err = float(jnp.max(jnp.abs(out - ref)))
    # bf16 matmul operands with f32 accumulation -> looser tolerance than f32.
    assert err < 1.5e-1, f"max abs error {err}"
    print("KERNEL_OK")
</pallas_src>

<mosaic_0001>
module attributes {stable_mosaic.version = 11 : i64} {
  func.func @bottleneck_kernel(%arg0: i32, %arg1: memref<1x16x512xf32, #tpu.memory_space<vmem>>, %arg2: memref<32x512xf32, #tpu.memory_space<vmem>>, %arg3: memref<16x16xbf16, #tpu.memory_space<vmem>>, %arg4: memref<16x1xf32, #tpu.memory_space<vmem>>, %arg5: memref<16x432xbf16, #tpu.memory_space<vmem>>, %arg6: memref<16x1xf32, #tpu.memory_space<vmem>>, %arg7: memref<16x16xbf16, #tpu.memory_space<vmem>>, %arg8: memref<16x1xf32, #tpu.memory_space<vmem>>, %arg9: memref<1x16x512xf32, #tpu.memory_space<vmem>>, %arg10: memref<256x512xbf16, #tpu.memory_space<vmem>>, %arg11: memref<16x512xf32, #tpu.memory_space<vmem>>) attributes {dimension_semantics = [#tpu.dimension_semantics<parallel>], iteration_bounds = array<i64: 2>, scalar_prefetch = 0 : i64, scratch_operands = 2 : i64, tpu.core_type = #tpu.core_type<tc>, window_params = [{transform_indices = @transform_0, window_bounds = array<i64: 1, 16, 512>}, {pipeline_mode = #tpu.pipeline_mode<synchronous>, transform_indices = @transform_1, window_bounds = array<i64: 32, 512>}, {pipeline_mode = #tpu.pipeline_mode<synchronous>, transform_indices = @transform_2, window_bounds = array<i64: 16, 16>}, {pipeline_mode = #tpu.pipeline_mode<synchronous>, transform_indices = @transform_3, window_bounds = array<i64: 16, 1>}, {pipeline_mode = #tpu.pipeline_mode<synchronous>, transform_indices = @transform_4, window_bounds = array<i64: 16, 432>}, {pipeline_mode = #tpu.pipeline_mode<synchronous>, transform_indices = @transform_5, window_bounds = array<i64: 16, 1>}, {pipeline_mode = #tpu.pipeline_mode<synchronous>, transform_indices = @transform_6, window_bounds = array<i64: 16, 16>}, {pipeline_mode = #tpu.pipeline_mode<synchronous>, transform_indices = @transform_7, window_bounds = array<i64: 16, 1>}, {transform_indices = @transform_8, window_bounds = array<i64: 1, 16, 512>}]} {
    %c0 = arith.constant 0 : index
    %c0_0 = arith.constant 0 : index
    %c0_1 = arith.constant 0 : index
    %0 = vector.load %arg1[%c0, %c0_0, %c0_1] : memref<1x16x512xf32, #tpu.memory_space<vmem>>, vector<1x16x512xf32>
    %1 = vector.shape_cast %0 : vector<1x16x512xf32> to vector<16x512xf32>
    %c0_2 = arith.constant 0 : index
    %c0_3 = arith.constant 0 : index
    %2 = vector.load %arg3[%c0_2, %c0_3] : memref<16x16xbf16, #tpu.memory_space<vmem>>, vector<16x16xbf16>
    %3 = arith.truncf %1 : vector<16x512xf32> to vector<16x512xbf16>
    %cst = arith.constant dense<0.000000e+00> : vector<16x512xf32>
    %4 = tpu.matmul %2, %3, %cst {dimension_numbers = #tpu.dot_dimension_numbers<[1], [0], [0], [1], [0, 0, 1, 1], [], []>} : vector<16x16xbf16>, vector<16x512xbf16>, vector<16x512xf32> -> vector<16x512xf32>
    %c0_4 = arith.constant 0 : index
    %c0_5 = arith.constant 0 : index
    %5 = vector.load %arg4[%c0_4, %c0_5] : memref<16x1xf32, #tpu.memory_space<vmem>>, vector<16x1xf32>
    %6 = vector.broadcast %5 : vector<16x1xf32> to vector<16x512xf32>
    %7 = arith.addf %4, %6 : vector<16x512xf32>
    %cst_6 = arith.constant 0.000000e+00 : f32
    %8 = vector.broadcast %cst_6 : f32 to vector<16x512xf32>
    %9 = arith.maximumf %7, %8 : vector<16x512xf32>
    %cst_7 = arith.constant 0.000000e+00 : f32
    %10 = vector.broadcast %cst_7 : f32 to vector<16x512xf32>
    %c0_8 = arith.constant 0 : index
    %c0_9 = arith.constant 0 : index
    %11 = vector.load %arg11[%c0_8, %c0_9] : memref<16x512xf32, #tpu.memory_space<vmem>>, vector<16x512xf32>
    tpu.vector_store %arg11[%c0_8, %c0_9], %10 {strides = array<i32>} : memref<16x512xf32, #tpu.memory_space<vmem>>, vector<16x512xf32>,
    %c73_i32 = arith.constant 73 : i32
    %12 = tpu.dynamic_rotate %9 by %c73_i32 dim 1 : vector<16x512xf32>, i32 -> vector<16x512xf32>
    %c0_10 = arith.constant 0 : index
    %c0_11 = arith.constant 0 : index
    %13 = vector.load %arg2[%c0_10, %c0_11] : memref<32x512xf32, #tpu.memory_space<vmem>>, vector<1x512xf32>
    %14 = vector.broadcast %13 : vector<1x512xf32> to vector<16x512xf32>
    %15 = arith.mulf %12, %14 : vector<16x512xf32>
    %16 = arith.truncf %15 : vector<16x512xf32> to vector<16x512xbf16>
    %c0_12 = arith.constant 0 : index
    %c0_13 = arith.constant 0 : index
    %17 = vector.load %arg10[%c0_12, %c0_13] : memref<256x512xbf16, #tpu.memory_space<vmem>>, vector<16x512xbf16>
    tpu.vector_store %arg10[%c0_12, %c0_13], %16 {strides = array<i32>} : memref<256x512xbf16, #tpu.memory_space<vmem>>, vector<16x512xbf16>,
    %c72_i32 = arith.constant 72 : i32
    %18 = tpu.dynamic_rotate %9 by %c72_i32 dim 1 : vector<16x512xf32>, i32 -> vector<16x512xf32>
    %c1 = arith.constant 1 : index
    %c0_14 = arith.constant 0 : index
    %19 = vector.load %arg2[%c1, %c0_14] : memref<32x512xf32, #tpu.memory_space<vmem>>, vector<1x512xf32>
    %20 = vector.broadcast %19 : vector<1x512xf32> to vector<16x512xf32>
    %21 = arith.mulf %18, %20 : vector<16x512xf32>
    %22 = arith.truncf %21 : vector<16x512xf32> to vector<16x512xbf16>
    %c16 = arith.constant 16 : index
    %c0_15 = arith.constant 0 : index
    %23 = vector.load %arg10[%c16, %c0_15] : memref<256x512xbf16, #tpu.memory_space<vmem>>, vector<16x512xbf16>
    tpu.vector_store %arg10[%c16, %c0_15], %22 {strides = array<i32>} : memref<256x512xbf16, #tpu.memory_space<vmem>>, vector<16x512xbf16>,
    %c71_i32 = arith.constant 71 : i32
    %24 = tpu.dynamic_rotate %9 by %c71_i32 dim 1 : vector<16x512xf32>, i32 -> vector<16x512xf32>
    %c2 = arith.constant 2 : index
    %c0_16 = arith.constant 0 : index
    %25 = vector.load %arg2[%c2, %c0_16] : memref<32x512xf32, #tpu.memory_space<vmem>>, vector<1x512xf32>
    %26 = vector.broadcast %25 : vector<1x512xf32> to vector<16x512xf32>
    %27 = arith.mulf %24, %26 : vector<16x512xf32>
    %28 = arith.truncf %27 : vector<16x512xf32> to vector<16x512xbf16>
    %c32 = arith.constant 32 : index
    %c0_17 = arith.constant 0 : index
    %29 = vector.load %arg10[%c32, %c0_17] : memref<256x512xbf16, #tpu.memory_space<vmem>>, vector<16x512xbf16>
    tpu.vector_store %arg10[%c32, %c0_17], %28 {strides = array<i32>} : memref<256x512xbf16, #tpu.memory_space<vmem>>, vector<16x512xbf16>,
    %c65_i32 = arith.constant 65 : i32
    %30 = tpu.dynamic_rotate %9 by %c65_i32 dim 1 : vector<16x512xf32>, i32 -> vector<16x512xf32>
    %c3 = arith.constant 3 : index
    %c0_18 = arith.constant 0 : index
    %31 = vector.load %arg2[%c3, %c0_18] : memref<32x512xf32, #tpu.memory_space<vmem>>, vector<1x512xf32>
    %32 = vector.broadcast %31 : vector<1x512xf32> to vector<16x512xf32>
    %33 = arith.mulf %30, %32 : vector<16x512xf32>
    %34 = arith.truncf %33 : vector<16x512xf32> to vector<16x512xbf16>
    %c48 = arith.constant 48 : index
    %c0_19 = arith.constant 0 : index
    %35 = vector.load %arg10[%c48, %c0_19] : memref<256x512xbf16, #tpu.memory_space<vmem>>, vector<16x512xbf16>
    tpu.vector_store %arg10[%c48, %c0_19], %34 {strides = array<i32>} : memref<256x512xbf16, #tpu.memory_space<vmem>>, vector<16x512xbf16>,
    %c64_i32 = arith.constant 64 : i32
    %36 = tpu.dynamic_rotate %9 by %c64_i32 dim 1 : vector<16x512xf32>, i32 -> vector<16x512xf32>
    %c4 = arith.constant 4 : index
    %c0_20 = arith.constant 0 : index
    %37 = vector.load %arg2[%c4, %c0_20] : memref<32x512xf32, #tpu.memory_space<vmem>>, vector<1x512xf32>
    %38 = vector.broadcast %37 : vector<1x512xf32> to vector<16x512xf32>
    %39 = arith.mulf %36, %38 : vector<16x512xf32>
    %40 = arith.truncf %39 : vector<16x512xf32> to vector<16x512xbf16>
    %c64 = arith.constant 64 : index
    %c0_21 = arith.constant 0 : index
    %41 = vector.load %arg10[%c64, %c0_21] : memref<256x512xbf16, #tpu.memory_space<vmem>>, vector<16x512xbf16>
    tpu.vector_store %arg10[%c64, %c0_21], %40 {strides = array<i32>} : memref<256x512xbf16, #tpu.memory_space<vmem>>, vector<16x512xbf16>,
    %c63_i32 = arith.constant 63 : i32
    %42 = tpu.dynamic_rotate %9 by %c63_i32 dim 1 : vector<16x512xf32>, i32 -> vector<16x512xf32>
    %c5 = arith.constant 5 : index
    %c0_22 = arith.constant 0 : index
    %43 = vector.load %arg2[%c5, %c0_22] : memref<32x512xf32, #tpu.memory_space<vmem>>, vector<1x512xf32>
    %44 = vector.broadcast %43 : vector<1x512xf32> to vector<16x512xf32>
    %45 = arith.mulf %42, %44 : vector<16x512xf32>
    %46 = arith.truncf %45 : vector<16x512xf32> to vector<16x512xbf16>
    %c80 = arith.constant 80 : index
    %c0_23 = arith.constant 0 : index
    %47 = vector.load %arg10[%c80, %c0_23] : memref<256x512xbf16, #tpu.memory_space<vmem>>, vector<16x512xbf16>
    tpu.vector_store %arg10[%c80, %c0_23], %46 {strides = array<i32>} : memref<256x512xbf16, #tpu.memory_space<vmem>>, vector<16x512xbf16>,
    %c57_i32 = arith.constant 57 : i32
    %48 = tpu.dynamic_rotate %9 by %c57_i32 dim 1 : vector<16x512xf32>, i32 -> vector<16x512xf32>
    %c6 = arith.constant 6 : index
    %c0_24 = arith.constant 0 : index
    %49 = vector.load %arg2[%c6, %c0_24] : memref<32x512xf32, #tpu.memory_space<vmem>>, vector<1x512xf32>
    %50 = vector.broadcast %49 : vector<1x512xf32> to vector<16x512xf32>
    %51 = arith.mulf %48, %50 : vector<16x512xf32>
    %52 = arith.truncf %51 : vector<16x512xf32> to vector<16x512xbf16>
    %c96 = arith.constant 96 : index
    %c0_25 = arith.constant 0 : index
    %53 = vector.load %arg10[%c96, %c0_25] : memref<256x512xbf16, #tpu.memory_space<vmem>>, vector<16x512xbf16>
    tpu.vector_store %arg10[%c96, %c0_25], %52 {strides = array<i32>} : memref<256x512xbf16, #tpu.memory_space<vmem>>, vector<16x512xbf16>,
    %c56_i32 = arith.constant 56 : i32
    %54 = tpu.dynamic_rotate %9 by %c56_i32 dim 1 : vector<16x512xf32>, i32 -> vector<16x512xf32>
    %c7 = arith.constant 7 : index
    %c0_26 = arith.constant 0 : index
    %55 = vector.load %arg2[%c7, %c0_26] : memref<32x512xf32, #tpu.memory_space<vmem>>, vector<1x512xf32>
    %56 = vector.broadcast %55 : vector<1x512xf32> to vector<16x512xf32>
    %57 = arith.mulf %54, %56 : vector<16x512xf32>
    %58 = arith.truncf %57 : vector<16x512xf32> to vector<16x512xbf16>
    %c112 = arith.constant 112 : index
    %c0_27 = arith.constant 0 : index
    %59 = vector.load %arg10[%c112, %c0_27] : memref<256x512xbf16, #tpu.memory_space<vmem>>, vector<16x512xbf16>
    tpu.vector_store %arg10[%c112, %c0_27], %58 {strides = array<i32>} : memref<256x512xbf16, #tpu.memory_space<vmem>>, vector<16x512xbf16>,
    %c55_i32 = arith.constant 55 : i32
    %60 = tpu.dynamic_rotate %9 by %c55_i32 dim 1 : vector<16x512xf32>, i32 -> vector<16x512xf32>
    %c8 = arith.constant 8 : index
    %c0_28 = arith.constant 0 : index
    %61 = vector.load %arg2[%c8, %c0_28] : memref<32x512xf32, #tpu.memory_space<vmem>>, vector<1x512xf32>
    %62 = vector.broadcast %61 : vector<1x512xf32> to vector<16x512xf32>
    %63 = arith.mulf %60, %62 : vector<16x512xf32>
    %64 = arith.truncf %63 : vector<16x512xf32> to vector<16x512xbf16>
    %c128 = arith.constant 128 : index
    %c0_29 = arith.constant 0 : index
    %65 = vector.load %arg10[%c128, %c0_29] : memref<256x512xbf16, #tpu.memory_space<vmem>>, vector<16x512xbf16>
    tpu.vector_store %arg10[%c128, %c0_29], %64 {strides = array<i32>} : memref<256x512xbf16, #tpu.memory_space<vmem>>, vector<16x512xbf16>,
    %c9_i32 = arith.constant 9 : i32
    %66 = tpu.dynamic_rotate %9 by %c9_i32 dim 1 : vector<16x512xf32>, i32 -> vector<16x512xf32>
    %c9 = arith.constant 9 : index
    %c0_30 = arith.constant 0 : index
    %67 = vector.load %arg2[%c9, %c0_30] : memref<32x512xf32, #tpu.memory_space<vmem>>, vector<1x512xf32>
    %68 = vector.broadcast %67 : vector<1x512xf32> to vector<16x512xf32>
    %69 = arith.mulf %66, %68 : vector<16x512xf32>
    %70 = arith.truncf %69 : vector<16x512xf32> to vector<16x512xbf16>
    %c144 = arith.constant 144 : index
    %c0_31 = arith.constant 0 : index
    %71 = vector.load %arg10[%c144, %c0_31] : memref<256x512xbf16, #tpu.memory_space<vmem>>, vector<16x512xbf16>
    tpu.vector_store %arg10[%c144, %c0_31], %70 {strides = array<i32>} : memref<256x512xbf16, #tpu.memory_space<vmem>>, vector<16x512xbf16>,
    %c8_i32 = arith.constant 8 : i32
    %72 = tpu.dynamic_rotate %9 by %c8_i32 dim 1 : vector<16x512xf32>, i32 -> vector<16x512xf32>
    %c10 = arith.constant 10 : index
    %c0_32 = arith.constant 0 : index
    %73 = vector.load %arg2[%c10, %c0_32] : memref<32x512xf32, #tpu.memory_space<vmem>>, vector<1x512xf32>
    %74 = vector.broadcast %73 : vector<1x512xf32> to vector<16x512xf32>
    %75 = arith.mulf %72, %74 : vector<16x512xf32>
    %76 = arith.truncf %75 : vector<16x512xf32> to vector<16x512xbf16>
    %c160 = arith.constant 160 : index
    %c0_33 = arith.constant 0 : index
    %77 = vector.load %arg10[%c160, %c0_33] : memref<256x512xbf16, #tpu.memory_space<vmem>>, vector<16x512xbf16>
    tpu.vector_store %arg10[%c160, %c0_33], %76 {strides = array<i32>} : memref<256x512xbf16, #tpu.memory_space<vmem>>, vector<16x512xbf16>,
    %c7_i32 = arith.constant 7 : i32
    %78 = tpu.dynamic_rotate %9 by %c7_i32 dim 1 : vector<16x512xf32>, i32 -> vector<16x512xf32>
    %c11 = arith.constant 11 : index
    %c0_34 = arith.constant 0 : index
    %79 = vector.load %arg2[%c11, %c0_34] : memref<32x512xf32, #tpu.memory_space<vmem>>, vector<1x512xf32>
    %80 = vector.broadcast %79 : vector<1x512xf32> to vector<16x512xf32>
    %81 = arith.mulf %78, %80 : vector<16x512xf32>
    %82 = arith.truncf %81 : vector<16x512xf32> to vector<16x512xbf16>
    %c176 = arith.constant 176 : index
    %c0_35 = arith.constant 0 : index
    %83 = vector.load %arg10[%c176, %c0_35] : memref<256x512xbf16, #tpu.memory_space<vmem>>, vector<16x512xbf16>
    tpu.vector_store %arg10[%c176, %c0_35], %82 {strides = array<i32>} : memref<256x512xbf16, #tpu.memory_space<vmem>>, vector<16x512xbf16>,
    %c1_i32 = arith.constant 1 : i32
    %84 = tpu.dynamic_rotate %9 by %c1_i32 dim 1 : vector<16x512xf32>, i32 -> vector<16x512xf32>
    %c12 = arith.constant 12 : index
    %c0_36 = arith.constant 0 : index
    %85 = vector.load %arg2[%c12, %c0_36] : memref<32x512xf32, #tpu.memory_space<vmem>>, vector<1x512xf32>
    %86 = vector.broadcast %85 : vector<1x512xf32> to vector<16x512xf32>
    %87 = arith.mulf %84, %86 : vector<16x512xf32>
    %88 = arith.truncf %87 : vector<16x512xf32> to vector<16x512xbf16>
    %c192 = arith.constant 192 : index
    %c0_37 = arith.constant 0 : index
    %89 = vector.load %arg10[%c192, %c0_37] : memref<256x512xbf16, #tpu.memory_space<vmem>>, vector<16x512xbf16>
    tpu.vector_store %arg10[%c192, %c0_37], %88 {strides = array<i32>} : memref<256x512xbf16, #tpu.memory_space<vmem>>, vector<16x512xbf16>,
    %90 = arith.truncf %9 : vector<16x512xf32> to vector<16x512xbf16>
    %c208 = arith.constant 208 : index
    %c0_38 = arith.constant 0 : index
    %91 = vector.load %arg10[%c208, %c0_38] : memref<256x512xbf16, #tpu.memory_space<vmem>>, vector<16x512xbf16>
    tpu.vector_store %arg10[%c208, %c0_38], %90 {strides = array<i32>} : memref<256x512xbf16, #tpu.memory_space<vmem>>, vector<16x512xbf16>,
    %c511_i32 = arith.constant 511 : i32
    %92 = tpu.dynamic_rotate %9 by %c511_i32 dim 1 : vector<16x512xf32>, i32 -> vector<16x512xf32>
    %c14 = arith.constant 14 : index
    %c0_39 = arith.constant 0 : index
    %93 = vector.load %arg2[%c14, %c0_39] : memref<32x512xf32, #tpu.memory_space<vmem>>, vector<1x512xf32>
    %94 = vector.broadcast %93 : vector<1x512xf32> to vector<16x512xf32>
    %95 = arith.mulf %92, %94 : vector<16x512xf32>
    %96 = arith.truncf %95 : vector<16x512xf32> to vector<16x512xbf16>
    %c224 = arith.constant 224 : index
    %c0_40 = arith.constant 0 : index
    %97 = vector.load %arg10[%c224, %c0_40] : memref<256x512xbf16, #tpu.memory_space<vmem>>, vector<16x512xbf16>
    tpu.vector_store %arg10[%c224, %c0_40], %96 {strides = array<i32>} : memref<256x512xbf16, #tpu.memory_space<vmem>>, vector<16x512xbf16>,
    %c505_i32 = arith.constant 505 : i32
    %98 = tpu.dynamic_rotate %9 by %c505_i32 dim 1 : vector<16x512xf32>, i32 -> vector<16x512xf32>
    %c15 = arith.constant 15 : index
    %c0_41 = arith.constant 0 : index
    %99 = vector.load %arg2[%c15, %c0_41] : memref<32x512xf32, #tpu.memory_space<vmem>>, vector<1x512xf32>
    %100 = vector.broadcast %99 : vector<1x512xf32> to vector<16x512xf32>
    %101 = arith.mulf %98, %100 : vector<16x512xf32>
    %102 = arith.truncf %101 : vector<16x512xf32> to vector<16x512xbf16>
    %c240 = arith.constant 240 : index
    %c0_42 = arith.constant 0 : index
    %103 = vector.load %arg10[%c240, %c0_42] : memref<256x512xbf16, #tpu.memory_space<vmem>>, vector<16x512xbf16>
    tpu.vector_store %arg10[%c240, %c0_42], %102 {strides = array<i32>} : memref<256x512xbf16, #tpu.memory_space<vmem>>, vector<16x512xbf16>,
    %c0_43 = arith.constant 0 : index
    %c0_44 = arith.constant 0 : index
    %104 = vector.load %arg11[%c0_43, %c0_44] : memref<16x512xf32, #tpu.memory_space<vmem>>, vector<16x512xf32>
    %c0_45 = arith.constant 0 : index
    %c0_46 = arith.constant 0 : index
    %105 = vector.load %arg5[%c0_45, %c0_46] : memref<16x432xbf16, #tpu.memory_space<vmem>>, vector<16x256xbf16>
    %c0_47 = arith.constant 0 : index
    %c0_48 = arith.constant 0 : index
    %106 = vector.load %arg10[%c0_47, %c0_48] : memref<256x512xbf16, #tpu.memory_space<vmem>>, vector<256x512xbf16>
    %cst_49 = arith.constant dense<0.000000e+00> : vector<16x512xf32>
    %107 = tpu.matmul %105, %106, %cst_49 {dimension_numbers = #tpu.dot_dimension_numbers<[1], [0], [0], [1], [0, 0, 1, 1], [], []>} : vector<16x256xbf16>, vector<256x512xbf16>, vector<16x512xf32> -> vector<16x512xf32>
    %108 = arith.addf %104, %107 : vector<16x512xf32>
    %c0_50 = arith.constant 0 : index
    %c0_51 = arith.constant 0 : index
    %109 = vector.load %arg11[%c0_50, %c0_51] : memref<16x512xf32, #tpu.memory_space<vmem>>, vector<16x512xf32>
    tpu.vector_store %arg11[%c0_50, %c0_51], %108 {strides = array<i32>} : memref<16x512xf32, #tpu.memory_space<vmem>>, vector<16x512xf32>,
    %c504_i32 = arith.constant 504 : i32
    %110 = tpu.dynamic_rotate %9 by %c504_i32 dim 1 : vector<16x512xf32>, i32 -> vector<16x512xf32>
    %c16_52 = arith.constant 16 : index
    %c0_53 = arith.constant 0 : index
    %111 = vector.load %arg2[%c16_52, %c0_53] : memref<32x512xf32, #tpu.memory_space<vmem>>, vector<1x512xf32>
    %112 = vector.broadcast %111 : vector<1x512xf32> to vector<16x512xf32>
    %113 = arith.mulf %110, %112 : vector<16x512xf32>
    %114 = arith.truncf %113 : vector<16x512xf32> to vector<16x512xbf16>
    %c0_54 = arith.constant 0 : index
    %c0_55 = arith.constant 0 : index
    %115 = vector.load %arg10[%c0_54, %c0_55] : memref<256x512xbf16, #tpu.memory_space<vmem>>, vector<16x512xbf16>
    tpu.vector_store %arg10[%c0_54, %c0_55], %114 {strides = array<i32>} : memref<256x512xbf16, #tpu.memory_space<vmem>>, vector<16x512xbf16>,
    %c503_i32 = arith.constant 503 : i32
    %116 = tpu.dynamic_rotate %9 by %c503_i32 dim 1 : vector<16x512xf32>, i32 -> vector<16x512xf32>
    %c17 = arith.constant 17 : index
    %c0_56 = arith.constant 0 : index
    %117 = vector.load %arg2[%c17, %c0_56] : memref<32x512xf32, #tpu.memory_space<vmem>>, vector<1x512xf32>
    %118 = vector.broadcast %117 : vector<1x512xf32> to vector<16x512xf32>
    %119 = arith.mulf %116, %118 : vector<16x512xf32>
    %120 = arith.truncf %119 : vector<16x512xf32> to vector<16x512xbf16>
    %c16_57 = arith.constant 16 : index
    %c0_58 = arith.constant 0 : index
    %121 = vector.load %arg10[%c16_57, %c0_58] : memref<256x512xbf16, #tpu.memory_space<vmem>>, vector<16x512xbf16>
    tpu.vector_store %arg10[%c16_57, %c0_58], %120 {strides = array<i32>} : memref<256x512xbf16, #tpu.memory_space<vmem>>, vector<16x512xbf16>,
    %c457_i32 = arith.constant 457 : i32
    %122 = tpu.dynamic_rotate %9 by %c457_i32 dim 1 : vector<16x512xf32>, i32 -> vector<16x512xf32>
    %c18 = arith.constant 18 : index
    %c0_59 = arith.constant 0 : index
    %123 = vector.load %arg2[%c18, %c0_59] : memref<32x512xf32, #tpu.memory_space<vmem>>, vector<1x512xf32>
    %124 = vector.broadcast %123 : vector<1x512xf32> to vector<16x512xf32>
    %125 = arith.mulf %122, %124 : vector<16x512xf32>
    %126 = arith.truncf %125 : vector<16x512xf32> to vector<16x512xbf16>
    %c32_60 = arith.constant 32 : index
    %c0_61 = arith.constant 0 : index
    %127 = vector.load %arg10[%c32_60, %c0_61] : memref<256x512xbf16, #tpu.memory_space<vmem>>, vector<16x512xbf16>
    tpu.vector_store %arg10[%c32_60, %c0_61], %126 {strides = array<i32>} : memref<256x512xbf16, #tpu.memory_space<vmem>>, vector<16x512xbf16>,
    %c456_i32 = arith.constant 456 : i32
    %128 = tpu.dynamic_rotate %9 by %c456_i32 dim 1 : vector<16x512xf32>, i32 -> vector<16x512xf32>
    %c19 = arith.constant 19 : index
    %c0_62 = arith.constant 0 : index
    %129 = vector.load %arg2[%c19, %c0_62] : memref<32x512xf32, #tpu.memory_space<vmem>>, vector<1x512xf32>
    %130 = vector.broadcast %129 : vector<1x512xf32> to vector<16x512xf32>
    %131 = arith.mulf %128, %130 : vector<16x512xf32>
    %132 = arith.truncf %131 : vector<16x512xf32> to vector<16x512xbf16>
    %c48_63 = arith.constant 48 : index
    %c0_64 = arith.constant 0 : index
    %133 = vector.load %arg10[%c48_63, %c0_64] : memref<256x512xbf16, #tpu.memory_space<vmem>>, vector<16x512xbf16>
    tpu.vector_store %arg10[%c48_63, %c0_64], %132 {strides = array<i32>} : memref<256x512xbf16, #tpu.memory_space<vmem>>, vector<16x512xbf16>,
    %c455_i32 = arith.constant 455 : i32
    %134 = tpu.dynamic_rotate %9 by %c455_i32 dim 1 : vector<16x512xf32>, i32 -> vector<16x512xf32>
    %c20 = arith.constant 20 : index
    %c0_65 = arith.constant 0 : index
    %135 = vector.load %arg2[%c20, %c0_65] : memref<32x512xf32, #tpu.memory_space<vmem>>, vector<1x512xf32>
    %136 = vector.broadcast %135 : vector<1x512xf32> to vector<16x512xf32>
    %137 = arith.mulf %134, %136 : vector<16x512xf32>
    %138 = arith.truncf %137 : vector<16x512xf32> to vector<16x512xbf16>
    %c64_66 = arith.constant 64 : index
    %c0_67 = arith.constant 0 : index
    %139 = vector.load %arg10[%c64_66, %c0_67] : memref<256x512xbf16, #tpu.memory_space<vmem>>, vector<16x512xbf16>
    tpu.vector_store %arg10[%c64_66, %c0_67], %138 {strides = array<i32>} : memref<256x512xbf16, #tpu.memory_space<vmem>>, vector<16x512xbf16>,
    %c449_i32 = arith.constant 449 : i32
    %140 = tpu.dynamic_rotate %9 by %c449_i32 dim 1 : vector<16x512xf32>, i32 -> vector<16x512xf32>
    %c21 = arith.constant 21 : index
    %c0_68 = arith.constant 0 : index
    %141 = vector.load %arg2[%c21, %c0_68] : memref<32x512xf32, #tpu.memory_space<vmem>>, vector<1x512xf32>
    %142 = vector.broadcast %141 : vector<1x512xf32> to vector<16x512xf32>
    %143 = arith.mulf %140, %142 : vector<16x512xf32>
    %144 = arith.truncf %143 : vector<16x512xf32> to vector<16x512xbf16>
    %c80_69 = arith.constant 80 : index
    %c0_70 = arith.constant 0 : index
    %145 = vector.load %arg10[%c80_69, %c0_70] : memref<256x512xbf16, #tpu.memory_space<vmem>>, vector<16x512xbf16>
    tpu.vector_store %arg10[%c80_69, %c0_70], %144 {strides = array<i32>} : memref<256x512xbf16, #tpu.memory_space<vmem>>, vector<16x512xbf16>,
    %c448_i32 = arith.constant 448 : i32
    %146 = tpu.dynamic_rotate %9 by %c448_i32 dim 1 : vector<16x512xf32>, i32 -> vector<16x512xf32>
    %c22 = arith.constant 22 : index
    %c0_71 = arith.constant 0 : index
    %147 = vector.load %arg2[%c22, %c0_71] : memref<32x512xf32, #tpu.memory_space<vmem>>, vector<1x512xf32>
    %148 = vector.broadcast %147 : vector<1x512xf32> to vector<16x512xf32>
    %149 = arith.mulf %146, %148 : vector<16x512xf32>
    %150 = arith.truncf %149 : vector<16x512xf32> to vector<16x512xbf16>
    %c96_72 = arith.constant 96 : index
    %c0_73 = arith.constant 0 : index
    %151 = vector.load %arg10[%c96_72, %c0_73] : memref<256x512xbf16, #tpu.memory_space<vmem>>, vector<16x512xbf16>
    tpu.vector_store %arg10[%c96_72, %c0_73], %150 {strides = array<i32>} : memref<256x512xbf16, #tpu.memory_space<vmem>>, vector<16x512xbf16>,
    %c447_i32 = arith.constant 447 : i32
    %152 = tpu.dynamic_rotate %9 by %c447_i32 dim 1 : vector<16x512xf32>, i32 -> vector<16x512xf32>
    %c23 = arith.constant 23 : index
    %c0_74 = arith.constant 0 : index
    %153 = vector.load %arg2[%c23, %c0_74] : memref<32x512xf32, #tpu.memory_space<vmem>>, vector<1x512xf32>
    %154 = vector.broadcast %153 : vector<1x512xf32> to vector<16x512xf32>
    %155 = arith.mulf %152, %154 : vector<16x512xf32>
    %156 = arith.truncf %155 : vector<16x512xf32> to vector<16x512xbf16>
    %c112_75 = arith.constant 112 : index
    %c0_76 = arith.constant 0 : index
    %157 = vector.load %arg10[%c112_75, %c0_76] : memref<256x512xbf16, #tpu.memory_space<vmem>>, vector<16x512xbf16>
    tpu.vector_store %arg10[%c112_75, %c0_76], %156 {strides = array<i32>} : memref<256x512xbf16, #tpu.memory_space<vmem>>, vector<16x512xbf16>,
    %c441_i32 = arith.constant 441 : i32
    %158 = tpu.dynamic_rotate %9 by %c441_i32 dim 1 : vector<16x512xf32>, i32 -> vector<16x512xf32>
    %c24 = arith.constant 24 : index
    %c0_77 = arith.constant 0 : index
    %159 = vector.load %arg2[%c24, %c0_77] : memref<32x512xf32, #tpu.memory_space<vmem>>, vector<1x512xf32>
    %160 = vector.broadcast %159 : vector<1x512xf32> to vector<16x512xf32>
    %161 = arith.mulf %158, %160 : vector<16x512xf32>
    %162 = arith.truncf %161 : vector<16x512xf32> to vector<16x512xbf16>
    %c128_78 = arith.constant 128 : index
    %c0_79 = arith.constant 0 : index
    %163 = vector.load %arg10[%c128_78, %c0_79] : memref<256x512xbf16, #tpu.memory_space<vmem>>, vector<16x512xbf16>
    tpu.vector_store %arg10[%c128_78, %c0_79], %162 {strides = array<i32>} : memref<256x512xbf16, #tpu.memory_space<vmem>>, vector<16x512xbf16>,
    %c440_i32 = arith.constant 440 : i32
    %164 = tpu.dynamic_rotate %9 by %c440_i32 dim 1 : vector<16x512xf32>, i32 -> vector<16x512xf32>
    %c25 = arith.constant 25 : index
    %c0_80 = arith.constant 0 : index
    %165 = vector.load %arg2[%c25, %c0_80] : memref<32x512xf32, #tpu.memory_space<vmem>>, vector<1x512xf32>
    %166 = vector.broadcast %165 : vector<1x512xf32> to vector<16x512xf32>
    %167 = arith.mulf %164, %166 : vector<16x512xf32>
    %168 = arith.truncf %167 : vector<16x512xf32> to vector<16x512xbf16>
    %c144_81 = arith.constant 144 : index
    %c0_82 = arith.constant 0 : index
    %169 = vector.load %arg10[%c144_81, %c0_82] : memref<256x512xbf16, #tpu.memory_space<vmem>>, vector<16x512xbf16>
    tpu.vector_store %arg10[%c144_81, %c0_82], %168 {strides = array<i32>} : memref<256x512xbf16, #tpu.memory_space<vmem>>, vector<16x512xbf16>,
    %c439_i32 = arith.constant 439 : i32
    %170 = tpu.dynamic_rotate %9 by %c439_i32 dim 1 : vector<16x512xf32>, i32 -> vector<16x512xf32>
    %c26 = arith.constant 26 : index
    %c0_83 = arith.constant 0 : index
    %171 = vector.load %arg2[%c26, %c0_83] : memref<32x512xf32, #tpu.memory_space<vmem>>, vector<1x512xf32>
    %172 = vector.broadcast %171 : vector<1x512xf32> to vector<16x512xf32>
    %173 = arith.mulf %170, %172 : vector<16x512xf32>
    %174 = arith.truncf %173 : vector<16x512xf32> to vector<16x512xbf16>
    %c160_84 = arith.constant 160 : index
    %c0_85 = arith.constant 0 : index
    %175 = vector.load %arg10[%c160_84, %c0_85] : memref<256x512xbf16, #tpu.memory_space<vmem>>, vector<16x512xbf16>
    tpu.vector_store %arg10[%c160_84, %c0_85], %174 {strides = array<i32>} : memref<256x512xbf16, #tpu.memory_space<vmem>>, vector<16x512xbf16>,
    %c0_86 = arith.constant 0 : index
    %c0_87 = arith.constant 0 : index
    %176 = vector.load %arg11[%c0_86, %c0_87] : memref<16x512xf32, #tpu.memory_space<vmem>>, vector<16x512xf32>
    %c0_88 = arith.constant 0 : index
    %c256 = arith.constant 256 : index
    %177 = vector.load %arg5[%c0_88, %c256] : memref<16x432xbf16, #tpu.memory_space<vmem>>, vector<16x176xbf16>
    %c0_89 = arith.constant 0 : index
    %c0_90 = arith.constant 0 : index
    %178 = vector.load %arg10[%c0_89, %c0_90] : memref<256x512xbf16, #tpu.memory_space<vmem>>, vector<176x512xbf16>
    %cst_91 = arith.constant dense<0.000000e+00> : vector<16x512xf32>
    %179 = tpu.matmul %177, %178, %cst_91 {dimension_numbers = #tpu.dot_dimension_numbers<[1], [0], [0], [1], [0, 0, 1, 1], [], []>} : vector<16x176xbf16>, vector<176x512xbf16>, vector<16x512xf32> -> vector<16x512xf32>
    %180 = arith.addf %176, %179 : vector<16x512xf32>
    %c0_92 = arith.constant 0 : index
    %c0_93 = arith.constant 0 : index
    %181 = vector.load %arg11[%c0_92, %c0_93] : memref<16x512xf32, #tpu.memory_space<vmem>>, vector<16x512xf32>
    tpu.vector_store %arg11[%c0_92, %c0_93], %180 {strides = array<i32>} : memref<16x512xf32, #tpu.memory_space<vmem>>, vector<16x512xf32>,
    %c0_94 = arith.constant 0 : index
    %c0_95 = arith.constant 0 : index
    %182 = vector.load %arg11[%c0_94, %c0_95] : memref<16x512xf32, #tpu.memory_space<vmem>>, vector<16x512xf32>
    %c0_96 = arith.constant 0 : index
    %c0_97 = arith.constant 0 : index
    %183 = vector.load %arg6[%c0_96, %c0_97] : memref<16x1xf32, #tpu.memory_space<vmem>>, vector<16x1xf32>
    %184 = vector.broadcast %183 : vector<16x1xf32> to vector<16x512xf32>
    %185 = arith.addf %182, %184 : vector<16x512xf32>
    %cst_98 = arith.constant 0.000000e+00 : f32
    %186 = vector.broadcast %cst_98 : f32 to vector<16x512xf32>
    %187 = arith.maximumf %185, %186 : vector<16x512xf32>
    %c0_99 = arith.constant 0 : index
    %c0_100 = arith.constant 0 : index
    %188 = vector.load %arg7[%c0_99, %c0_100] : memref<16x16xbf16, #tpu.memory_space<vmem>>, vector<16x16xbf16>
    %189 = arith.truncf %187 : vector<16x512xf32> to vector<16x512xbf16>
    %cst_101 = arith.constant dense<0.000000e+00> : vector<16x512xf32>
    %190 = tpu.matmul %188, %189, %cst_101 {dimension_numbers = #tpu.dot_dimension_numbers<[1], [0], [0], [1], [0, 0, 1, 1], [], []>} : vector<16x16xbf16>, vector<16x512xbf16>, vector<16x512xf32> -> vector<16x512xf32>
    %c0_102 = arith.constant 0 : index
    %c0_103 = arith.constant 0 : index
    %191 = vector.load %arg8[%c0_102, %c0_103] : memref<16x1xf32, #tpu.memory_space<vmem>>, vector<16x1xf32>
    %192 = vector.broadcast %191 : vector<16x1xf32> to vector<16x512xf32>
    %193 = arith.addf %190, %192 : vector<16x512xf32>
    %194 = arith.addf %193, %1 : vector<16x512xf32>
    %cst_104 = arith.constant 0.000000e+00 : f32
    %195 = vector.broadcast %cst_104 : f32 to vector<16x512xf32>
    %196 = arith.maximumf %194, %195 : vector<16x512xf32>
    %c0_105 = arith.constant 0 : index
    %c0_106 = arith.constant 0 : index
    %c0_107 = arith.constant 0 : index
    %197 = vector.load %arg9[%c0_105, %c0_106, %c0_107] : memref<1x16x512xf32, #tpu.memory_space<vmem>>, vector<1x16x512xf32>
    %198 = vector.shape_cast %197 : vector<1x16x512xf32> to vector<16x512xf32>
    %199 = vector.shape_cast %196 : vector<16x512xf32> to vector<1x16x512xf32>
    tpu.vector_store %arg9[%c0_105, %c0_106, %c0_107], %199 {strides = array<i32>} : memref<1x16x512xf32, #tpu.memory_space<vmem>>, vector<1x16x512xf32>,
    return
  }
  func.func @transform_0(%arg0: i32) -> (i32, i32, i32) {
    %c0_i32 = arith.constant 0 : i32
    %c0_i32_0 = arith.constant 0 : i32
    %c0_i32_1 = arith.constant 0 : i32
    return %arg0, %c0_i32, %c0_i32_0 : i32, i32, i32
  }
  func.func @transform_1(%arg0: i32) -> (i32, i32) {
    %c0_i32 = arith.constant 0 : i32
    %c0_i32_0 = arith.constant 0 : i32
    %c0_i32_1 = arith.constant 0 : i32
    return %c0_i32, %c0_i32_0 : i32, i32
  }
  func.func @transform_2(%arg0: i32) -> (i32, i32) {
    %c0_i32 = arith.constant 0 : i32
    %c0_i32_0 = arith.constant 0 : i32
    %c0_i32_1 = arith.constant 0 : i32
    return %c0_i32, %c0_i32_0 : i32, i32
  }
  func.func @transform_3(%arg0: i32) -> (i32, i32) {
    %c0_i32 = arith.constant 0 : i32
    %c0_i32_0 = arith.constant 0 : i32
    %c0_i32_1 = arith.constant 0 : i32
    return %c0_i32, %c0_i32_0 : i32, i32
  }
  func.func @transform_4(%arg0: i32) -> (i32, i32) {
    %c0_i32 = arith.constant 0 : i32
    %c0_i32_0 = arith.constant 0 : i32
    %c0_i32_1 = arith.constant 0 : i32
    return %c0_i32, %c0_i32_0 : i32, i32
  }
  func.func @transform_5(%arg0: i32) -> (i32, i32) {
    %c0_i32 = arith.constant 0 : i32
    %c0_i32_0 = arith.constant 0 : i32
    %c0_i32_1 = arith.constant 0 : i32
    return %c0_i32, %c0_i32_0 : i32, i32
  }
  func.func @transform_6(%arg0: i32) -> (i32, i32) {
    %c0_i32 = arith.constant 0 : i32
    %c0_i32_0 = arith.constant 0 : i32
    %c0_i32_1 = arith.constant 0 : i32
    return %c0_i32, %c0_i32_0 : i32, i32
  }
  func.func @transform_7(%arg0: i32) -> (i32, i32) {
    %c0_i32 = arith.constant 0 : i32
    %c0_i32_0 = arith.constant 0 : i32
    %c0_i32_1 = arith.constant 0 : i32
    return %c0_i32, %c0_i32_0 : i32, i32
  }
  func.func @transform_8(%arg0: i32) -> (i32, i32, i32) {
    %c0_i32 = arith.constant 0 : i32
    %c0_i32_0 = arith.constant 0 : i32
    %c0_i32_1 = arith.constant 0 : i32
    return %arg0, %c0_i32, %c0_i32_0 : i32, i32, i32
  }
}

</mosaic_0001>

<bundles_post_ra>
// kernel: tpu_custom_call.1
= control target key start
LH: loop header
LB: loop body
LE: loop exit
PB: predicated region body
PF: predicated region fallthrough
CT: control target
= control target key end

     0   :  { %s6269_s0 = inlined_call_operand.hbm [shape: f32[2,16,512], index: 0, kind: input, shape index: {}]   ;;  %s6270_s1 = inlined_call_operand.hbm [shape: f32[32,512], index: 1, kind: input, shape index: {}]   ;;  %s6271_s2 = inlined_call_operand.vmem [shape: bf16[16,16], index: 2, kind: input, shape index: {}]   ;;  %s6272_s3 = inlined_call_operand.vmem [shape: f32[16,1], index: 3, kind: input, shape index: {}]   ;;  %s6273_s4 = inlined_call_operand.vmem [shape: bf16[16,432], index: 4, kind: input, shape index: {}]   ;;  %s6274_s5 = inlined_call_operand.vmem [shape: f32[16,1], index: 5, kind: input, shape index: {}]   ;;  %s6275_s6 = inlined_call_operand.vmem [shape: bf16[16,16], index: 6, kind: input, shape index: {}]   ;;  %s6276_s7 = inlined_call_operand.vmem [shape: f32[16,1], index: 7, kind: input, shape index: {}]   ;;  %s6277_s8 = inlined_call_operand.hbm [shape: f32[2,16,512], index: 8, kind: output, shape index: {}]  }
   0x1   :  { %6430 = sst [smem:[#allocation129_spill]] %s6270_s1 }
   0x2   :  { %13 = vsyncpa [#allocation5], 0 }
   0x3   :  { %15 = vsyncpa [#allocation5 + $0x1], 0 }
   0x4   :  { %16 = vsyncpa [#allocation8], 0 }
   0x5   :  { %17 = vsyncpa [#allocation6], 0 }
   0x6   :  { %19 = vsyncpa [#allocation6 + $0x1], 0  ;;  %s4382_s27 = smov 0   ;;  %s4384_s28 = smov 0  }
   0x7   :  { %s4386_s29 = smov 0   ;;  %s4388_s30 = smov 0  }
   0x8 LB: > { %s4403_s9 = sadd.s32 4294967295, %s4310_s30   ;;  %s3629_s10 = sadd.s32 4294967294, %s4310_s30   ;;  %s4310_s30 = sphi %s4388_s30, %s6754_s30   ;;  %s4306_s29 = sphi %s4386_s29, %s6757_s29   ;;  %s4302_s28 = sphi %s4384_s28, %s6756_s28   ;;  %s4298_s27 = sphi %s4382_s27, %s6755_s27  }
   0x9   : > { %p45_p0 = scmp.ne.s32.totalorder %s4302_s28, %s4298_s27  ;;  %p6281_p1 = scmp.eq.s32.totalorder %s4403_s9, 0 }
   0xa   : > { %p222_p3 = scmp.eq.s32.totalorder %s3629_s10, 1  ;;  %p3630_p5 = scmp.ge.s32.totalorder %s4310_s30, 1 }
   0xb   : > { %p4412_p4 = por %p6281_p1, %p45_p0  ;;  %p229_p7 = scmp.lt.s32.totalorder %s4310_s30, 3 }
   0xc   : > { %p4417_p6 = por %p222_p3, %p45_p0  ;;  %s4312_s14 = smov [#allocation7]  }
   0xd   : > { %s6431_s11 = scalar_select %p4412_p4, 1, 0 }
   0xe   : > { %s6432_s12 = scalar_select %p4417_p6, 1, 0 }
   0xf   : > { %p4422_p8 = pnand %p3630_p5, %p229_p7  ;;  %s241_s15 = sshll.u32 %s4312_s14, 4  ;;  %s242_s15 = int_to_ptr.vmem [resolvable:$true] %s241_s15 }
  0x10   : > { %s4436_s17 = sadd.s32 1, %s4310_s30   ;;  %s32_s18 = sadd.s32 1, %s4306_s29 }
  0x11   : > { %s6433_s13 = scalar_select %p4422_p8, 1, 0 }
  0x12   : > { %p4099_p9 = pneg %p4422_p8  ;;  %6435 = sst [smem:[#allocation13_spill]] %s4436_s17 }
  0x13   : > { %s29_s19 = ssub.s32 %s4310_s30, %s4436_s17  ;;  %s4199_s20 = scalar_lea.vmem %s242_s15, 2048 }
  0x14   : > { %p4431_p11 = pnand %p4099_p9, %p6281_p1  ;;  %p4200_p13 = scmp.ne.s32.totalorder %s242_s15, %s4199_s20 }
  0x15   : > { %p4207_p5 = scmp.lt.s32.totalorder %s242_s15, %s242_s15  ;;  %p4208_p7 = scmp.lt.s32.totalorder %s4199_s20, %s4199_s20 }
  0x16   : > { %p4190_p12 = pneg %p4431_p11 }
  0x17   : > { %p4209_p10 = por %p4208_p7, %p4207_p5 }
  0x18   : > { %p4202_p0 = pnand %p4200_p13, %p4190_p12 }
  0x1a   : > { %p4203_p3 = pneg %p4202_p0 }
  0x1c   : > { %p4210_p2 = pnand %p4209_p10, %p4203_p3 }
  0x1e   : > { %4213 = shalt.err (!%p4210_p2)
}
  0x1f   : > { %s6280_s21 = smov 512   ;;  %s6282_s22 = smov 32  }
  0x20   : > { %s6436_s1 = sld [smem:[#allocation129_spill]]  ;;  %p30_p2 = scmp.eq.s32.totalorder %s29_s19, 0 }
  0x21   : > { %p39_p9 = scmp.ne.s32.totalorder %s4306_s29, %s4302_s28  ;;  %p40_p10 = scmp.eq.s32.totalorder %s4310_s30, 0 }
  0x22   : > { %p4112_p12 = scmp.lt.s32.totalorder %s4310_s30, 2  ;;  %p6437_p0 = scmp.eq.s32.totalorder %s4403_s9, 1 }
  0x23   : > { %s4456_s25 = scalar_select %p30_p2, %s4306_s29, %s32_s18  }
  0x24   : > { %p41_p13 = por %p40_p10, %p39_p9  ;;  %p4460_p3 = por %p6437_p0, %p39_p9 }
  0x25   : > { %s273_s10 = sand.u32 1, %s4306_s29   ;;  %s3873_s14 = sshll.u32 %s4310_s30, 10 }
  0x26   : > { %4102 = dma.hbm_to_vmem [thread:$0]  (!%p4431_p11), %s6436_s1, 2048, %s242_s15, [#allocation8], %s6280_s21, %s6280_s21, %s6282_s22  }
  0x27   : > { %s6438_s26 = scalar_select %p4460_p3, 1, 0 }
  0x28   : > { %s3633_s16 = sshll.u32 %s273_s10, 6  ;;  %s4469_s23 = scalar_lea.hbm %s6269_s0, %s3873_s14 }
  0x29   : > { %s277_s15 = scalar_lea.vmem [#allocation4], %s3633_s16  ;;  %p4471_p11 = pnand %p4112_p12, %p41_p13 }
  0x2a   : > { %s284_s18 = sshll.u32 %s277_s15, 4  ;;  %s4477_s24 = scalar_lea.sflag [#allocation5], %s273_s10  ;;  %s4475_s18 = int_to_ptr.vmem [resolvable:$true] %s284_s18 }
  0x2b   : > { %s4214_s21 = scalar_lea.hbm %s4469_s23, 1024  ;;  %p4216_p7 = pneg %p4471_p11 }
  0x2c   : > { %p4215_p5 = scmp.ne.s32.totalorder %s4469_s23, %s4214_s21  ;;  %s4219_s16 = scalar_lea.hbm %s6269_s0, 2048 }
  0x2d   : > { %p4220_p10 = scmp.lt.s32.totalorder %s4469_s23, %s6269_s0  ;;  %p4221_p12 = scmp.lt.s32.totalorder %s4219_s16, %s4214_s21 }
  0x2e   : > { %p4217_p2 = pnand %p4216_p7, %p4215_p5 }
  0x2f   : > { %p4222_p13 = por %p4221_p12, %p4220_p10 }
  0x30   : > { %p4218_p9 = pneg %p4217_p2 }
  0x32   : > { %p4223_p0 = pnand %p4222_p13, %p4218_p9 }
  0x34   : > { %4226 = shalt.err (!%p4223_p0)
}
  0x35   : > { %s4227_s10 = scalar_lea.vmem %s4475_s18, 1024  ;;  %s4315_s22 = smov [#allocation4]  }
  0x36   : > { %p4228_p1 = scmp.ne.s32.totalorder %s4475_s18, %s4227_s10  ;;  %s4232_s1 = sshll.u32 %s4315_s22, 4  ;;  %s4233_s1 = int_to_ptr.vmem [resolvable:$false] %s4232_s1 }
  0x37   : > { %s4234_s17 = scalar_lea.vmem %s4233_s1, 2048  ;;  %p4235_p2 = scmp.lt.s32.totalorder %s4475_s18, %s4233_s1 }
  0x38   : > { %p4230_p6 = pnand %p4228_p1, %p4216_p7  ;;  %p4236_p3 = scmp.lt.s32.totalorder %s4234_s17, %s4227_s10 }
  0x3a   : > { %p4231_p5 = pneg %p4230_p6  ;;  %p4237_p4 = por %p4236_p3, %p4235_p2 }
  0x3c   : > { %p4238_p8 = pnand %p4237_p4, %p4231_p5 }
  0x3e   : > { %4241 = shalt.err (!%p4238_p8)
}
  0x3f   : > { %s6440_s21 = smov 32   ;;  %s6441_s14 = smov 512  }
  0x40   : > { %4106 = dma.hbm_to_vmem [thread:$0]  (!%p4471_p11), %s4469_s23, 1024, %s4475_s18, %s4477_s24, %s6441_s14, %s6441_s14, %s6440_s21  }
  0x41   : > { %p6442_p1 = scmp.ne.s32.totalorder %s6433_s13, 0 }
  0x43   : > { %296 = sbr.rel (%p6442_p1) target bundleno = 1130 (0x46a), region = 52 }
  0x48   : > { %s4504_s22 = sand.u32 1, %s4302_s28   ;;  %p6443_p4 = scmp.ne.s32.totalorder %s6431_s11, 0 }
  0x49   : > { %s6286_s1 = sshll.u32 %s4504_s22, 6  ;;  %s299_s16 = scalar_lea.sflag [#allocation5], %s4504_s22 }
  0x4a   : > { %s4510_s19 = scalar_lea.vmem [#allocation4], %s6286_s1 }
  0x4b   : > { %4285 = dma.done.wait (%p6443_p4), %s299_s16, 1024  }
  0x4c   : > { %4287 = vsyncadd (%p6443_p4), %s299_s16, 4294966272  ;;  %p6444_p6 = scmp.eq.s32.totalorder %s4403_s9, 0 }
  0x4e   : > { %4289 = dma.done.wait (%p6444_p6), [#allocation8], 2048   ;;  %p6445_p8 = pmov %p6444_p6 }
  0x4f   : > { %v6289_v0 = vmov 0   ;;  %v341_v1 = vld [vmem:[%s4510_s19 + $0x8] sm:$0xff]  ;;  %v343_v3 = vld [vmem:[%s4510_s19 + $0x18] sm:$0xff]  ;;  %v340_v6 = vld [vmem:[%s4510_s19] sm:$0xff]  ;;  %vm371_vm0 = vcmask 130048   ;;  %s4317_s15 = smov 56  }
  0x50   : > { %4291 = vsyncadd (%p6445_p8), [#allocation8], 4294965248  ;;  %407 = vmatprep.mubr.bf16.mxu0 %v6289_v0  ;;  %450 = vmatprep.mubr.bf16.mxu1 %v6289_v0  ;;  %v345_v2 = vld [vmem:[%s4510_s19 + $0x28] sm:$0xff]  ;;  %v347_v5 = vld [vmem:[%s4510_s19 + $0x38] sm:$0xff]  ;;  %s4318_s10 = smov 57   ;;  %s4319_s17 = smov 63  }
  0x51   : > { %4170 = vset.pattern.permute.xlu0 %v6289_v0  ;;  %4171 = vset.pattern.permute.xlu1 %v6289_v0  ;;  %v351_v4 = vpack.c.bf16 %v345_v2, %v341_v1  ;;  %v344_v7 = vld [vmem:[%s4510_s19 + $0x20] sm:$0xff]  ;;  %v353_v8 = vpack.c.bf16 %v347_v5, %v343_v3  ;;  %v342_v10 = vld [vmem:[%s4510_s19 + $0x10] sm:$0xff]  ;;  %v355_v15 = vld [vmem:[%s6272_s3 + $0x8] sm:$0xff]  ;;  %s4320_s21 = smov 64   ;;  %s4321_s14 = smov 65  }
  0x52   : > { %v350_v9 = vpack.c.bf16 %v344_v7, %v340_v6  ;;  %v346_v11 = vld [vmem:[%s4510_s19 + $0x30] sm:$0xff]  ;;  %v4172_v13 = vld [vmem:[%s6271_s2] sm:$0xff]   ;;  %s4322_s16 = smov 71   ;;  %s4323_s11 = smov 72  }
  0x53   : > { %389 = vmatprep.subr.bf16.mxu0 %v351_v4  ;;  %v352_v12 = vpack.c.bf16 %v346_v11, %v342_v10  ;;  %v354_v14 = vld [vmem:[%s6272_s3] sm:$0xff]  ;;  %432 = vmatprep.subr.bf16.mxu1 %v353_v8  ;;  %s4324_s13 = smov 73   ;;  %s4325_s23 = smov 121  }
  0x54   : > { %390 = vmatpush1.bf16.msra.mxu0 %v350_v9  ;;  %358 = vperm.xlu0 %4170, %v354_v14   ;;  %s4326_s18 = smov 127   ;;  %s6287_s24 = smov 1  }
  0x55   : > { %433 = vmatpush1.bf16.msra.mxu1 %v352_v12  ;;  %s4328_s20 = smov 7   ;;  %s4329_s1 = smov 8  }
  0x56   : > { %p6751_p11 = scmp.ne.s32.totalorder %s6438_s26, 0 }
  0x57   : > { %3641 = vmatmul.mubr.msk.bf16.vlgmr.msra.gmra.mxu0 %vm371_vm0, %v4172_v13 }
  0x58   : > { %3642 = vmatmul.mubr.msk.bf16.vlgmr.msra.gmra.mxu1 %vm371_vm0, %v4172_v13  ;;  %363 = vperm.xlu0 %4170, %v355_v15  }
  0xcf   : > { %v4543_v16 = vpop.permute.xlu0 %358 }
  0xd3   : > { %v4553_v24 = vpop.permute.xlu0 %363 }
 0x117   : > { %v409_v17 = vpop.f32.mrf.mxu0 }
 0x118   : > { %v410_v18 = vadd.f32 %v409_v17, %v4543_v16  ;;  %v452_v19 = vpop.f32.mrf.mxu1 }
 0x119   : > { %v453_v20 = vadd.f32 %v452_v19, %v4543_v16  ;;  %v4547_v21 = vpop.f32.mrf.mxu0 }
 0x11a   : > { %v4549_v22 = vmax.f32 %v410_v18, 0.0  ;;  %v4551_v23 = vpop.f32.mrf.mxu1  ;;  %v412_v32 = vadd.f32 %v4547_v21, %v4543_v16 }
 0x11b   : > { %v4555_v25 = vmax.f32 %v453_v20, 0.0  ;;  %v413_v26 = vpop.f32.mrf.mxu0  ;;  %v455_v34 = vadd.f32 %v4551_v23, %v4543_v16  ;;  %v493_v23 = vlaneseq }
 0x11c   : > { %6446 = vst [vmem:[#allocation14_spill] sm:$0xff] %v4549_v22  ;;  %v414_v27 = vadd.f32 %v413_v26, %v4553_v24  ;;  %v456_v28 = vpop.f32.mrf.mxu1  ;;  %1066 = vrot.lane.b32.xlu1 %v4549_v22, %s4317_s15  ;;  %v4669_v33 = vmax.f32 %v412_v32, 0.0 }
 0x11d   : > { %6447 = vst [vmem:[#allocation15_spill] sm:$0xff] %v4555_v25  ;;  %1074 = vrot.lane.b32.xlu0 %v4555_v25, %s4317_s15  ;;  %v457_v30 = vadd.f32 %v456_v28, %v4553_v24  ;;  %v415_v35 = vpop.f32.mrf.mxu0  ;;  %v4678_v37 = vmax.f32 %v455_v34, 0.0 }
 0x11e   : > { %v4562_v29 = vmax.f32 %v414_v27, 0.0  ;;  %v416_v36 = vadd.f32 %v415_v35, %v4553_v24  ;;  %v458_v38 = vpop.f32.mrf.mxu1  ;;  %v507_v27 = vshrl.u32 %v493_v23, 7 }
 0x11f   : > { %v4569_v31 = vmax.f32 %v457_v30, 0.0  ;;  %6450 = vst [vmem:[#allocation18_spill] sm:$0xff] %v4678_v37  ;;  %v459_v40 = vadd.f32 %v458_v38, %v4553_v24 }
 0x120   : > { %6448 = vst [vmem:[#allocation16_spill] sm:$0xff] %v4562_v29  ;;  %1068 = vrot.lane.b32.xlu1 %v4562_v29, %s4317_s15  ;;  %v4684_v39 = vmax.f32 %v416_v36, 0.0  ;;  %v4879_v32 = vsub.s32 0, %v507_v27  ;;  %v4881_v34 = vsub.s32 1, %v507_v27  ;;  %v4883_v35 = vsub.s32 2, %v507_v27 }
 0x121   : > { %982 = vrot.lane.b32.xlu0 %v4549_v22, %s4318_s10  ;;  %6449 = vst [vmem:[#allocation17_spill] sm:$0xff] %v4569_v31  ;;  %v4691_v41 = vmax.f32 %v459_v40, 0.0  ;;  %v1092_v36 = vld [vmem:[#allocation7 + $0x7] ss:$8 sm:$0xf]  ;;  %v4887_v0 = vsub.s32 3, %v507_v27 }
 0x122   : > { %6451 = vst [vmem:[#allocation19_spill] sm:$0xff] %v4684_v39  ;;  %6487 = vst [vmem:[#allocation54_spill] sm:$0xff] %v4879_v32  ;;  %v2854_v40 = vld [vmem:[#allocation7 + $0x61] ss:$8 sm:$0xf] }
 0x123   : > { %6452 = vst [vmem:[#allocation20_spill] sm:$0xff] %v4691_v41  ;;  %6488 = vst [vmem:[#allocation55_spill] sm:$0xff] %v4881_v34  ;;  %v4904_v27 = vrot.slane %v2854_v40, %v4879_v32 }
 0x124   : > { %1076 = vrot.lane.b32.xlu1 %v4569_v31, %s4317_s15  ;;  %6489 = vst [vmem:[#allocation56_spill] sm:$0xff] %v4883_v35  ;;  %6491 = vst [vmem:[#allocation58_spill] sm:$0xff] %v4887_v0 }
 0x125   : > { %990 = vrot.lane.b32.xlu0 %v4555_v25, %s4318_s10 }
 0x128   : > { %984 = vrot.lane.b32.xlu1 %v4562_v29, %s4318_s10 }
 0x129   : > { %898 = vrot.lane.b32.xlu0 %v4549_v22, %s4319_s17 }
 0x12c   : > { %992 = vrot.lane.b32.xlu1 %v4569_v31, %s4318_s10 }
 0x12d   : > { %906 = vrot.lane.b32.xlu0 %v4555_v25, %s4319_s17 }
 0x130   : > { %900 = vrot.lane.b32.xlu1 %v4562_v29, %s4319_s17 }
 0x131   : > { %814 = vrot.lane.b32.xlu0 %v4549_v22, %s4320_s21 }
 0x134   : > { %908 = vrot.lane.b32.xlu1 %v4569_v31, %s4319_s17 }
 0x135   : > { %822 = vrot.lane.b32.xlu0 %v4555_v25, %s4320_s21 }
 0x138   : > { %816 = vrot.lane.b32.xlu1 %v4562_v29, %s4320_s21 }
 0x139   : > { %730 = vrot.lane.b32.xlu0 %v4549_v22, %s4321_s14 }
 0x13c   : > { %824 = vrot.lane.b32.xlu1 %v4569_v31, %s4320_s21 }
 0x13d   : > { %738 = vrot.lane.b32.xlu0 %v4555_v25, %s4321_s14 }
 0x140   : > { %732 = vrot.lane.b32.xlu1 %v4562_v29, %s4321_s14 }
 0x141   : > { %646 = vrot.lane.b32.xlu0 %v4549_v22, %s4322_s16 }
 0x144   : > { %740 = vrot.lane.b32.xlu1 %v4569_v31, %s4321_s14 }
 0x145   : > { %654 = vrot.lane.b32.xlu0 %v4555_v25, %s4322_s16 }
 0x148   : > { %648 = vrot.lane.b32.xlu1 %v4562_v29, %s4322_s16 }
 0x149   : > { %562 = vrot.lane.b32.xlu0 %v4549_v22, %s4323_s11 }
 0x14c   : > { %656 = vrot.lane.b32.xlu1 %v4569_v31, %s4322_s16 }
 0x14d   : > { %570 = vrot.lane.b32.xlu0 %v4555_v25, %s4323_s11 }
 0x150   : > { %564 = vrot.lane.b32.xlu1 %v4562_v29, %s4323_s11 }
 0x151   : > { %477 = vrot.lane.b32.xlu0 %v4549_v22, %s4324_s13 }
 0x154   : > { %572 = vrot.lane.b32.xlu1 %v4569_v31, %s4323_s11 }
 0x155   : > { %485 = vrot.lane.b32.xlu0 %v4555_v25, %s4324_s13 }
 0x158   : > { %479 = vrot.lane.b32.xlu1 %v4562_v29, %s4324_s13 }
 0x159   : > { %1682 = vrot.lane.b32.xlu0 %v4549_v22, %s4325_s23 }
 0x15c   : > { %487 = vrot.lane.b32.xlu1 %v4569_v31, %s4324_s13 }
 0x15d   : > { %1690 = vrot.lane.b32.xlu0 %v4555_v25, %s4325_s23 }
 0x160   : > { %1684 = vrot.lane.b32.xlu1 %v4562_v29, %s4325_s23 }
 0x161   : > { %1598 = vrot.lane.b32.xlu0 %v4549_v22, %s4326_s18 }
 0x164   : > { %1692 = vrot.lane.b32.xlu1 %v4569_v31, %s4325_s23 }
 0x165   : > { %1606 = vrot.lane.b32.xlu0 %v4555_v25, %s4326_s18 }
 0x168   : > { %1600 = vrot.lane.b32.xlu1 %v4562_v29, %s4326_s18 }
 0x169   : > { %1486 = vrot.lane.b32.xlu0 %v4549_v22, %s6287_s24 }
 0x16c   : > { %1608 = vrot.lane.b32.xlu1 %v4569_v31, %s4326_s18 }
 0x16d   : > { %1494 = vrot.lane.b32.xlu0 %v4555_v25, %s6287_s24 }
 0x170   : > { %1488 = vrot.lane.b32.xlu1 %v4562_v29, %s6287_s24 }
 0x171   : > { %1402 = vrot.lane.b32.xlu0 %v4549_v22, %s4328_s20 }
 0x174   : > { %1496 = vrot.lane.b32.xlu1 %v4569_v31, %s6287_s24  ;;  %s4330_s24 = smov 9  }
 0x175   : > { %1410 = vrot.lane.b32.xlu0 %v4555_v25, %s4328_s20 }
 0x178   : > { %1404 = vrot.lane.b32.xlu1 %v4562_v29, %s4328_s20 }
 0x179   : > { %1318 = vrot.lane.b32.xlu0 %v4549_v22, %s4329_s1 }
 0x17c   : > { %1412 = vrot.lane.b32.xlu1 %v4569_v31, %s4328_s20 }
 0x17d   : > { %1326 = vrot.lane.b32.xlu0 %v4555_v25, %s4329_s1 }
 0x180   : > { %1320 = vrot.lane.b32.xlu1 %v4562_v29, %s4329_s1 }
 0x181   : > { %1234 = vrot.lane.b32.xlu0 %v4549_v22, %s4330_s24 }
 0x184   : > { %1328 = vrot.lane.b32.xlu1 %v4569_v31, %s4329_s1 }
 0x185   : > { %1070 = vrot.lane.b32.xlu0 %v4669_v33, %s4317_s15 }
 0x188   : > { %1236 = vrot.lane.b32.xlu1 %v4562_v29, %s4330_s24 }
 0x189   : > { %1078 = vrot.lane.b32.xlu0 %v4678_v37, %s4317_s15 }
 0x18c   : > { %1072 = vrot.lane.b32.xlu1 %v4684_v39, %s4317_s15 }
 0x18d   : > { %986 = vrot.lane.b32.xlu0 %v4669_v33, %s4318_s10 }
 0x18e   : > { %v4693_v42 = vpop.permute.xlu1 %1066 }
 0x18f   : > { %v4695_v43 = vpop.permute.xlu0 %1074 }
 0x190   : > { %1080 = vrot.lane.b32.xlu1 %v4691_v41, %s4317_s15  ;;  %s6475_s15 = smov 1  }
 0x191   : > { %994 = vrot.lane.b32.xlu0 %v4678_v37, %s4318_s10 }
 0x192   : > { %v4701_v44 = vpop.permute.xlu1 %1068 }
 0x193   : > { %v4703_v45 = vpop.permute.xlu0 %982 }
 0x194   : > { %988 = vrot.lane.b32.xlu1 %v4684_v39, %s4318_s10 }
 0x195   : > { %902 = vrot.lane.b32.xlu0 %v4669_v33, %s4319_s17 }
 0x196   : > { %v4709_v46 = vpop.permute.xlu1 %1076 }
 0x197   : > { %v4711_v47 = vpop.permute.xlu0 %990 }
 0x198   : > { %996 = vrot.lane.b32.xlu1 %v4691_v41, %s4318_s10  ;;  %s3533_s10 = scalar_lea.sflag [#allocation6], %s4504_s22 }
 0x199   : > { %910 = vrot.lane.b32.xlu0 %v4678_v37, %s4319_s17 }
 0x19a   : > { %v4717_v48 = vpop.permute.xlu1 %984 }
 0x19b   : > { %v4719_v49 = vpop.permute.xlu0 %898 }
 0x19c   : > { %904 = vrot.lane.b32.xlu1 %v4684_v39, %s4319_s17 }
 0x19d   : > { %818 = vrot.lane.b32.xlu0 %v4669_v33, %s4320_s21 }
 0x19e   : > { %v4725_v50 = vpop.permute.xlu1 %992 }
 0x19f   : > { %v4727_v51 = vpop.permute.xlu0 %906 }
 0x1a0   : > { %912 = vrot.lane.b32.xlu1 %v4691_v41, %s4319_s17 }
 0x1a1   : > { %826 = vrot.lane.b32.xlu0 %v4678_v37, %s4320_s21 }
 0x1a2   : > { %v4733_v52 = vpop.permute.xlu1 %900 }
 0x1a3   : > { %v4735_v53 = vpop.permute.xlu0 %814 }
 0x1a4   : > { %820 = vrot.lane.b32.xlu1 %v4684_v39, %s4320_s21 }
 0x1a5   : > { %734 = vrot.lane.b32.xlu0 %v4669_v33, %s4321_s14 }
 0x1a6   : > { %v4741_v54 = vpop.permute.xlu1 %908 }
 0x1a7   : > { %v4743_v55 = vpop.permute.xlu0 %822 }
 0x1a8   : > { %828 = vrot.lane.b32.xlu1 %v4691_v41, %s4320_s21  ;;  %s4332_s21 = smov 119  }
 0x1a9   : > { %742 = vrot.lane.b32.xlu0 %v4678_v37, %s4321_s14 }
 0x1aa   : > { %v4749_v56 = vpop.permute.xlu1 %816 }
 0x1ab   : > { %6453 = vst [vmem:[#allocation21_spill] sm:$0xff] %v4749_v56  ;;  %v4751_v57 = vpop.permute.xlu0 %730  ;;  %v2559_v56 = vld [vmem:[#allocation7 + $0x44] ss:$8 sm:$0xf] }
 0x1ac   : > { %6454 = vst [vmem:[#allocation22_spill] sm:$0xff] %v4751_v57  ;;  %736 = vrot.lane.b32.xlu1 %v4684_v39, %s4321_s14 }
 0x1ad   : > { %650 = vrot.lane.b32.xlu0 %v4669_v33, %s4322_s16 }
 0x1ae   : > { %v4757_v58 = vpop.permute.xlu1 %824 }
 0x1af   : > { %6455 = vst [vmem:[#allocation23_spill] sm:$0xff] %v4757_v58  ;;  %v4759_v59 = vpop.permute.xlu0 %738  ;;  %v672_v58 = vld [vmem:[#allocation7 + $0x2] ss:$8 sm:$0xf] }
 0x1b0   : > { %6456 = vst [vmem:[#allocation24_spill] sm:$0xff] %v4759_v59  ;;  %744 = vrot.lane.b32.xlu1 %v4691_v41, %s4321_s14  ;;  %s4333_s14 = smov 120  }
 0x1b1   : > { %658 = vrot.lane.b32.xlu0 %v4678_v37, %s4322_s16 }
 0x1b2   : > { %v4765_v60 = vpop.permute.xlu1 %732 }
 0x1b3   : > { %6457 = vst [vmem:[#allocation25_spill] sm:$0xff] %v4765_v60  ;;  %v4767_v61 = vpop.permute.xlu0 %646 }
 0x1b4   : > { %6458 = vst [vmem:[#allocation26_spill] sm:$0xff] %v4767_v61  ;;  %652 = vrot.lane.b32.xlu1 %v4684_v39, %s4322_s16  ;;  %v2618_v61 = vld [vmem:[#allocation7 + $0x45] ss:$8 sm:$0xf] }
 0x1b5   : > { %566 = vrot.lane.b32.xlu0 %v4669_v33, %s4323_s11 }
 0x1b6   : > { %v4773_v62 = vpop.permute.xlu1 %740 }
 0x1b7   : > { %6459 = vst [vmem:[#allocation27_spill] sm:$0xff] %v4773_v62  ;;  %v4775_v63 = vpop.permute.xlu0 %654 }
 0x1b8   : > { %6460 = vst [vmem:[#allocation28_spill] sm:$0xff] %v4775_v63  ;;  %660 = vrot.lane.b32.xlu1 %v4691_v41, %s4322_s16 }
 0x1b9   : > { %574 = vrot.lane.b32.xlu0 %v4678_v37, %s4323_s11 }
 0x1ba   : > { %v4781_v1 = vpop.permute.xlu1 %648 }
 0x1bb   : > { %6461 = vst [vmem:[#allocation29_spill] sm:$0xff] %v4781_v1  ;;  %v4783_v2 = vpop.permute.xlu0 %562  ;;  %v756_v1 = vld [vmem:[#allocation7 + $0x3] ss:$8 sm:$0xf] }
 0x1bc   : > { %6462 = vst [vmem:[#allocation30_spill] sm:$0xff] %v4783_v2  ;;  %568 = vrot.lane.b32.xlu1 %v4684_v39, %s4323_s11 }
 0x1bd   : > { %481 = vrot.lane.b32.xlu0 %v4669_v33, %s4324_s13 }
 0x1be   : > { %v4789_v3 = vpop.permute.xlu1 %656 }
 0x1bf   : > { %6463 = vst [vmem:[#allocation31_spill] sm:$0xff] %v4789_v3  ;;  %v4791_v4 = vpop.permute.xlu0 %570 }
 0x1c0   : > { %6464 = vst [vmem:[#allocation32_spill] sm:$0xff] %v4791_v4  ;;  %576 = vrot.lane.b32.xlu1 %v4691_v41, %s4323_s11 }
 0x1c1   : > { %489 = vrot.lane.b32.xlu0 %v4678_v37, %s4324_s13 }
 0x1c2   : > { %v4797_v5 = vpop.permute.xlu1 %564 }
 0x1c3   : > { %6465 = vst [vmem:[#allocation33_spill] sm:$0xff] %v4797_v5  ;;  %v4799_v6 = vpop.permute.xlu0 %477 }
 0x1c4   : > { %6466 = vst [vmem:[#allocation34_spill] sm:$0xff] %v4799_v6  ;;  %483 = vrot.lane.b32.xlu1 %v4684_v39, %s4324_s13 }
 0x1c5   : > { %1686 = vrot.lane.b32.xlu0 %v4669_v33, %s4325_s23 }
 0x1c6   : > { %v4805_v7 = vpop.permute.xlu1 %572 }
 0x1c7   : > { %6467 = vst [vmem:[#allocation35_spill] sm:$0xff] %v4805_v7  ;;  %v4807_v8 = vpop.permute.xlu0 %485 }
 0x1c8   : > { %6468 = vst [vmem:[#allocation36_spill] sm:$0xff] %v4807_v8  ;;  %491 = vrot.lane.b32.xlu1 %v4691_v41, %s4324_s13 }
 0x1c9   : > { %1694 = vrot.lane.b32.xlu0 %v4678_v37, %s4325_s23 }
 0x1ca   : > { %v4813_v9 = vpop.permute.xlu1 %479 }
 0x1cb   : > { %6469 = vst [vmem:[#allocation37_spill] sm:$0xff] %v4813_v9  ;;  %v4815_v10 = vpop.permute.xlu0 %1682  ;;  %v2677_v9 = vld [vmem:[#allocation7 + $0x46] ss:$8 sm:$0xf] }
 0x1cc   : > { %6470 = vst [vmem:[#allocation38_spill] sm:$0xff] %v4815_v10  ;;  %1688 = vrot.lane.b32.xlu1 %v4684_v39, %s4325_s23  ;;  %v4994_v60 = vrot.slane %v2677_v9, %v4881_v34  ;;  %v5003_v59 = vrot.slane %v2677_v9, %v4883_v35 }
 0x1cd   : > { %1602 = vrot.lane.b32.xlu0 %v4669_v33, %s4326_s18 }
 0x1ce   : > { %v4821_v11 = vpop.permute.xlu1 %487  ;;  %6501 = vst [vmem:[#allocation68_spill] sm:$0xff] %v4994_v60  ;;  %6504 = vst [vmem:[#allocation71_spill] sm:$0xff] %v5003_v59  ;;  %v5014_v60 = vrot.slane %v756_v1, %v4883_v35  ;;  %v5023_v59 = vrot.slane %v756_v1, %v4879_v32 }
 0x1cf   : > { %6471 = vst [vmem:[#allocation39_spill] sm:$0xff] %v4821_v11  ;;  %v4823_v12 = vpop.permute.xlu0 %1690  ;;  %v840_v11 = vld [vmem:[#allocation7 + $0x4] ss:$8 sm:$0xf] }
 0x1d0   : > { %6472 = vst [vmem:[#allocation40_spill] sm:$0xff] %v4823_v12  ;;  %1696 = vrot.lane.b32.xlu1 %v4691_v41, %s4325_s23  ;;  %v4986_v62 = vrot.slane %v840_v11, %v4883_v35  ;;  %v4997_v57 = vrot.slane %v840_v11, %v4879_v32  ;;  %6508 = vst [vmem:[#allocation75_spill] sm:$0xff] %v5014_v60  ;;  %v5037_v60 = vrot.slane %v672_v58, %v4881_v34  ;;  %s6750_s23 = sshll.u32 %s4504_s22, 6 }
 0x1d1   : > { %1610 = vrot.lane.b32.xlu0 %v4678_v37, %s4326_s18  ;;  %6511 = vst [vmem:[#allocation78_spill] sm:$0xff] %v5023_v59  ;;  %v5063_v59 = vrot.slane %v2559_v56, %v4887_v0 }
 0x1d2   : > { %v4829_v13 = vpop.permute.xlu1 %1684  ;;  %6499 = vst [vmem:[#allocation66_spill] sm:$0xff] %v4986_v62  ;;  %6502 = vst [vmem:[#allocation69_spill] sm:$0xff] %v4997_v57  ;;  %v5017_v57 = vrot.slane %v2618_v61, %v4879_v32 }
 0x1d3   : > { %6473 = vst [vmem:[#allocation41_spill] sm:$0xff] %v4829_v13  ;;  %v4831_v14 = vpop.permute.xlu0 %1598  ;;  %6515 = vst [vmem:[#allocation82_spill] sm:$0xff] %v5037_v60  ;;  %v5055_v60 = vrot.slane %v672_v58, %v4887_v0 }
 0x1d4   : > { %6474 = vst [vmem:[#allocation42_spill] sm:$0xff] %v4831_v14  ;;  %1604 = vrot.lane.b32.xlu1 %v4684_v39, %s4326_s18  ;;  %v2736_v14 = vld [vmem:[#allocation7 + $0x47] ss:$8 sm:$0xf]  ;;  %6509 = vst [vmem:[#allocation76_spill] sm:$0xff] %v5017_v57  ;;  %v5034_v57 = vrot.slane %v2618_v61, %v4887_v0 }
 0x1d5   : > { %1490 = vrot.lane.b32.xlu0 %v4669_v33, %s6475_s15  ;;  %v4966_v4 = vrot.slane %v2736_v14, %v4881_v34  ;;  %v4975_v3 = vrot.slane %v2736_v14, %v4883_v35  ;;  %v4980_v63 = vrot.slane %v2736_v14, %v4887_v0  ;;  %6520 = vst [vmem:[#allocation87_spill] sm:$0xff] %v5055_v60  ;;  %6523 = vst [vmem:[#allocation90_spill] sm:$0xff] %v5063_v59 }
 0x1d6   : > { %v4837_v15 = vpop.permute.xlu1 %1692  ;;  %6514 = vst [vmem:[#allocation81_spill] sm:$0xff] %v5034_v57  ;;  %v504_v57 = vld [vmem:[#allocation7] ss:$8 sm:$0xf] }
 0x1d7   : > { %6476 = vst [vmem:[#allocation43_spill] sm:$0xff] %v4837_v15  ;;  %v4839_v16 = vpop.permute.xlu0 %1606  ;;  %6496 = vst [vmem:[#allocation63_spill] sm:$0xff] %v4975_v3 }
 0x1d8   : > { %6477 = vst [vmem:[#allocation44_spill] sm:$0xff] %v4839_v16  ;;  %1612 = vrot.lane.b32.xlu1 %v4691_v41, %s4326_s18  ;;  %v4923_v16 = vrot.slane %v2854_v40, %v4887_v0  ;;  %6497 = vst [vmem:[#allocation64_spill] sm:$0xff] %v4980_v63  ;;  %s338_s18 = scalar_lea.vmem [#allocation9], %s6750_s23 }
 0x1d9   : > { %1498 = vrot.lane.b32.xlu0 %v4678_v37, %s6475_s15 }
 0x1da   : > { %v4845_v17 = vpop.permute.xlu1 %1600 }
 0x1db   : > { %6478 = vst [vmem:[#allocation45_spill] sm:$0xff] %v4845_v17  ;;  %v4847_v18 = vpop.permute.xlu0 %1486  ;;  %v4912_v17 = vrot.slane %v1092_v36, %v4879_v32 }
 0x1dc   : > { %6479 = vst [vmem:[#allocation46_spill] sm:$0xff] %v4847_v18  ;;  %1492 = vrot.lane.b32.xlu1 %v4684_v39, %s6475_s15  ;;  %v4909_v18 = vrot.slane %v2854_v40, %v4881_v34 }
 0x1dd   : > { %1406 = vrot.lane.b32.xlu0 %v4669_v33, %s4328_s20 }
 0x1de   : > { %v4853_v19 = vpop.permute.xlu1 %1608 }
 0x1df   : > { %6480 = vst [vmem:[#allocation47_spill] sm:$0xff] %v4853_v19  ;;  %v4855_v20 = vpop.permute.xlu0 %1494  ;;  %v924_v19 = vld [vmem:[#allocation7 + $0x5] ss:$8 sm:$0xf] }
 0x1e0   : > { %6481 = vst [vmem:[#allocation48_spill] sm:$0xff] %v4855_v20  ;;  %1500 = vrot.lane.b32.xlu1 %v4691_v41, %s6475_s15  ;;  %v4898_v20 = vrot.slane %v1092_v36, %v4881_v34  ;;  %v4955_v7 = vrot.slane %v924_v19, %v4881_v34  ;;  %v4958_v5 = vrot.slane %v924_v19, %v4883_v35 }
 0x1e1   : > { %1414 = vrot.lane.b32.xlu0 %v4678_v37, %s4328_s20 }
 0x1e2   : > { %v4861_v21 = vpop.permute.xlu1 %1488 }
 0x1e3   : > { %6482 = vst [vmem:[#allocation49_spill] sm:$0xff] %v4861_v21  ;;  %v4863_v24 = vpop.permute.xlu0 %1402 }
 0x1e4   : > { %6483 = vst [vmem:[#allocation50_spill] sm:$0xff] %v4863_v24  ;;  %1408 = vrot.lane.b32.xlu1 %v4684_v39, %s4328_s20 }
 0x1e5   : > { %1322 = vrot.lane.b32.xlu0 %v4669_v33, %s4329_s1 }
 0x1e6   : > { %v4869_v26 = vpop.permute.xlu1 %1496 }
 0x1e7   : > { %6484 = vst [vmem:[#allocation51_spill] sm:$0xff] %v4869_v26  ;;  %v4871_v28 = vpop.permute.xlu0 %1410  ;;  %v4895_v26 = vand.u32 127, %v493_v23  ;;  %v4915_v23 = vrot.slane %v1092_v36, %v4887_v0 }
 0x1e8   : > { %6485 = vst [vmem:[#allocation52_spill] sm:$0xff] %v4871_v28  ;;  %1416 = vrot.lane.b32.xlu1 %v4691_v41, %s4328_s20  ;;  %v1008_v28 = vld [vmem:[#allocation7 + $0x6] ss:$8 sm:$0xf]  ;;  %s3982_s20 = sshll.u32 %s4403_s9, 10 }
 0x1e9   : > { %1330 = vrot.lane.b32.xlu0 %v4678_v37, %s4329_s1  ;;  %v4929_v13 = vrot.slane %v1008_v28, %v4883_v35  ;;  %v4940_v12 = vrot.slane %v1008_v28, %v4879_v32  ;;  %vm1082_vm1 = vcmp.lt.s32.totalorder %v4895_v26, 56  ;;  %vm998_vm2 = vcmp.lt.s32.totalorder %v4895_v26, 57  ;;  %s6226_s9 = scalar_lea.hbm %s6277_s8, %s3982_s20 }
 0x1ea   : > { %v4877_v30 = vpop.permute.xlu1 %1404  ;;  %vm914_vm3 = vcmp.lt.s32.totalorder %v4895_v26, 63  ;;  %vm830_vm4 = vcmp.lt.s32.totalorder %v4895_v26, 64  ;;  %vm746_vm5 = vcmp.lt.s32.totalorder %v4895_v26, 65  ;;  %vm662_vm6 = vcmp.lt.s32.totalorder %v4895_v26, 71 }
 0x1eb   : > { %6486 = vst [vmem:[#allocation53_spill] sm:$0xff] %v4877_v30  ;;  %v4885_v38 = vpop.permute.xlu0 %1318  ;;  %v2795_v30 = vld [vmem:[#allocation7 + $0x60] ss:$8 sm:$0xf]  ;;  %vm578_vm7 = vcmp.lt.s32.totalorder %v4895_v26, 72  ;;  %vm495_vm8 = vcmp.lt.s32.totalorder %v4895_v26, 73 }
 0x1ec   : > { %6490 = vst [vmem:[#allocation57_spill] sm:$0xff] %v4885_v38  ;;  %1324 = vrot.lane.b32.xlu1 %v4684_v39, %s4329_s1  ;;  %v4901_v38 = vrot.slane %v1092_v36, %v4883_v35  ;;  %v4932_v36 = vrot.slane %v2795_v30, %v4879_v32  ;;  %v4937_v15 = vrot.slane %v2795_v30, %v4881_v34  ;;  %vm1698_vm9 = vcmp.lt.s32.totalorder %v4895_v26, 121 }
 0x1ed   : > { %1238 = vrot.lane.b32.xlu0 %v4669_v33, %s4330_s24  ;;  %v4946_v10 = vrot.slane %v2795_v30, %v4883_v35  ;;  %v4952_v8 = vrot.slane %v2795_v30, %v4887_v0  ;;  %v4972_v30 = vrot.slane %v924_v19, %v4887_v0  ;;  %vm1614_vm10 = vcmp.lt.s32.totalorder %v4895_v26, 127 }
 0x1ee   : > { %v4893_v24 = vpop.permute.xlu1 %1412  ;;  %vm1502_vm11 = vcmp.lt.s32.totalorder %v4895_v26, 1  ;;  %vm1418_vm12 = vcmp.lt.s32.totalorder %v4895_v26, 7  ;;  %vm1334_vm13 = vcmp.lt.s32.totalorder %v4895_v26, 8  ;;  %vm1250_vm14 = vcmp.lt.s32.totalorder %v4895_v26, 9 }
 0x1ef   : > { %6492 = vst [vmem:[#allocation59_spill] sm:$0xff] %v4893_v24  ;;  %v4906_v21 = vpop.permute.xlu0 %1326  ;;  %v4918_v24 = vrot.slane %v2854_v40, %v4883_v35  ;;  %v4943_v40 = vrot.slane %v1008_v28, %v4887_v0  ;;  %vm1166_vm15 = vcmp.lt.s32.totalorder %v4895_v26, 55 }
 0x1f0   : > { %6493 = vst [vmem:[#allocation60_spill] sm:$0xff] %v4906_v21  ;;  %1332 = vrot.lane.b32.xlu1 %v4691_v41, %s4329_s1  ;;  %v4926_v21 = vrot.slane %v1008_v28, %v4881_v34  ;;  %v4961_v28 = vrot.slane %v2736_v14, %v4879_v32  ;;  %v5000_v14 = vrot.slane %v840_v11, %v4887_v0  ;;  %s4331_s1 = smov 55  }
 0x1f1   : > { %1242 = vrot.lane.b32.xlu0 %v4555_v25, %s4330_s24 }
 0x1f2   : > { %v4948_v6 = vpop.permute.xlu1 %1320  ;;  %6503 = vst [vmem:[#allocation70_spill] sm:$0xff] %v5000_v14  ;;  %v5020_v14 = vrot.slane %v2618_v61, %v4881_v34 }
 0x1f3   : > { %6494 = vst [vmem:[#allocation61_spill] sm:$0xff] %v4948_v6  ;;  %v4963_v2 = vpop.permute.xlu0 %1234  ;;  %v4969_v6 = vrot.slane %v924_v19, %v4879_v32  ;;  %v4989_v19 = vrot.slane %v2677_v9, %v4879_v32 }
 0x1f4   : > { %6495 = vst [vmem:[#allocation62_spill] sm:$0xff] %v4963_v2  ;;  %1240 = vrot.lane.b32.xlu1 %v4684_v39, %s4330_s24  ;;  %v4983_v2 = vrot.slane %v840_v11, %v4881_v34  ;;  %6510 = vst [vmem:[#allocation77_spill] sm:$0xff] %v5020_v14  ;;  %v5040_v14 = vrot.slane %v672_v58, %v4883_v35 }
 0x1f5   : > { %6500 = vst [vmem:[#allocation67_spill] sm:$0xff] %v4989_v19  ;;  %1246 = vrot.lane.b32.xlu0 %v4678_v37, %s4330_s24  ;;  %v5008_v19 = vrot.slane %v2677_v9, %v4887_v0  ;;  %v5029_v9 = vrot.slane %v2618_v61, %v4883_v35  ;;  %v5052_v61 = vrot.slane %v672_v58, %v4879_v32 }
 0x1f6   : > { %6498 = vst [vmem:[#allocation65_spill] sm:$0xff] %v4983_v2  ;;  %v5005_v62 = vpop.permute.xlu1 %1328  ;;  %v5011_v2 = vrot.slane %v756_v1, %v4881_v34  ;;  %6516 = vst [vmem:[#allocation83_spill] sm:$0xff] %v5040_v14  ;;  %v5058_v14 = vrot.slane %v2559_v56, %v4883_v35 }
 0x1f7   : > { %6505 = vst [vmem:[#allocation72_spill] sm:$0xff] %v5005_v62  ;;  %6506 = vst [vmem:[#allocation73_spill] sm:$0xff] %v5008_v19  ;;  %v1071_v11 = vpop.permute.xlu0 %1070  ;;  %v5026_v62 = vrot.slane %v756_v1, %v4887_v0  ;;  %v2500_v19 = vld [vmem:[#allocation7 + $0x43] ss:$8 sm:$0xf]  ;;  %v5043_v1 = vrot.slane %v2559_v56, %v4879_v32 }
 0x1f8   : > { %6507 = vst [vmem:[#allocation74_spill] sm:$0xff] %v5011_v2  ;;  %6513 = vst [vmem:[#allocation80_spill] sm:$0xff] %v5029_v9  ;;  %v588_v2 = vld [vmem:[#allocation7 + $0x1] ss:$8 sm:$0xf]  ;;  %1244 = vrot.lane.b32.xlu1 %v4569_v31, %s4330_s24  ;;  %v5049_v9 = vrot.slane %v2559_v56, %v4881_v34  ;;  %v5075_v60 = vrot.slane %v2500_v19, %v4881_v34  ;;  %v5084_v56 = vrot.slane %v2500_v19, %v4883_v35 }
 0x1f9   : > { %6512 = vst [vmem:[#allocation79_spill] sm:$0xff] %v5026_v62  ;;  %6517 = vst [vmem:[#allocation84_spill] sm:$0xff] %v5043_v1  ;;  %1150 = vrot.lane.b32.xlu0 %v4549_v22, %s4331_s1  ;;  %v2441_v1 = vld [vmem:[#allocation7 + $0x42] ss:$8 sm:$0xf]  ;;  %v5066_v63 = vrot.slane %v588_v2, %v4881_v34 }
 0x1fa   : > { %6518 = vst [vmem:[#allocation85_spill] sm:$0xff] %v5049_v9  ;;  %6519 = vst [vmem:[#allocation86_spill] sm:$0xff] %v5052_v61  ;;  %v5060_v62 = vpop.permute.xlu1 %1236  ;;  %v5069_v9 = vrot.slane %v588_v2, %v4883_v35  ;;  %v5072_v61 = vrot.slane %v2500_v19, %v4879_v32 }
 0x1fb   : > { %6521 = vst [vmem:[#allocation88_spill] sm:$0xff] %v5058_v14  ;;  %6522 = vst [vmem:[#allocation89_spill] sm:$0xff] %v5060_v62  ;;  %v1079_v58 = vpop.permute.xlu0 %1078  ;;  %v5078_v14 = vrot.slane %v588_v2, %v4879_v32  ;;  %v5081_v62 = vrot.slane %v588_v2, %v4887_v0  ;;  %v1624_v2 = vld [vmem:[#allocation7 + $0x26] ss:$8 sm:$0xf] }
 0x1fc   : > { %6524 = vst [vmem:[#allocation91_spill] sm:$0xff] %v5066_v63  ;;  %6525 = vst [vmem:[#allocation92_spill] sm:$0xff] %v5069_v9  ;;  %v1708_v63 = vld [vmem:[#allocation7 + $0x27] ss:$8 sm:$0xf]  ;;  %1248 = vrot.lane.b32.xlu1 %v4691_v41, %s4330_s24  ;;  %v5089_v9 = vrot.slane %v2500_v19, %v4887_v0  ;;  %v5106_v19 = vrot.slane %v2441_v1, %v4881_v34  ;;  %s3546_s24 = sshll.u32 %s338_s18, 4  ;;  %s6220_s24 = int_to_ptr.vmem [resolvable:$true] %s3546_s24 }
 0x1fd   : > { %6526 = vst [vmem:[#allocation93_spill] sm:$0xff] %v5072_v61  ;;  %6527 = vst [vmem:[#allocation94_spill] sm:$0xff] %v5075_v60  ;;  %v5092_v61 = vrot.slane %v504_v57, %v4881_v34  ;;  %v5095_v60 = vrot.slane %v504_v57, %v4883_v35  ;;  %1154 = vrot.lane.b32.xlu0 %v4669_v33, %s4331_s1  ;;  %v5121_v59 = vrot.slane %v1708_v63, %v4879_v32  ;;  %s4242_s17 = scalar_lea.vmem %s6220_s24, 1024 }
 0x1fe   : > { %6528 = vst [vmem:[#allocation95_spill] sm:$0xff] %v5078_v14  ;;  %6529 = vst [vmem:[#allocation96_spill] sm:$0xff] %v5081_v62  ;;  %v5098_v14 = vrot.slane %v2441_v1, %v4879_v32  ;;  %v5118_v62 = vrot.slane %v2441_v1, %v4887_v0  ;;  %v5124_v3 = vrot.slane %v1708_v63, %v4881_v34  ;;  %p4243_p3 = scmp.ne.s32.totalorder %s6220_s24, %s4242_s17 }
 0x1ff   : > { %6530 = vst [vmem:[#allocation97_spill] sm:$0xff] %v5084_v56  ;;  %6531 = vst [vmem:[#allocation98_spill] sm:$0xff] %v5089_v9  ;;  %v1087_v56 = vsel %vm1082_vm1, %v4693_v42, %v1071_v11  ;;  %v5109_v9 = vrot.slane %v504_v57, %v4879_v32 }
 0x200   : > { %6532 = vst [vmem:[#allocation99_spill] sm:$0xff] %v5092_v61  ;;  %6533 = vst [vmem:[#allocation100_spill] sm:$0xff] %v5095_v60  ;;  %v5112_v61 = vrot.slane %v504_v57, %v4887_v0  ;;  %v1073_v60 = vpop.permute.xlu1 %1072  ;;  %v5131_v57 = vrot.slane %v1708_v63, %v4883_v35  ;;  %1152 = vrot.lane.b32.xlu1 %v4562_v29, %s4331_s1  ;;  %p4244_p7 = pnand %p4243_p3, %p6751_p11 }
 0x201   : > { %6534 = vst [vmem:[#allocation101_spill] sm:$0xff] %v5098_v14  ;;  %6535 = vst [vmem:[#allocation102_spill] sm:$0xff] %v5106_v19  ;;  %v5115_v14 = vrot.slane %v2441_v1, %v4883_v35  ;;  %v987_v19 = vpop.permute.xlu0 %986  ;;  %v5137_v1 = vrot.slane %v1624_v2, %v4879_v32  ;;  %1158 = vrot.lane.b32.xlu0 %v4555_v25, %s4331_s1  ;;  %v5158_v32 = vrot.slane %v1624_v2, %v4883_v35 }
 0x202   : > { %6536 = vst [vmem:[#allocation103_spill] sm:$0xff] %v5109_v9  ;;  %6537 = vst [vmem:[#allocation104_spill] sm:$0xff] %v5112_v61  ;;  %v1088_v9 = vsel %vm1082_vm1, %v4701_v44, %v1073_v60  ;;  %p4245_p9 = pneg %p4244_p7 }
 0x203   : > { %6538 = vst [vmem:[#allocation105_spill] sm:$0xff] %v5115_v14  ;;  %6539 = vst [vmem:[#allocation106_spill] sm:$0xff] %v5118_v62  ;;  %v5134_v14 = vrot.slane %v1708_v63, %v4887_v0  ;;  %v1085_v62 = vsel %vm1082_vm1, %v1071_v11, %v4695_v43  ;;  %v1119_v61 = vmul.f32 %v4898_v20, %v1088_v9 }
 0x204   : > { %6540 = vst [vmem:[#allocation107_spill] sm:$0xff] %v5121_v59  ;;  %6541 = vst [vmem:[#allocation108_spill] sm:$0xff] %v5124_v3  ;;  %v1115_v3 = vmul.f32 %v4898_v20, %v1087_v56  ;;  %v1086_v59 = vsel %vm1082_vm1, %v1073_v60, %v4709_v46  ;;  %v1089_v63 = vsel %vm1082_vm1, %v1079_v58, %v4693_v42  ;;  %1156 = vrot.lane.b32.xlu1 %v4684_v39, %s4331_s1 }
 0x205   : > { %6542 = vst [vmem:[#allocation109_spill] sm:$0xff] %v5131_v57  ;;  %6543 = vst [vmem:[#allocation110_spill] sm:$0xff] %v5134_v14  ;;  %v5155_v11 = vrot.slane %v1624_v2, %v4881_v34  ;;  %v5161_v60 = vrot.slane %v1624_v2, %v4887_v0  ;;  %v5164_v20 = vmul.f32 %v4904_v27, %v1087_v56  ;;  %v1081_v14 = vpop.permute.xlu1 %1080  ;;  %1162 = vrot.lane.b32.xlu0 %v4678_v37, %s4331_s1 }
 0x206   : > { %6544 = vst [vmem:[#allocation111_spill] sm:$0xff] %v5137_v1  ;;  %6545 = vst [vmem:[#allocation112_spill] sm:$0xff] %v5158_v32  ;;  %v1083_v1 = vsel %vm1082_vm1, %v4695_v43, %v1079_v58  ;;  %v5170_v42 = vmul.f32 %v4904_v27, %v1088_v9  ;;  %v4012_v57 = vpack.c.bf16 %v1119_v61, %v1115_v3  ;;  %v995_v32 = vpop.permute.xlu0 %994 }
 0x207   : > { %6546 = vst [vmem:[#allocation113_spill] sm:$0xff] %v5161_v60  ;;  %6547 = vst [vmem:[#allocation114_spill] sm:$0xff] %v5164_v20  ;;  %v1116_v34 = vmul.f32 %v4901_v38, %v1085_v62  ;;  %v5174_v35 = vmul.f32 %v4909_v18, %v1086_v59  ;;  %v1084_v56 = vsel %vm1082_vm1, %v4709_v46, %v1081_v14  ;;  %v6631_v60 = vld [vmem:[#allocation100_spill] sm:$0xff] }
 0x208   : > { %6548 = vst [vmem:[#allocation115_spill] sm:$0xff] %v5170_v42  ;;  %v1090_v2 = vsel %vm1082_vm1, %v1081_v14, %v4701_v44  ;;  %v1114_v43 = vmul.f32 %v4912_v17, %v1089_v63  ;;  %v1003_v3 = vsel %vm998_vm2, %v4703_v45, %v987_v19  ;;  %v5192_v46 = vmul.f32 %v4909_v18, %v1085_v62 }
 0x209   : > { %6549 = vst [vmem:[#allocation116_spill] sm:$0xff] %v5174_v35  ;;  %v1118_v9 = vmul.f32 %v4912_v17, %v1090_v2  ;;  %v1117_v61 = vmul.f32 %v4915_v23, %v1083_v1  ;;  %v1001_v44 = vsel %vm998_vm2, %v987_v19, %v4711_v47  ;;  %v1120_v14 = vmul.f32 %v4901_v38, %v1086_v59  ;;  %v989_v18 = vpop.permute.xlu1 %988 }
 0x20a   : > { %6550 = vst [vmem:[#allocation117_spill] sm:$0xff] %v5192_v46  ;;  %v5202_v58 = vmul.f32 %v4918_v24, %v1083_v1  ;;  %v1121_v17 = vmul.f32 %v4915_v23, %v1084_v56  ;;  %v5206_v62 = vmul.f32 %v4918_v24, %v1084_v56  ;;  %2170 = vmatprep.subr.bf16.mxu0 %v4012_v57  ;;  %v903_v59 = vpop.permute.xlu0 %902  ;;  %v4175_v56 = vld [vmem:[%s6273_s4 + $0x4] ss:$16 sps:$4 sm:$0xff]   ;;  %vm3254_vm1 = vcmask 392192  }
 0x20b   : > { %v4011_v27 = vpack.c.bf16 %v1118_v9, %v1114_v43  ;;  %v5209_v20 = vmul.f32 %v4923_v16, %v1089_v63  ;;  %v1031_v19 = vmul.f32 %v4926_v21, %v1003_v3  ;;  %v1004_v38 = vsel %vm998_vm2, %v4717_v48, %v989_v18  ;;  %1160 = vrot.lane.b32.xlu1 %v4569_v31, %s4331_s1 }
 0x20c   : > { %6551 = vst [vmem:[#allocation118_spill] sm:$0xff] %v5202_v58  ;;  %6552 = vst [vmem:[#allocation119_spill] sm:$0xff] %v5206_v62  ;;  %v5218_v23 = vmul.f32 %v4929_v13, %v1001_v44  ;;  %v5221_v24 = vmul.f32 %v4932_v36, %v1003_v3  ;;  %v1035_v63 = vmul.f32 %v4926_v21, %v1004_v38  ;;  %2356 = vrot.lane.b32.xlu0 %v4549_v22, %s4332_s21  ;;  %v6576_v62 = vld [vmem:[#allocation24_spill] sm:$0xff] }
 0x20d   : > { %v5232_v43 = vmul.f32 %v4937_v15, %v1001_v44  ;;  %v4013_v9 = vpack.c.bf16 %v1120_v14, %v1116_v34  ;;  %v999_v3 = vsel %vm998_vm2, %v4711_v47, %v995_v32  ;;  %v1005_v57 = vsel %vm998_vm2, %v995_v32, %v4703_v45  ;;  %2171 = vmatpush1.bf16.msra.mxu0 %v4011_v27  ;;  %v997_v14 = vpop.permute.xlu1 %996 }
 0x20e   : > { %6553 = vst [vmem:[#allocation120_spill] sm:$0xff] %v5221_v24  ;;  %v919_v21 = vsel %vm914_vm3, %v4719_v49, %v903_v59  ;;  %v1002_v34 = vsel %vm998_vm2, %v989_v18, %v4725_v50  ;;  %v5249_v44 = vmul.f32 %v4932_v36, %v1004_v38  ;;  %v4014_v47 = vpack.c.bf16 %v1121_v17, %v1117_v61  ;;  %v911_v32 = vpop.permute.xlu0 %910 }
 0x20f   : > { %6554 = vst [vmem:[#allocation121_spill] sm:$0xff] %v5232_v43  ;;  %v917_v45 = vsel %vm914_vm3, %v903_v59, %v4727_v51  ;;  %v1000_v1 = vsel %vm998_vm2, %v4725_v50, %v997_v14  ;;  %v5260_v58 = vsel %vm998_vm2, %v997_v14, %v4717_v48  ;;  %v4008_v18 = vpack.c.bf16 %v1035_v63, %v1031_v19 }
 0x210   : > { %6555 = vst [vmem:[#allocation122_spill] sm:$0xff] %v5249_v44  ;;  %2202 = vmatprep.mubr.bf16.mxu0 %v4175_v56  ;;  %v1030_v36 = vmul.f32 %v4940_v12, %v1005_v57  ;;  %v1033_v27 = vmul.f32 %v4943_v40, %v999_v3  ;;  %v5265_v61 = vmul.f32 %v4946_v10, %v999_v3  ;;  %v6575_v44 = vld [vmem:[#allocation23_spill] sm:$0xff]  ;;  %vm2372_vm2 = vcmp.lt.s32.totalorder %v4895_v26, 119 }
 0x211   : > { %2213 = vmatprep.subr.bf16.mxu1 %v4014_v47  ;;  %v5270_v50 = vmul.f32 %v4952_v8, %v1005_v57  ;;  %v5273_v59 = vmul.f32 %v4923_v16, %v1090_v2  ;;  %v5276_v48 = vmul.f32 %v4955_v7, %v919_v21  ;;  %v1036_v19 = vmul.f32 %v4929_v13, %v1002_v34  ;;  %v905_v16 = vpop.permute.xlu1 %904 }
 0x212   : > { %6556 = vst [vmem:[#allocation123_spill] sm:$0xff] %v5265_v61  ;;  %2214 = vmatpush1.bf16.msra.mxu1 %v4013_v9  ;;  %v5280_v38 = vmul.f32 %v4958_v5, %v917_v45  ;;  %v921_v63 = vsel %vm914_vm3, %v911_v32, %v4719_v49  ;;  %v1034_v57 = vmul.f32 %v4940_v12, %v5260_v58  ;;  %v819_v49 = vpop.permute.xlu0 %818 }
 0x213   : > { %6557 = vst [vmem:[#allocation124_spill] sm:$0xff] %v5270_v50  ;;  %v5288_v3 = vmul.f32 %v4946_v10, %v1000_v1  ;;  %2360 = vrot.lane.b32.xlu0 %v4669_v33, %s4332_s21  ;;  %v5293_v13 = vmul.f32 %v4961_v28, %v919_v21  ;;  %v1037_v2 = vmul.f32 %v4943_v40, %v1000_v1  ;;  %v6568_v40 = vld [vmem:[#allocation67_spill] sm:$0xff] }
 0x214   : > { %1164 = vrot.lane.b32.xlu1 %v4691_v41, %s4331_s1  ;;  %2172 = vmatprep.subr.bf16.mxu0 %v4008_v18  ;;  %v920_v10 = vsel %vm914_vm3, %v4733_v52, %v905_v16  ;;  %v5303_v12 = vmul.f32 %v4966_v4, %v917_v45  ;;  %v5306_v9 = vmul.f32 %v4937_v15, %v1002_v34 }
 0x215   : > { %6558 = vst [vmem:[#allocation125_spill] sm:$0xff] %v5288_v3  ;;  %6559 = vst [vmem:[#allocation126_spill] sm:$0xff] %v5293_v13  ;;  %v4007_v21 = vpack.c.bf16 %v1034_v57, %v1030_v36  ;;  %2245 = vmatprep.mubr.bf16.mxu1 %v4175_v56  ;;  %v4009_v1 = vpack.c.bf16 %v1036_v19, %v5218_v23  ;;  %v915_v47 = vsel %vm914_vm3, %v4727_v51, %v911_v32  ;;  %v913_v51 = vpop.permute.xlu1 %912  ;;  %v6562_v19 = vld [vmem:[#allocation63_spill] sm:$0xff]  ;;  %v6574_v3 = vld [vmem:[#allocation70_spill] sm:$0xff] }
 0x216   : > { %6560 = vst [vmem:[#allocation127_spill] sm:$0xff] %v5306_v9  ;;  %v946_v14 = vmul.f32 %v4969_v6, %v921_v63  ;;  %v918_v45 = vsel %vm914_vm3, %v905_v16, %v4741_v54  ;;  %v833_v15 = vsel %vm830_vm4, %v819_v49, %v4743_v55  ;;  %v835_v56 = vsel %vm830_vm4, %v4735_v53, %v819_v49  ;;  %v827_v18 = vpop.permute.xlu0 %826  ;;  %v6564_v16 = vld [vmem:[#allocation64_spill] sm:$0xff] }
 0x217   : > { %v951_v23 = vmul.f32 %v4955_v7, %v920_v10  ;;  %v5326_v34 = vmul.f32 %v4961_v28, %v920_v10  ;;  %2364 = vrot.lane.b32.xlu0 %v4555_v25, %s4332_s21  ;;  %2173 = vmatpush1.bf16.msra.mxu0 %v4007_v21  ;;  %v4010_v32 = vpack.c.bf16 %v1037_v2, %v1033_v27  ;;  %v6566_v2 = vld [vmem:[#allocation65_spill] sm:$0xff]  ;;  %v6567_v21 = vld [vmem:[#allocation66_spill] sm:$0xff]  ;;  %v6593_v13 = vld [vmem:[#allocation28_spill] sm:$0xff] }
 0x218   : > { %2358 = vrot.lane.b32.xlu1 %v4562_v29, %s4332_s21  ;;  %v916_v36 = vsel %vm914_vm3, %v4741_v54, %v913_v51  ;;  %v922_v7 = vsel %vm914_vm3, %v913_v51, %v4733_v52  ;;  %v949_v28 = vmul.f32 %v4972_v30, %v915_v47  ;;  %v5340_v57 = vmul.f32 %v6562_v19, %v915_v47 }
 0x219   : > { %6561 = vst [vmem:[#allocation128_spill] sm:$0xff] %v5326_v34  ;;  %v5343_v49 = vmul.f32 %v6564_v16, %v921_v63  ;;  %v5348_v10 = vmul.f32 %v6566_v2, %v835_v56  ;;  %v5351_v54 = vmul.f32 %v6567_v21, %v833_v15  ;;  %v5354_v17 = vmul.f32 %v6568_v40, %v835_v56  ;;  %v821_v61 = vpop.permute.xlu1 %820 }
 0x21a   : > { %6563 = vst [vmem:[#allocation63_spill] sm:$0xff] %v5340_v57  ;;  %v952_v52 = vmul.f32 %v4958_v5, %v918_v45  ;;  %2215 = vmatprep.subr.bf16.mxu1 %v4010_v32  ;;  %v831_v63 = vsel %vm830_vm4, %v4743_v55, %v827_v18  ;;  %v837_v47 = vsel %vm830_vm4, %v827_v18, %v4735_v53  ;;  %v735_v5 = vpop.permute.xlu0 %734  ;;  %v6571_v53 = vld [vmem:[#allocation21_spill] sm:$0xff]  ;;  %v6585_v57 = vld [vmem:[#allocation76_spill] sm:$0xff]  ;;  %vm2288_vm3 = vcmp.lt.s32.totalorder %v4895_v26, 120 }
 0x21b   : > { %6565 = vst [vmem:[#allocation64_spill] sm:$0xff] %v5343_v49  ;;  %6569 = vst [vmem:[#allocation65_spill] sm:$0xff] %v5354_v17  ;;  %2216 = vmatpush1.bf16.msra.mxu1 %v4009_v1  ;;  %v950_v51 = vmul.f32 %v4969_v6, %v922_v7  ;;  %v5365_v27 = vmul.f32 %v6562_v19, %v916_v36  ;;  %v953_v56 = vmul.f32 %v4972_v30, %v916_v36  ;;  %v6572_v1 = vld [vmem:[#allocation68_spill] sm:$0xff]  ;;  %v6591_v17 = vld [vmem:[#allocation79_spill] sm:$0xff] }
 0x21c   : > { %2368 = vrot.lane.b32.xlu0 %v4678_v37, %s4332_s21  ;;  %2362 = vrot.lane.b32.xlu1 %v4684_v39, %s4332_s21  ;;  %v4004_v55 = vpack.c.bf16 %v951_v23, %v5276_v48  ;;  %v836_v6 = vsel %vm830_vm4, %v6571_v53, %v821_v61  ;;  %v5378_v32 = vmul.f32 %v6572_v1, %v833_v15  ;;  %v6573_v48 = vld [vmem:[#allocation69_spill] sm:$0xff] }
 0x21d   : > { %6570 = vst [vmem:[#allocation66_spill] sm:$0xff] %v5365_v27  ;;  %v5381_v30 = vmul.f32 %v4966_v4, %v918_v45  ;;  %v4003_v18 = vpack.c.bf16 %v950_v51, %v946_v14  ;;  %v4005_v19 = vpack.c.bf16 %v952_v52, %v5280_v38  ;;  %v862_v23 = vmul.f32 %v6573_v48, %v837_v47  ;;  %v6577_v14 = vld [vmem:[#allocation22_spill] sm:$0xff]  ;;  %v829_v51 = vpop.permute.xlu1 %828  ;;  %v6592_v27 = vld [vmem:[#allocation27_spill] sm:$0xff] }
 0x21e   : > { %v5388_v24 = vmul.f32 %v6574_v3, %v831_v63  ;;  %2174 = vmatprep.subr.bf16.mxu0 %v4004_v55  ;;  %v834_v15 = vsel %vm830_vm4, %v821_v61, %v6575_v44  ;;  %v749_v4 = vsel %vm746_vm5, %v735_v5, %v6576_v62  ;;  %v751_v45 = vsel %vm746_vm5, %v6577_v14, %v735_v5  ;;  %v743_v55 = vpop.permute.xlu0 %742 }
 0x21f   : > { %v867_v38 = vmul.f32 %v6566_v2, %v836_v6  ;;  %v5401_v52 = vmul.f32 %v6568_v40, %v836_v6  ;;  %2175 = vmatpush1.bf16.msra.mxu0 %v4003_v18  ;;  %v4006_v61 = vpack.c.bf16 %v953_v56, %v949_v28  ;;  %v832_v5 = vsel %vm830_vm4, %v6575_v44, %v829_v51  ;;  %v6579_v2 = vld [vmem:[#allocation71_spill] sm:$0xff]  ;;  %v6581_v18 = vld [vmem:[#allocation73_spill] sm:$0xff]  ;;  %v6583_v56 = vld [vmem:[#allocation74_spill] sm:$0xff] }
 0x220   : > { %2272 = vrot.lane.b32.xlu0 %v4549_v22, %s4333_s14  ;;  %2366 = vrot.lane.b32.xlu1 %v4569_v31, %s4332_s21  ;;  %v838_v40 = vsel %vm830_vm4, %v829_v51, %v6571_v53  ;;  %v5414_v6 = vmul.f32 %v6579_v2, %v831_v63  ;;  %v5417_v36 = vmul.f32 %v6581_v18, %v837_v47  ;;  %v6584_v44 = vld [vmem:[#allocation75_spill] sm:$0xff]  ;;  %v6625_v22 = vld [vmem:[#allocation36_spill] sm:$0xff] }
 0x221   : > { %6578 = vst [vmem:[#allocation67_spill] sm:$0xff] %v5401_v52  ;;  %v5420_v42 = vmul.f32 %v6564_v16, %v922_v7  ;;  %v5425_v46 = vmul.f32 %v6583_v56, %v751_v45  ;;  %v5428_v35 = vmul.f32 %v6584_v44, %v749_v4  ;;  %v5431_v53 = vmul.f32 %v6585_v57, %v751_v45  ;;  %v737_v28 = vpop.permute.xlu1 %736 }
 0x222   : > { %6580 = vst [vmem:[#allocation21_spill] sm:$0xff] %v5414_v6  ;;  %v868_v63 = vmul.f32 %v6567_v21, %v834_v15  ;;  %2217 = vmatprep.subr.bf16.mxu1 %v4006_v61  ;;  %v747_v7 = vsel %vm746_vm5, %v6576_v62, %v743_v55  ;;  %v753_v16 = vsel %vm746_vm5, %v743_v55, %v6577_v14  ;;  %v651_v21 = vpop.permute.xlu0 %650  ;;  %v6589_v14 = vld [vmem:[#allocation77_spill] sm:$0xff] }
 0x223   : > { %6582 = vst [vmem:[#allocation68_spill] sm:$0xff] %v5420_v42  ;;  %6586 = vst [vmem:[#allocation69_spill] sm:$0xff] %v5431_v53  ;;  %2218 = vmatpush1.bf16.msra.mxu1 %v4005_v19  ;;  %v866_v47 = vmul.f32 %v6573_v48, %v838_v40  ;;  %v5442_v51 = vmul.f32 %v6579_v2, %v832_v5  ;;  %v869_v45 = vmul.f32 %v6574_v3, %v832_v5  ;;  %v6588_v19 = vld [vmem:[#allocation25_spill] sm:$0xff]  ;;  %v6637_v42 = vld [vmem:[#allocation104_spill] sm:$0xff] }
 0x224   : > { %2276 = vrot.lane.b32.xlu0 %v4669_v33, %s4333_s14  ;;  %2370 = vrot.lane.b32.xlu1 %v4691_v41, %s4332_s21  ;;  %v4000_v62 = vpack.c.bf16 %v867_v38, %v5348_v10  ;;  %v752_v48 = vsel %vm746_vm5, %v6588_v19, %v737_v28  ;;  %v5455_v61 = vmul.f32 %v6589_v14, %v749_v4  ;;  %v6590_v10 = vld [vmem:[#allocation78_spill] sm:$0xff] }
 0x225   : > { %6587 = vst [vmem:[#allocation70_spill] sm:$0xff] %v5442_v51  ;;  %v5458_v3 = vmul.f32 %v6572_v1, %v834_v15  ;;  %v3999_v55 = vpack.c.bf16 %v866_v47, %v862_v23  ;;  %v4001_v2 = vpack.c.bf16 %v868_v63, %v5351_v54  ;;  %v778_v38 = vmul.f32 %v6590_v10, %v753_v16  ;;  %v6594_v23 = vld [vmem:[#allocation26_spill] sm:$0xff]  ;;  %v745_v47 = vpop.permute.xlu1 %744 }
 0x226   : > { %v5465_v52 = vmul.f32 %v6591_v17, %v747_v7  ;;  %2176 = vmatprep.subr.bf16.mxu0 %v4000_v62  ;;  %v750_v4 = vsel %vm746_vm5, %v737_v28, %v6592_v27  ;;  %v665_v1 = vsel %vm662_vm6, %v651_v21, %v6593_v13  ;;  %v667_v15 = vsel %vm662_vm6, %v6594_v23, %v651_v21  ;;  %v659_v62 = vpop.permute.xlu0 %658 }
 0x227   : > { %v783_v54 = vmul.f32 %v6583_v56, %v752_v48  ;;  %v5478_v63 = vmul.f32 %v6585_v57, %v752_v48  ;;  %2177 = vmatpush1.bf16.msra.mxu0 %v3999_v55  ;;  %v4002_v28 = vpack.c.bf16 %v869_v45, %v5388_v24  ;;  %v748_v21 = vsel %vm746_vm5, %v6592_v27, %v745_v47  ;;  %v6596_v56 = vld [vmem:[#allocation80_spill] sm:$0xff]  ;;  %v6598_v55 = vld [vmem:[#allocation81_spill] sm:$0xff]  ;;  %v6599_v45 = vld [vmem:[#allocation82_spill] sm:$0xff] }
 0x228   : > { %2280 = vrot.lane.b32.xlu0 %v4555_v25, %s4333_s14  ;;  %2274 = vrot.lane.b32.xlu1 %v4562_v29, %s4333_s14  ;;  %v754_v57 = vsel %vm746_vm5, %v745_v47, %v6588_v19  ;;  %v5492_v48 = vmul.f32 %v6596_v56, %v747_v7  ;;  %v5495_v5 = vmul.f32 %v6598_v55, %v753_v16  ;;  %v6600_v27 = vld [vmem:[#allocation83_spill] sm:$0xff]  ;;  %v6601_v25 = vld [vmem:[#allocation84_spill] sm:$0xff] }
 0x229   : > { %6595 = vst [vmem:[#allocation23_spill] sm:$0xff] %v5478_v63  ;;  %v5498_v6 = vmul.f32 %v6581_v18, %v838_v40  ;;  %v5503_v51 = vmul.f32 %v6599_v45, %v667_v15  ;;  %v5506_v34 = vmul.f32 %v6600_v27, %v665_v1  ;;  %v5509_v19 = vmul.f32 %v6601_v25, %v667_v15  ;;  %v653_v24 = vpop.permute.xlu1 %652  ;;  %v6607_v63 = vld [vmem:[#allocation87_spill] sm:$0xff] }
 0x22a   : > { %6597 = vst [vmem:[#allocation24_spill] sm:$0xff] %v5492_v48  ;;  %v784_v7 = vmul.f32 %v6584_v44, %v750_v4  ;;  %2219 = vmatprep.subr.bf16.mxu1 %v4002_v28  ;;  %v663_v40 = vsel %vm662_vm6, %v6593_v13, %v659_v62  ;;  %v669_v18 = vsel %vm662_vm6, %v659_v62, %v6594_v23  ;;  %v567_v44 = vpop.permute.xlu0 %566  ;;  %v6605_v23 = vld [vmem:[#allocation85_spill] sm:$0xff]  ;;  %v6624_v29 = vld [vmem:[#allocation35_spill] sm:$0xff] }
 0x22b   : > { %6602 = vst [vmem:[#allocation22_spill] sm:$0xff] %v5509_v19  ;;  %2220 = vmatpush1.bf16.msra.mxu1 %v4001_v2  ;;  %v782_v16 = vmul.f32 %v6590_v10, %v754_v57  ;;  %v5520_v47 = vmul.f32 %v6596_v56, %v748_v21  ;;  %v785_v15 = vmul.f32 %v6591_v17, %v748_v21  ;;  %v6604_v2 = vld [vmem:[#allocation29_spill] sm:$0xff]  ;;  %v6606_v56 = vld [vmem:[#allocation86_spill] sm:$0xff] }
 0x22c   : > { %2284 = vrot.lane.b32.xlu0 %v4678_v37, %s4333_s14  ;;  %2278 = vrot.lane.b32.xlu1 %v4684_v39, %s4333_s14  ;;  %v3996_v13 = vpack.c.bf16 %v783_v54, %v5425_v46  ;;  %v668_v10 = vsel %vm662_vm6, %v6604_v2, %v653_v24  ;;  %v5533_v28 = vmul.f32 %v6605_v23, %v665_v1  ;;  %v3368_v46 = vld [vmem:[%s6274_s5] sm:$0xff]  ;;  %v6608_v1 = vld [vmem:[#allocation31_spill] sm:$0xff] }
 0x22d   : > { %6603 = vst [vmem:[#allocation71_spill] sm:$0xff] %v5520_v47  ;;  %v5536_v17 = vmul.f32 %v6589_v14, %v750_v4  ;;  %v3995_v62 = vpack.c.bf16 %v782_v16, %v778_v38  ;;  %v3997_v54 = vpack.c.bf16 %v784_v7, %v5428_v35  ;;  %v694_v53 = vmul.f32 %v6606_v56, %v669_v18  ;;  %v6609_v38 = vld [vmem:[#allocation32_spill] sm:$0xff]  ;;  %v6610_v16 = vld [vmem:[#allocation30_spill] sm:$0xff]  ;;  %v661_v48 = vpop.permute.xlu1 %660 }
 0x22e   : > { %v5546_v0 = vmul.f32 %v6607_v63, %v663_v40  ;;  %2178 = vmatprep.subr.bf16.mxu0 %v3996_v13  ;;  %v666_v14 = vsel %vm662_vm6, %v653_v24, %v6608_v1  ;;  %v581_v4 = vsel %vm578_vm7, %v567_v44, %v6609_v38  ;;  %v583_v21 = vsel %vm578_vm7, %v6610_v16, %v567_v44  ;;  %v575_v13 = vpop.permute.xlu0 %574  ;;  %v6612_v44 = vld [vmem:[#allocation88_spill] sm:$0xff] }
 0x22f   : > { %v699_v35 = vmul.f32 %v6599_v45, %v668_v10  ;;  %v5559_v7 = vmul.f32 %v6601_v25, %v668_v10  ;;  %2179 = vmatpush1.bf16.msra.mxu0 %v3995_v62  ;;  %v3998_v24 = vpack.c.bf16 %v785_v15, %v5465_v52  ;;  %v664_v47 = vsel %vm662_vm6, %v6608_v1, %v661_v48  ;;  %v6614_v10 = vld [vmem:[#allocation90_spill] sm:$0xff]  ;;  %v6615_v1 = vld [vmem:[#allocation91_spill] sm:$0xff] }
 0x230   : > { %3372 = vperm.xlu0 %4170, %v3368_v46   ;;  %2282 = vrot.lane.b32.xlu1 %v4569_v31, %s4333_s14  ;;  %v670_v45 = vsel %vm662_vm6, %v661_v48, %v6604_v2  ;;  %v5571_v25 = vmul.f32 %v6612_v44, %v663_v40  ;;  %v5574_v62 = vmul.f32 %v6614_v10, %v669_v18  ;;  %v3402_v15 = vld [vmem:[%s6276_s7] sm:$0xff]  ;;  %v6616_v48 = vld [vmem:[#allocation92_spill] sm:$0xff]  ;;  %v6617_v40 = vld [vmem:[#allocation93_spill] sm:$0xff] }
 0x231   : > { %6611 = vst [vmem:[#allocation73_spill] sm:$0xff] %v5559_v7  ;;  %v5577_v46 = vmul.f32 %v6598_v55, %v754_v57  ;;  %v5585_v31 = vmul.f32 %v6615_v1, %v583_v21  ;;  %v5588_v2 = vmul.f32 %v6616_v48, %v581_v4  ;;  %v5591_v37 = vmul.f32 %v6617_v40, %v583_v21  ;;  %v569_v7 = vpop.permute.xlu1 %568 }
 0x232   : > { %6613 = vst [vmem:[#allocation74_spill] sm:$0xff] %v5571_v25  ;;  %v700_v18 = vmul.f32 %v6600_v27, %v666_v14  ;;  %2221 = vmatprep.subr.bf16.mxu1 %v3998_v24  ;;  %v579_v57 = vsel %vm578_vm7, %v6609_v38, %v575_v13  ;;  %v585_v55 = vsel %vm578_vm7, %v575_v13, %v6610_v16  ;;  %v6620_v38 = vld [vmem:[#allocation33_spill] sm:$0xff] }
 0x233   : > { %6618 = vst [vmem:[#allocation75_spill] sm:$0xff] %v5591_v37  ;;  %2222 = vmatpush1.bf16.msra.mxu1 %v3997_v54  ;;  %v698_v52 = vmul.f32 %v6606_v56, %v670_v45  ;;  %v5602_v19 = vmul.f32 %v6612_v44, %v664_v47  ;;  %v701_v21 = vmul.f32 %v6607_v63, %v664_v47  ;;  %v482_v54 = vpop.permute.xlu0 %481  ;;  %v6621_v56 = vld [vmem:[#allocation94_spill] sm:$0xff] }
 0x234   : > { %3406 = vperm.xlu0 %4170, %v3402_v15   ;;  %2286 = vrot.lane.b32.xlu1 %v4691_v41, %s4333_s14  ;;  %v3992_v27 = vpack.c.bf16 %v699_v35, %v5503_v51  ;;  %v584_v16 = vsel %vm578_vm7, %v6620_v38, %v569_v7  ;;  %v5613_v24 = vmul.f32 %v6621_v56, %v581_v4  ;;  %v6622_v35 = vld [vmem:[#allocation95_spill] sm:$0xff]  ;;  %v6623_v15 = vld [vmem:[#allocation96_spill] sm:$0xff] }
 0x235   : > { %6619 = vst [vmem:[#allocation76_spill] sm:$0xff] %v5602_v19  ;;  %v5616_v13 = vmul.f32 %v6605_v23, %v666_v14  ;;  %v3991_v63 = vpack.c.bf16 %v698_v52, %v694_v53  ;;  %v3993_v51 = vpack.c.bf16 %v700_v18, %v5506_v34  ;;  %v610_v44 = vmul.f32 %v6622_v35, %v585_v55  ;;  %v6626_v23 = vld [vmem:[#allocation34_spill] sm:$0xff]  ;;  %v577_v18 = vpop.permute.xlu1 %576 }
 0x236   : > { %v613_v41 = vmul.f32 %v6623_v15, %v579_v57  ;;  %2180 = vmatprep.subr.bf16.mxu0 %v3992_v27  ;;  %v582_v4 = vsel %vm578_vm7, %v569_v7, %v6624_v29  ;;  %v498_v53 = vsel %vm495_vm8, %v482_v54, %v6625_v22  ;;  %v500_v14 = vsel %vm495_vm8, %v6626_v23, %v482_v54 }
 0x237   : > { %v615_v52 = vmul.f32 %v6615_v1, %v584_v16  ;;  %v5635_v34 = vmul.f32 %v6617_v40, %v584_v16  ;;  %2181 = vmatpush1.bf16.msra.mxu0 %v3991_v63  ;;  %v3994_v27 = vpack.c.bf16 %v701_v21, %v5546_v0  ;;  %v490_v47 = vpop.permute.xlu0 %489  ;;  %v580_v7 = vsel %vm578_vm7, %v6624_v29, %v577_v18  ;;  %v6628_v1 = vld [vmem:[#allocation97_spill] sm:$0xff]  ;;  %v6629_v40 = vld [vmem:[#allocation98_spill] sm:$0xff]  ;;  %v6630_v29 = vld [vmem:[#allocation99_spill] sm:$0xff] }
 0x238   : > { %v586_v25 = vsel %vm578_vm7, %v577_v18, %v6620_v38  ;;  %v5647_v19 = vmul.f32 %v6628_v1, %v579_v57  ;;  %v5650_v16 = vmul.f32 %v6629_v40, %v585_v55  ;;  %v5653_v0 = vmul.f32 %v6614_v10, %v670_v45  ;;  %v6632_v38 = vld [vmem:[#allocation101_spill] sm:$0xff] }
 0x239   : > { %6627 = vst [vmem:[#allocation25_spill] sm:$0xff] %v5635_v34  ;;  %v527_v63 = vmul.f32 %v6630_v29, %v500_v14  ;;  %v5659_v39 = vmul.f32 %v6631_v60, %v498_v53  ;;  %v5662_v18 = vmul.f32 %v6632_v38, %v500_v14  ;;  %v616_v57 = vmul.f32 %v6616_v48, %v582_v4  ;;  %v484_v54 = vpop.permute.xlu1 %483  ;;  %v6636_v34 = vld [vmem:[#allocation39_spill] sm:$0xff] }
 0x23a   : > { %2223 = vmatprep.subr.bf16.mxu1 %v3994_v27  ;;  %v5668_v45 = vsel %vm495_vm8, %v490_v47, %v6626_v23  ;;  %v614_v10 = vmul.f32 %v6622_v35, %v586_v25  ;;  %v617_v55 = vmul.f32 %v6623_v15, %v580_v7  ;;  %v5673_v21 = vmul.f32 %v6628_v1, %v580_v7  ;;  %v6633_v27 = vld [vmem:[#allocation37_spill] sm:$0xff]  ;;  %v3369_v15 = vld [vmem:[%s6274_s5 + $0x8] sm:$0xff]  ;;  %v6634_v7 = vld [vmem:[#allocation102_spill] sm:$0xff] }
 0x23b   : > { %2224 = vmatpush1.bf16.msra.mxu1 %v3993_v51  ;;  %v496_v14 = vsel %vm495_vm8, %v6625_v22, %v490_v47  ;;  %v3988_v48 = vpack.c.bf16 %v615_v52, %v5585_v31  ;;  %v1687_v51 = vpop.permute.xlu0 %1686  ;;  %v501_v23 = vsel %vm495_vm8, %v6633_v27, %v484_v54  ;;  %v5688_v1 = vmul.f32 %v6634_v7, %v498_v53  ;;  %v6635_v52 = vld [vmem:[#allocation103_spill] sm:$0xff] }
 0x23c   : > { %v5691_v37 = vmul.f32 %v6621_v56, %v582_v4  ;;  %v3987_v22 = vpack.c.bf16 %v614_v10, %v610_v44  ;;  %3377 = vperm.xlu1 %4171, %v3369_v15   ;;  %v3989_v47 = vpack.c.bf16 %v616_v57, %v5588_v2  ;;  %v526_v35 = vmul.f32 %v6635_v52, %v5668_v45  ;;  %v6638_v57 = vld [vmem:[#allocation38_spill] sm:$0xff] }
 0x23d   : > { %2182 = vmatprep.subr.bf16.mxu0 %v3988_v48  ;;  %v499_v49 = vsel %vm495_vm8, %v484_v54, %v6636_v34  ;;  %v531_v53 = vmul.f32 %v6630_v29, %v501_v23  ;;  %v529_v56 = vmul.f32 %v6637_v42, %v496_v14  ;;  %v5704_v44 = vmul.f32 %v6632_v38, %v501_v23  ;;  %v492_v10 = vpop.permute.xlu1 %491 }
 0x23e   : > { %2183 = vmatpush1.bf16.msra.mxu0 %v3987_v22  ;;  %v3990_v4 = vpack.c.bf16 %v617_v55, %v613_v41  ;;  %v1703_v48 = vsel %vm1698_vm9, %v6638_v57, %v1687_v51  ;;  %v497_v29 = vsel %vm495_vm8, %v6636_v34, %v492_v10  ;;  %v503_v38 = vsel %vm495_vm8, %v492_v10, %v6633_v27  ;;  %v6639_v55 = vld [vmem:[#allocation105_spill] sm:$0xff]  ;;  %v3403_v34 = vld [vmem:[%s6276_s7 + $0x8] sm:$0xff]  ;;  %v6641_v27 = vld [vmem:[#allocation40_spill] sm:$0xff] }
 0x23f   : > { %v1695_v54 = vpop.permute.xlu0 %1694  ;;  %v3984_v41 = vpack.c.bf16 %v531_v53, %v527_v63  ;;  %v5719_v23 = vmul.f32 %v6639_v55, %v496_v14  ;;  %v532_v15 = vmul.f32 %v6631_v60, %v499_v49  ;;  %v530_v31 = vmul.f32 %v6635_v52, %v503_v38  ;;  %v6642_v53 = vld [vmem:[#allocation107_spill] sm:$0xff] }
 0x240   : > { %2225 = vmatprep.subr.bf16.mxu1 %v3990_v4  ;;  %v5729_v2 = vmul.f32 %v6629_v40, %v586_v25  ;;  %v1701_v63 = vsel %vm1698_vm9, %v1687_v51, %v6641_v27  ;;  %v533_v60 = vmul.f32 %v6637_v42, %v497_v29  ;;  %v5736_v14 = vmul.f32 %v6639_v55, %v497_v29  ;;  %v6644_v29 = vld [vmem:[#allocation41_spill] sm:$0xff] }
 0x241   : > { %6640 = vst [vmem:[#allocation77_spill] sm:$0xff] %v5719_v23  ;;  %2226 = vmatpush1.bf16.msra.mxu1 %v3989_v47  ;;  %v1730_v4 = vmul.f32 %v6642_v53, %v1703_v48  ;;  %v3983_v52 = vpack.c.bf16 %v530_v31, %v526_v35  ;;  %2184 = vmatprep.subr.bf16.mxu0 %v3984_v41  ;;  %v1689_v10 = vpop.permute.xlu1 %1688  ;;  %v6643_v47 = vld [vmem:[#allocation43_spill] sm:$0xff]  ;;  %v6645_v48 = vld [vmem:[#allocation108_spill] sm:$0xff] }
 0x242   : > { %v1702_v42 = vsel %vm1698_vm9, %v1689_v10, %v6643_v47  ;;  %v1704_v35 = vsel %vm1698_vm9, %v6644_v29, %v1689_v10  ;;  %v3986_v31 = vpack.c.bf16 %v533_v60, %v529_v56  ;;  %3411 = vperm.xlu1 %4171, %v3403_v34   ;;  %v1731_v41 = vmul.f32 %v6645_v48, %v1701_v63 }
 0x243   : > { %v1603_v51 = vpop.permute.xlu0 %1602  ;;  %v3985_v55 = vpack.c.bf16 %v532_v15, %v5659_v39  ;;  %v1734_v25 = vmul.f32 %v6642_v53, %v1704_v35  ;;  %v1735_v22 = vmul.f32 %v6645_v48, %v1702_v42  ;;  %2185 = vmatpush1.bf16.msra.mxu0 %v3983_v52  ;;  %v5756_v40 = vmul.f32 %v6634_v7, %v499_v49  ;;  %v6646_v15 = vld [vmem:[#allocation106_spill] sm:$0xff]  ;;  %v6650_v35 = vld [vmem:[#allocation44_spill] sm:$0xff]  ;;  %v6668_v39 = vld [vmem:[#allocation51_spill] sm:$0xff] }
 0x244   : > { %v1699_v23 = vsel %vm1698_vm9, %v6641_v27, %v1695_v54  ;;  %v1705_v56 = vsel %vm1698_vm9, %v1695_v54, %v6638_v57  ;;  %2227 = vmatprep.subr.bf16.mxu1 %v3986_v31  ;;  %v5767_v34 = vmul.f32 %v6646_v15, %v503_v38  ;;  %v6648_v52 = vld [vmem:[#allocation110_spill] sm:$0xff]  ;;  %v1617_v31 = vsel %vm1614_vm10, %v1603_v51, %v6650_v35  ;;  %v6661_v38 = vld [vmem:[#allocation49_spill] sm:$0xff] }
 0x245   : > { %v4043_v63 = vpack.c.bf16 %v1734_v25, %v1730_v4  ;;  %2228 = vmatpush1.bf16.msra.mxu1 %v3985_v55  ;;  %v1697_v60 = vpop.permute.xlu1 %1696  ;;  %v4044_v49 = vpack.c.bf16 %v1735_v22, %v1731_v41  ;;  %v6647_v4 = vld [vmem:[#allocation109_spill] sm:$0xff]  ;;  %v1733_v10 = vmul.f32 %v6648_v52, %v1705_v56 }
 0x246   : > { %v1700_v27 = vsel %vm1698_vm9, %v6643_v47, %v1697_v60  ;;  %v1706_v57 = vsel %vm1698_vm9, %v1697_v60, %v6644_v29  ;;  %v1732_v22 = vmul.f32 %v6647_v4, %v1699_v23  ;;  %v5787_v47 = vmul.f32 %v4952_v8, %v5260_v58  ;;  %v6651_v23 = vld [vmem:[#allocation42_spill] sm:$0xff] }
 0x247   : > { %v1611_v53 = vpop.permute.xlu0 %1610  ;;  %v1736_v25 = vmul.f32 %v6647_v4, %v1700_v27  ;;  %v1737_v42 = vmul.f32 %v6648_v52, %v1706_v57  ;;  %2186 = vmatprep.subr.bf16.mxu0 %v4044_v49  ;;  %v5791_v29 = vmul.f32 %v6646_v15, %v5668_v45  ;;  %v1619_v48 = vsel %vm1614_vm10, %v6651_v23, %v1603_v51  ;;  %v6652_v15 = vld [vmem:[#allocation47_spill] sm:$0xff]  ;;  %v6653_v49 = vld [vmem:[#allocation45_spill] sm:$0xff]  ;;  %v6660_v8 = vld [vmem:[#allocation54_spill] sm:$0xff] }
 0x248   : > { %6649 = vst [vmem:[#allocation78_spill] sm:$0xff] %v5787_v47  ;;  %2187 = vmatpush2.bf16.msra.mxu0 %v4043_v63  ;;  %v6654_v57 = vld [vmem:[#allocation111_spill] sm:$0xff]  ;;  %v6658_v51 = vld [vmem:[#allocation113_spill] sm:$0xff] }
 0x249   : > { %v4045_v41 = vpack.c.bf16 %v1736_v25, %v1732_v22  ;;  %v1605_v55 = vpop.permute.xlu1 %1604  ;;  %v4046_v56 = vpack.c.bf16 %v1737_v42, %v1733_v10  ;;  %v1646_v4 = vmul.f32 %v6654_v57, %v1619_v48  ;;  %v1647_v22 = vmul.f32 %v5155_v11, %v1617_v31  ;;  %v1512_v52 = vld [vmem:[#allocation7 + $0x24] ss:$8 sm:$0xf] }
 0x24a   : > { %v1618_v60 = vsel %vm1614_vm10, %v1605_v55, %v6652_v15  ;;  %v1620_v27 = vsel %vm1614_vm10, %v6653_v49, %v1605_v55  ;;  %v1615_v42 = vsel %vm1614_vm10, %v6650_v35, %v1611_v53  ;;  %v1621_v55 = vsel %vm1614_vm10, %v1611_v53, %v6651_v23  ;;  %v6656_v23 = vld [vmem:[#allocation19_spill] sm:$0xff]  ;;  %v6657_v31 = vld [vmem:[#allocation112_spill] sm:$0xff] }
 0x24b   : > { %v1491_v45 = vpop.permute.xlu0 %1490  ;;  %v1650_v10 = vmul.f32 %v6654_v57, %v1620_v27  ;;  %v1651_v25 = vmul.f32 %v5155_v11, %v1618_v60  ;;  %2229 = vmatprep.subr.bf16.mxu1 %v4046_v56  ;;  %v6655_v60 = vld [vmem:[#allocation55_spill] sm:$0xff]  ;;  %v1648_v48 = vmul.f32 %v6657_v31, %v1615_v42 }
 0x24c   : > { %2230 = vmatpush2.bf16.msra.mxu1 %v4045_v41  ;;  %v1521_v57 = vrot.slane %v1512_v52, %v6655_v60  ;;  %v4036_v41 = vpack.c.bf16 %v6656_v23, %v4669_v33  ;;  %v1517_v33 = vrot.slane %v1512_v52, %v6660_v8  ;;  %v1428_v23 = vld [vmem:[#allocation7 + $0x23] ss:$8 sm:$0xf] }
 0x24d   : > { %v4039_v27 = vpack.c.bf16 %v1650_v10, %v1646_v4  ;;  %v1613_v11 = vpop.permute.xlu1 %1612  ;;  %v4040_v56 = vpack.c.bf16 %v1651_v25, %v1647_v22  ;;  %v1649_v4 = vmul.f32 %v6658_v51, %v1621_v55  ;;  %v6659_v25 = vld [vmem:[#allocation46_spill] sm:$0xff] }
 0x24e   : > { %v1616_v35 = vsel %vm1614_vm10, %v6652_v15, %v1613_v11  ;;  %v1622_v53 = vsel %vm1614_vm10, %v1613_v11, %v6653_v49  ;;  %v1507_v15 = vsel %vm1502_vm11, %v6659_v25, %v1491_v45 }
 0x24f   : > { %v1499_v63 = vpop.permute.xlu0 %1498  ;;  %v1652_v22 = vmul.f32 %v6657_v31, %v1616_v35  ;;  %v1653_v10 = vmul.f32 %v6658_v51, %v1622_v53  ;;  %2188 = vmatprep.subr.bf16.mxu0 %v4040_v56  ;;  %v6662_v31 = vld [vmem:[#allocation14_spill] sm:$0xff]  ;;  %v6663_v51 = vld [vmem:[#allocation16_spill] sm:$0xff]  ;;  %v1535_v7 = vmul.f32 %v1521_v57, %v1507_v15  ;;  %v6670_v15 = vld [vmem:[#allocation17_spill] sm:$0xff] }
 0x250   : > { %2189 = vmatpush2.bf16.msra.mxu0 %v4039_v27  ;;  %v4035_v56 = vpack.c.bf16 %v6663_v51, %v6662_v31  ;;  %v6664_v35 = vld [vmem:[#allocation18_spill] sm:$0xff]  ;;  %v6665_v53 = vld [vmem:[#allocation20_spill] sm:$0xff]  ;;  %v6669_v51 = vld [vmem:[#allocation15_spill] sm:$0xff] }
 0x251   : > { %v4041_v58 = vpack.c.bf16 %v1652_v22, %v1648_v48  ;;  %2190 = vmatprep.subr.bf16.mxu0 %v4036_v41  ;;  %v1493_v49 = vpop.permute.xlu1 %1492  ;;  %v4042_v11 = vpack.c.bf16 %v1653_v10, %v1649_v4  ;;  %v4038_v54 = vpack.c.bf16 %v6665_v53, %v6664_v35  ;;  %v6666_v27 = vld [vmem:[#allocation58_spill] sm:$0xff]  ;;  %v1509_v41 = vsel %vm1502_vm11, %v1499_v63, %v6659_v25  ;;  %v6667_v22 = vld [vmem:[#allocation48_spill] sm:$0xff] }
 0x252   : > { %v1508_v55 = vsel %vm1502_vm11, %v6661_v38, %v1493_v49  ;;  %v1529_v48 = vrot.slane %v1512_v52, %v6666_v27  ;;  %v1503_v10 = vsel %vm1502_vm11, %v6667_v22, %v1499_v63  ;;  %v1506_v31 = vsel %vm1502_vm11, %v1493_v49, %v6668_v39  ;;  %v6671_v53 = vld [vmem:[#allocation56_spill] sm:$0xff] }
 0x253   : > { %v1407_v42 = vpop.permute.xlu0 %1406  ;;  %v1539_v4 = vmul.f32 %v1521_v57, %v1508_v55  ;;  %2231 = vmatprep.subr.bf16.mxu1 %v4042_v11  ;;  %v4037_v35 = vpack.c.bf16 %v6670_v15, %v6669_v51  ;;  %v1525_v50 = vrot.slane %v1512_v52, %v6671_v53  ;;  %v1437_v57 = vrot.slane %v1428_v23, %v6655_v60 }
 0x254   : > { %2191 = vmatpush2.bf16.msra.mxu0 %v4035_v56  ;;  %2232 = vmatpush2.bf16.msra.mxu1 %v4041_v58  ;;  %v1505_v63 = vsel %vm1502_vm11, %v1491_v45, %v6667_v22  ;;  %v1534_v55 = vmul.f32 %v1517_v33, %v1509_v41  ;;  %v1537_v56 = vmul.f32 %v1529_v48, %v1503_v10 }
 0x255   : > { %2233 = vmatprep.subr.bf16.mxu1 %v4038_v54  ;;  %v1501_v25 = vpop.permute.xlu1 %1500  ;;  %v4032_v11 = vpack.c.bf16 %v1539_v4, %v1535_v7  ;;  %v1540_v51 = vmul.f32 %v1525_v50, %v1506_v31  ;;  %v6672_v7 = vld [vmem:[#allocation50_spill] sm:$0xff]  ;;  %v1536_v45 = vmul.f32 %v1525_v50, %v1505_v63  ;;  %v1445_v43 = vrot.slane %v1428_v23, %v6666_v27  ;;  %v6675_v63 = vld [vmem:[#allocation52_spill] sm:$0xff] }
 0x256   : > { %v1504_v58 = vsel %vm1502_vm11, %v6668_v39, %v1501_v25  ;;  %v1510_v52 = vsel %vm1502_vm11, %v1501_v25, %v6661_v38  ;;  %v1423_v4 = vsel %vm1418_vm12, %v6672_v7, %v1407_v42  ;;  %v1433_v39 = vrot.slane %v1428_v23, %v6660_v8  ;;  %v6673_v38 = vld [vmem:[#allocation53_spill] sm:$0xff]  ;;  %v6674_v25 = vld [vmem:[#allocation59_spill] sm:$0xff] }
 0x257   : > { %v1415_v49 = vpop.permute.xlu0 %1414  ;;  %v1538_v15 = vmul.f32 %v1517_v33, %v1510_v52  ;;  %v1541_v54 = vmul.f32 %v1529_v48, %v1504_v58  ;;  %2192 = vmatprep.subr.bf16.mxu0 %v4032_v11  ;;  %v1451_v48 = vmul.f32 %v1437_v57, %v1423_v4  ;;  %v4033_v10 = vpack.c.bf16 %v1540_v51, %v1536_v45  ;;  %v1344_v31 = vld [vmem:[#allocation7 + $0x22] ss:$8 sm:$0xf] }
 0x258   : > { %2234 = vmatpush2.bf16.msra.mxu1 %v4037_v35  ;;  %v1441_v11 = vrot.slane %v1428_v23, %v6671_v53  ;;  %v1425_v58 = vsel %vm1418_vm12, %v1415_v49, %v6672_v7  ;;  %v1421_v52 = vsel %vm1418_vm12, %v1407_v42, %v6675_v63  ;;  %v1353_v23 = vrot.slane %v1344_v31, %v6655_v60 }
 0x259   : > { %v4031_v41 = vpack.c.bf16 %v1538_v15, %v1534_v55  ;;  %v1409_v22 = vpop.permute.xlu1 %1408  ;;  %v4034_v47 = vpack.c.bf16 %v1541_v54, %v1537_v56  ;;  %v1419_v55 = vsel %vm1418_vm12, %v6675_v63, %v1415_v49  ;;  %v1450_v49 = vmul.f32 %v1433_v39, %v1425_v58 }
 0x25a   : > { %v1424_v33 = vsel %vm1418_vm12, %v6673_v38, %v1409_v22  ;;  %v1422_v35 = vsel %vm1418_vm12, %v1409_v22, %v6674_v25  ;;  %v1453_v7 = vmul.f32 %v1445_v43, %v1419_v55  ;;  %v1452_v45 = vmul.f32 %v1441_v11, %v1421_v52  ;;  %v1260_v55 = vld [vmem:[#allocation7 + $0x21] ss:$8 sm:$0xf] }
 0x25b   : > { %v1323_v9 = vpop.permute.xlu0 %1322  ;;  %v1455_v50 = vmul.f32 %v1437_v57, %v1424_v33  ;;  %2193 = vmatpush2.bf16.msra.mxu0 %v4031_v41  ;;  %2235 = vmatprep.subr.bf16.mxu1 %v4034_v47  ;;  %v1456_v51 = vmul.f32 %v1441_v11, %v1422_v35  ;;  %v6676_v41 = vld [vmem:[#allocation57_spill] sm:$0xff]  ;;  %v6678_v11 = vld [vmem:[#allocation72_spill] sm:$0xff] }
 0x25c   : > { %2236 = vmatpush2.bf16.msra.mxu1 %v4033_v10  ;;  %v1339_v22 = vsel %vm1334_vm13, %v6676_v41, %v1323_v9 }
 0x25d   : > { %v1417_v57 = vpop.permute.xlu1 %1416  ;;  %v4028_v56 = vpack.c.bf16 %v1455_v50, %v1451_v48  ;;  %v4029_v35 = vpack.c.bf16 %v1456_v51, %v1452_v45  ;;  %v1361_v50 = vrot.slane %v1344_v31, %v6666_v27 }
 0x25e   : > { %v1420_v54 = vsel %vm1418_vm12, %v6674_v25, %v1417_v57  ;;  %v1426_v47 = vsel %vm1418_vm12, %v1417_v57, %v6673_v38  ;;  %v1349_v25 = vrot.slane %v1344_v31, %v6660_v8  ;;  %v6677_v38 = vld [vmem:[#allocation61_spill] sm:$0xff]  ;;  %v1357_v57 = vrot.slane %v1344_v31, %v6671_v53 }
 0x25f   : > { %v1331_v15 = vpop.permute.xlu0 %1330  ;;  %v1454_v42 = vmul.f32 %v1433_v39, %v1426_v47  ;;  %v1457_v4 = vmul.f32 %v1445_v43, %v1420_v54  ;;  %2194 = vmatprep.subr.bf16.mxu0 %v4028_v56  ;;  %v1367_v43 = vmul.f32 %v1353_v23, %v1339_v22  ;;  %v6679_v56 = vld [vmem:[#allocation60_spill] sm:$0xff] }
 0x260   : > { %v1335_v51 = vsel %vm1334_vm13, %v6679_v56, %v1331_v15  ;;  %v1341_v54 = vsel %vm1334_vm13, %v1331_v15, %v6676_v41  ;;  %v1337_v47 = vsel %vm1334_vm13, %v1323_v9, %v6679_v56 }
 0x261   : > { %v4027_v33 = vpack.c.bf16 %v1454_v42, %v1450_v49  ;;  %v1325_v48 = vpop.permute.xlu1 %1324  ;;  %v4030_v10 = vpack.c.bf16 %v1457_v4, %v1453_v7  ;;  %v1269_v7 = vrot.slane %v1260_v55, %v6655_v60  ;;  %v1366_v45 = vmul.f32 %v1349_v25, %v1341_v54 }
 0x262   : > { %v1340_v39 = vsel %vm1334_vm13, %v6677_v38, %v1325_v48  ;;  %v1338_v58 = vsel %vm1334_vm13, %v1325_v48, %v6678_v11  ;;  %v1369_v41 = vmul.f32 %v1361_v50, %v1335_v51  ;;  %v6680_v48 = vld [vmem:[#allocation62_spill] sm:$0xff]  ;;  %v1265_v51 = vrot.slane %v1260_v55, %v6660_v8 }
 0x263   : > { %v1239_v63 = vpop.permute.xlu0 %1238  ;;  %v1371_v52 = vmul.f32 %v1353_v23, %v1340_v39  ;;  %2195 = vmatpush2.bf16.msra.mxu0 %v4027_v33  ;;  %2237 = vmatprep.subr.bf16.mxu1 %v4030_v10  ;;  %v1372_v31 = vmul.f32 %v1357_v57, %v1338_v58  ;;  %v1368_v33 = vmul.f32 %v1357_v57, %v1337_v47 }
 0x264   : > { %2238 = vmatpush2.bf16.msra.mxu1 %v4029_v35  ;;  %v1255_v10 = vsel %vm1250_vm14, %v6680_v48, %v1239_v63  ;;  %v1277_v47 = vrot.slane %v1260_v55, %v6666_v27 }
 0x265   : > { %v1333_v23 = vpop.permute.xlu1 %1332  ;;  %v4024_v49 = vpack.c.bf16 %v1371_v52, %v1367_v43  ;;  %v4025_v58 = vpack.c.bf16 %v1372_v31, %v1368_v33 }
 0x266   : > { %v1336_v4 = vsel %vm1334_vm13, %v6678_v11, %v1333_v23  ;;  %v1342_v15 = vsel %vm1334_vm13, %v1333_v23, %v6677_v38  ;;  %v6681_v11 = vld [vmem:[#allocation89_spill] sm:$0xff]  ;;  %v1283_v38 = vmul.f32 %v1269_v7, %v1255_v10 }
 0x267   : > { %v1243_v42 = vpop.permute.xlu0 %1242  ;;  %v1370_v22 = vmul.f32 %v1349_v25, %v1342_v15  ;;  %v1373_v9 = vmul.f32 %v1361_v50, %v1336_v4  ;;  %2196 = vmatprep.subr.bf16.mxu0 %v4024_v49  ;;  %v1273_v49 = vrot.slane %v1260_v55, %v6671_v53 }
 0x268   : > { %v1253_v4 = vsel %vm1250_vm14, %v1239_v63, %v1243_v42 }
 0x269   : > { %v4023_v35 = vpack.c.bf16 %v1370_v22, %v1366_v45  ;;  %v1241_v39 = vpop.permute.xlu1 %1240  ;;  %v4026_v43 = vpack.c.bf16 %v1373_v9, %v1369_v41 }
 0x26a   : > { %v1256_v56 = vsel %vm1250_vm14, %v6681_v11, %v1241_v39 }
 0x26b   : > { %v1247_v52 = vpop.permute.xlu0 %1246  ;;  %v1287_v54 = vmul.f32 %v1269_v7, %v1256_v56  ;;  %2197 = vmatpush2.bf16.msra.mxu0 %v4023_v35  ;;  %2239 = vmatprep.subr.bf16.mxu1 %v4026_v43  ;;  %v1176_v43 = vld [vmem:[#allocation7 + $0x20] ss:$8 sm:$0xf] }
 0x26c   : > { %2240 = vmatpush2.bf16.msra.mxu1 %v4025_v58  ;;  %v1251_v31 = vsel %vm1250_vm14, %v1243_v42, %v1247_v52  ;;  %v1257_v7 = vsel %vm1250_vm14, %v1247_v52, %v6680_v48  ;;  %v1185_v56 = vrot.slane %v1176_v43, %v6655_v60 }
 0x26d   : > { %v1245_v25 = vpop.permute.xlu1 %1244  ;;  %v4020_v50 = vpack.c.bf16 %v1287_v54, %v1283_v38  ;;  %v1282_v9 = vmul.f32 %v1265_v51, %v1257_v7  ;;  %v1285_v33 = vmul.f32 %v1277_v47, %v1251_v31  ;;  %v1181_v31 = vrot.slane %v1176_v43, %v6660_v8 }
 0x26e   : > { %v1254_v23 = vsel %vm1250_vm14, %v1241_v39, %v1245_v25  ;;  %v1284_v39 = vmul.f32 %v1273_v49, %v1253_v4  ;;  %v1193_v7 = vrot.slane %v1176_v43, %v6666_v27 }
 0x26f   : > { %v1151_v57 = vpop.permute.xlu0 %1150  ;;  %2198 = vmatprep.subr.bf16.mxu0 %v4020_v50  ;;  %v1288_v45 = vmul.f32 %v1273_v49, %v1254_v23 }
 0x271   : > { %v1249_v15 = vpop.permute.xlu1 %1248  ;;  %v4021_v58 = vpack.c.bf16 %v1288_v45, %v1284_v39 }
 0x272   : > { %v1252_v22 = vsel %vm1250_vm14, %v1245_v25, %v1249_v15  ;;  %v1258_v55 = vsel %vm1250_vm14, %v1249_v15, %v6681_v11  ;;  %v1189_v15 = vrot.slane %v1176_v43, %v6671_v53 }
 0x273   : > { %v1155_v41 = vpop.permute.xlu0 %1154  ;;  %v1286_v10 = vmul.f32 %v1265_v51, %v1258_v55  ;;  %v1289_v35 = vmul.f32 %v1277_v47, %v1252_v22 }
 0x274   : > { %v5961_v11 = vsel %vm1166_vm15, %v1151_v57, %v1155_v41 }
 0x275   : > { %v4019_v48 = vpack.c.bf16 %v1286_v10, %v1282_v9  ;;  %v1153_v63 = vpop.permute.xlu1 %1152  ;;  %v4022_v42 = vpack.c.bf16 %v1289_v35, %v1285_v33  ;;  %v1199_v50 = vmul.f32 %v1185_v56, %v5961_v11 }
 0x277   : > { %v1159_v52 = vpop.permute.xlu0 %1158  ;;  %2199 = vmatpush2.bf16.msra.mxu0 %v4019_v48  ;;  %2241 = vmatprep.subr.bf16.mxu1 %v4022_v42 }
 0x278   : > { %2242 = vmatpush2.bf16.msra.mxu1 %v4021_v58  ;;  %v5990_v9 = vsel %vm1166_vm15, %v1155_v41, %v1159_v52 }
 0x279   : > { %v1157_v38 = vpop.permute.xlu1 %1156  ;;  %v1200_v42 = vmul.f32 %v1189_v15, %v5990_v9 }
 0x27a   : > { %v5965_v25 = vsel %vm1166_vm15, %v1153_v63, %v1157_v38 }
 0x27b   : > { %v1163_v54 = vpop.permute.xlu0 %1162  ;;  %v1203_v51 = vmul.f32 %v1185_v56, %v5965_v25 }
 0x27c   : > { %v5980_v45 = vsel %vm1166_vm15, %v1159_v52, %v1163_v54  ;;  %v5984_v22 = vsel %vm1166_vm15, %v1163_v54, %v1151_v57 }
 0x27d   : > { %v4016_v47 = vpack.c.bf16 %v1203_v51, %v1199_v50  ;;  %v1161_v49 = vpop.permute.xlu1 %1160  ;;  %v1198_v57 = vmul.f32 %v1181_v31, %v5984_v22  ;;  %v1201_v43 = vmul.f32 %v1193_v7, %v5980_v45  ;;  %v6682_v50 = vpack.c.bf16 %v5381_v30, %v5303_v12  ;;  %v6690_v30 = vld [vmem:[#allocation66_spill] sm:$0xff] }
 0x27e   : > { %v5975_v4 = vsel %vm1166_vm15, %v1157_v38, %v1161_v49  ;;  %v6689_v12 = vpack.c.bf16 %v5458_v3, %v5378_v32  ;;  %v6697_v32 = vpack.c.bf16 %v5536_v17, %v5455_v61  ;;  %v6698_v3 = vld [vmem:[#allocation70_spill] sm:$0xff]  ;;  %v6705_v61 = vpack.c.bf16 %v5616_v13, %v5533_v28  ;;  %v6706_v17 = vld [vmem:[#allocation71_spill] sm:$0xff] }
 0x27f   : > { %v5969_v23 = vpop.permute.xlu0 %2356  ;;  %2200 = vmatprep.subr.bf16.mxu0 %v4016_v47  ;;  %v1204_v10 = vmul.f32 %v1189_v15, %v5975_v4  ;;  %v6683_v47 = vld [vmem:[#allocation68_spill] sm:$0xff]  ;;  %v4176_v15 = vld [vmem:[%s6273_s4 + $0xc] ss:$16 sps:$4 sm:$0xff]  }
 0x280   : > { %v2298_v28 = vld [vmem:[#allocation7 + $0x40] ss:$8 sm:$0xf] }
 0x281   : > { %v4017_v54 = vpack.c.bf16 %v1204_v10, %v1200_v42  ;;  %v6687_v10 = vld [vmem:[#allocation126_spill] sm:$0xff]  ;;  %v6693_v42 = vpack.c.bf16 %v5498_v6, %v5417_v36  ;;  %v6701_v36 = vpack.c.bf16 %v5577_v46, %v5495_v5  ;;  %v6709_v5 = vpack.c.bf16 %v5653_v0, %v5574_v62 }
 0x285   : > { %v5986_v55 = vpop.permute.xlu0 %2360 }
 0x286   : > { %v1165_v33 = vpop.permute.xlu1 %1164 }
 0x287   : > { %v5995_v35 = vsel %vm1166_vm15, %v1161_v49, %v1165_v33  ;;  %v5999_v39 = vsel %vm1166_vm15, %v1165_v33, %v1153_v63  ;;  %v4173_v63 = vld [vmem:[%s6273_s4] ss:$16 sps:$4 sm:$0xff]  }
 0x288   : > { %v1202_v48 = vmul.f32 %v1181_v31, %v5999_v39  ;;  %v1205_v41 = vmul.f32 %v1193_v7, %v5995_v35  ;;  %v6684_v49 = vld [vmem:[#allocation64_spill] sm:$0xff] }
 0x289   : > { %v6006_v58 = vpop.permute.xlu0 %2364  ;;  %v6685_v31 = vpack.c.bf16 %v6683_v47, %v6684_v49  ;;  %v6686_v33 = vld [vmem:[#allocation128_spill] sm:$0xff] }
 0x28a   : > { %v4015_v52 = vpack.c.bf16 %v1202_v48, %v1198_v57  ;;  %v2359_v56 = vpop.permute.xlu1 %2358  ;;  %v4018_v38 = vpack.c.bf16 %v1205_v41, %v1201_v43  ;;  %v6688_v57 = vpack.c.bf16 %v6686_v33, %v6687_v10  ;;  %v6691_v43 = vld [vmem:[#allocation63_spill] sm:$0xff]  ;;  %v6703_v33 = vld [vmem:[#allocation69_spill] sm:$0xff] }
 0x28b   : > { %v6692_v48 = vpack.c.bf16 %v6690_v30, %v6691_v43 }
 0x28c   : > { %2201 = vmatpush2.bf16.msra.mxu0 %v4015_v52  ;;  %2243 = vmatprep.subr.bf16.mxu1 %v4018_v38  ;;  %v6694_v38 = vld [vmem:[#allocation67_spill] sm:$0xff] }
 0x28d   : > { %2244 = vmatpush2.bf16.msra.mxu1 %v4017_v54  ;;  %3258 = vmatprep.subr.bf16.mxu0 %v6682_v50  ;;  %v6695_v54 = vld [vmem:[#allocation65_spill] sm:$0xff] }
 0x28e   : > { %v6014_v51 = vpop.permute.xlu0 %2368  ;;  %3301 = vmatprep.subr.bf16.mxu1 %v6685_v31  ;;  %v2363_v7 = vpop.permute.xlu1 %2362  ;;  %v6699_v50 = vld [vmem:[#allocation21_spill] sm:$0xff] }
 0x28f   : > { %2203 = vmatmul.mubr.bf16.vlgmr.msra.gmra.mxu0 %v4173_v63  ;;  %v6700_v47 = vpack.c.bf16 %v6698_v3, %v6699_v50  ;;  %v6048_v31 = vld [vmem:[#allocation7 + $0x62] ss:$8 sm:$0xf] }
 0x290   : > { %2246 = vmatmul.mubr.bf16.vlgmr.msra.gmra.mxu1 %v4173_v63  ;;  %3259 = vmatpush1.bf16.msra.mxu0 %v6688_v57  ;;  %v6696_v63 = vpack.c.bf16 %v6694_v38, %v6695_v54  ;;  %v2382_v57 = vld [vmem:[#allocation7 + $0x41] ss:$8 sm:$0xf]  ;;  %v6066_v43 = vrot.slane %v6048_v31, %v6660_v8  ;;  %v6075_v13 = vrot.slane %v6048_v31, %v6666_v27 }
 0x291   : > { %3260 = vmatprep.subr.bf16.mxu0 %v6689_v12  ;;  %3302 = vmatpush1.bf16.msra.mxu1 %v6692_v48  ;;  %v6707_v12 = vld [vmem:[#allocation24_spill] sm:$0xff]  ;;  %v6070_v48 = vrot.slane %v6048_v31, %v6655_v60  ;;  %v2387_v62 = vrot.slane %v2382_v57, %v6660_v8  ;;  %v2391_v0 = vrot.slane %v2382_v57, %v6655_v60  ;;  %v6710_v54 = vld [vmem:[#allocation73_spill] sm:$0xff] }
 0x292   : > { %v6031_v41 = vpop.permute.xlu0 %2272  ;;  %3303 = vmatprep.subr.bf16.mxu1 %v6693_v42  ;;  %v2367_v52 = vpop.permute.xlu1 %2366  ;;  %3863 = vmatprep.mubr.msk.bf16.mxu0 %vm3254_vm1, %v4176_v15  ;;  %v6708_v30 = vpack.c.bf16 %v6706_v17, %v6707_v12  ;;  %v2395_v3 = vrot.slane %v2382_v57, %v6671_v53  ;;  %v2399_v50 = vrot.slane %v2382_v57, %v6666_v27 }
 0x293   : > { %3864 = vmatprep.mubr.msk.bf16.mxu1 %vm3254_vm1, %v4176_v15  ;;  %v6702_v15 = vld [vmem:[#allocation23_spill] sm:$0xff]  ;;  %v2376_v42 = vsel %vm2372_vm2, %v2363_v7, %v2367_v52  ;;  %v2303_v57 = vrot.slane %v2298_v28, %v6660_v8  ;;  %v2307_v17 = vrot.slane %v2298_v28, %v6655_v60  ;;  %v6717_v12 = vpack.c.bf16 %v5729_v2, %v5650_v16 }
 0x294   : > { %3261 = vmatpush1.bf16.msra.mxu0 %v6696_v63  ;;  %v6704_v10 = vpack.c.bf16 %v6702_v15, %v6703_v33  ;;  %v6711_v63 = vld [vmem:[#allocation22_spill] sm:$0xff]  ;;  %v6714_v15 = vld [vmem:[#allocation76_spill] sm:$0xff]  ;;  %v2378_v8 = vsel %vm2372_vm2, %v2359_v56, %v2363_v7  ;;  %v2311_v2 = vrot.slane %v2298_v28, %v6671_v53  ;;  %v6721_v7 = vpack.c.bf16 %v5756_v40, %v5688_v1 }
 0x295   : > { %3262 = vmatprep.subr.bf16.mxu0 %v6697_v32  ;;  %3304 = vmatpush1.bf16.msra.mxu1 %v6700_v47  ;;  %v6712_v32 = vpack.c.bf16 %v6710_v54, %v6711_v63  ;;  %v6715_v33 = vld [vmem:[#allocation74_spill] sm:$0xff]  ;;  %v2315_v54 = vrot.slane %v2298_v28, %v6666_v27  ;;  %v6718_v63 = vld [vmem:[#allocation25_spill] sm:$0xff]  ;;  %v2938_v26 = vmul.f32 %v6075_v13, %v5984_v22  ;;  %v6727_v22 = vld [vmem:[#allocation116_spill] sm:$0xff] }
 0x296   : > { %v2277_v49 = vpop.permute.xlu0 %2276  ;;  %3305 = vmatprep.subr.bf16.mxu1 %v6701_v36  ;;  %v2371_v6 = vpop.permute.xlu1 %2370  ;;  %v6713_v36 = vpack.c.bf16 %v5691_v37, %v5613_v24  ;;  %v2377_v24 = vsel %vm2372_vm2, %v5969_v23, %v5986_v55 }
 0x297   : > { %v2380_v47 = vsel %vm2372_vm2, %v2371_v6, %v2359_v56  ;;  %v2374_v60 = vsel %vm2372_vm2, %v2367_v52, %v2371_v6  ;;  %v6722_v52 = vpack.c.bf16 %v5673_v21, %v5647_v19  ;;  %v2404_v27 = vmul.f32 %v2387_v62, %v2377_v24 }
 0x298   : > { %3263 = vmatpush1.bf16.msra.mxu0 %v6704_v10  ;;  %v6716_v10 = vpack.c.bf16 %v6714_v15, %v6715_v33  ;;  %v2411_v16 = vmul.f32 %v2399_v50, %v2380_v47  ;;  %v2373_v6 = vsel %vm2372_vm2, %v6006_v58, %v6014_v51  ;;  %v2410_v1 = vmul.f32 %v2395_v3, %v2374_v60 }
 0x299   : > { %3264 = vmatprep.subr.bf16.mxu0 %v6705_v61  ;;  %3306 = vmatpush1.bf16.msra.mxu1 %v6708_v30  ;;  %v2375_v61 = vsel %vm2372_vm2, %v5986_v55, %v6006_v58  ;;  %v2379_v30 = vsel %vm2372_vm2, %v6014_v51, %v5969_v23  ;;  %v2293_v58 = vsel %vm2288_vm3, %v6031_v41, %v2277_v49 }
 0x29a   : > { %3307 = vmatprep.subr.bf16.mxu1 %v6709_v5  ;;  %v6062_v46 = vpop.permute.xlu1 %2274  ;;  %v2281_v38 = vpop.permute.xlu0 %2280  ;;  %v2409_v5 = vmul.f32 %v2391_v0, %v2376_v42  ;;  %v2405_v23 = vmul.f32 %v2391_v0, %v2375_v61  ;;  %v2407_v28 = vmul.f32 %v2399_v50, %v2379_v30  ;;  %v6723_v42 = vpack.c.bf16 %v5767_v34, %v5791_v29 }
 0x29b   : > { %v2291_v56 = vsel %vm2288_vm3, %v2277_v49, %v2281_v38  ;;  %v6724_v34 = vpack.c.bf16 %v5704_v44, %v5662_v18  ;;  %v2406_v50 = vmul.f32 %v2395_v3, %v2373_v6  ;;  %v2942_v49 = vmul.f32 %v6075_v13, %v5999_v39  ;;  %v6728_v13 = vld [vmem:[#allocation117_spill] sm:$0xff] }
 0x29c   : > { %3265 = vmatpush1.bf16.msra.mxu0 %v6712_v32  ;;  %v6719_v32 = vld [vmem:[#allocation75_spill] sm:$0xff]  ;;  %v4052_v40 = vpack.c.bf16 %v2409_v5, %v2405_v23  ;;  %v2321_v51 = vmul.f32 %v2307_v17, %v2291_v56  ;;  %v4054_v29 = vpack.c.bf16 %v2411_v16, %v2407_v28  ;;  %v2936_v39 = vmul.f32 %v6070_v48, %v5990_v9  ;;  %v6738_v56 = vld [vmem:[#allocation118_spill] sm:$0xff]  ;;  %v6744_v28 = vld [vmem:[#allocation120_spill] sm:$0xff] }
 0x29d   : > { %3266 = vmatprep.subr.bf16.mxu0 %v6713_v36  ;;  %3308 = vmatpush1.bf16.msra.mxu1 %v6716_v10  ;;  %v6720_v55 = vpack.c.bf16 %v6718_v63, %v6719_v32  ;;  %v2940_v36 = vmul.f32 %v6070_v48, %v5975_v4  ;;  %v2408_v4 = vmul.f32 %v2387_v62, %v2378_v8  ;;  %v6725_v10 = vld [vmem:[#allocation77_spill] sm:$0xff]  ;;  %v6737_v23 = vld [vmem:[#allocation119_spill] sm:$0xff] }
 0x29e   : > { %3309 = vmatprep.subr.bf16.mxu1 %v6717_v12  ;;  %v2279_v37 = vpop.permute.xlu1 %2278  ;;  %v2285_v0 = vpop.permute.xlu0 %2284  ;;  %v6726_v61 = vpack.c.bf16 %v5736_v14, %v6725_v10  ;;  %v2320_v12 = vmul.f32 %v2303_v57, %v2293_v58  ;;  %v2926_v5 = vrot.slane %v6048_v31, %v6671_v53  ;;  %v2935_v9 = vmul.f32 %v6066_v43, %v5961_v11  ;;  %v6731_v11 = vld [vmem:[#allocation115_spill] sm:$0xff] }
 0x29f   : > { %v2294_v19 = vsel %vm2288_vm3, %v6062_v46, %v2279_v37  ;;  %v2289_v15 = vsel %vm2288_vm3, %v2281_v38, %v2285_v0  ;;  %v2295_v33 = vsel %vm2288_vm3, %v2285_v0, %v6031_v41  ;;  %v4090_v53 = vpack.c.bf16 %v2942_v49, %v2938_v26  ;;  %v6746_v0 = vld [vmem:[#allocation125_spill] sm:$0xff] }
 0x2a0   : > { %3267 = vmatpush1.bf16.msra.mxu0 %v6720_v55  ;;  %v2324_v18 = vmul.f32 %v2303_v57, %v2294_v19  ;;  %v2322_v24 = vmul.f32 %v2311_v2, %v2289_v15  ;;  %v2323_v14 = vmul.f32 %v2315_v54, %v2295_v33  ;;  %v2939_v57 = vmul.f32 %v6066_v43, %v5965_v25  ;;  %v6732_v43 = vld [vmem:[#allocation114_spill] sm:$0xff]  ;;  %v6735_v55 = vld [vmem:[#allocation121_spill] sm:$0xff] }
 0x2a1   : > { %3268 = vmatprep.subr.bf16.mxu0 %v6721_v7  ;;  %3310 = vmatpush1.bf16.msra.mxu1 %v6722_v52  ;;  %v2937_v31 = vmul.f32 %v2926_v5, %v5980_v45  ;;  %v6729_v63 = vpack.c.bf16 %v6727_v22, %v6728_v13  ;;  %v6733_v32 = vpack.c.bf16 %v6731_v11, %v6732_v43  ;;  %v6734_v45 = vld [vmem:[#allocation127_spill] sm:$0xff]  ;;  %v6740_v52 = vld [vmem:[#allocation78_spill] sm:$0xff] }
 0x2a2   : > { %3311 = vmatprep.subr.bf16.mxu1 %v6723_v42  ;;  %v2283_v47 = vpop.permute.xlu1 %2282  ;;  %v4087_v25 = vpack.c.bf16 %v2939_v57, %v2935_v9  ;;  %v6739_v7 = vpack.c.bf16 %v6737_v23, %v6738_v56  ;;  %v6747_v42 = vld [vmem:[#allocation123_spill] sm:$0xff] }
 0x2a3   : > { %v2292_v21 = vsel %vm2288_vm3, %v2279_v37, %v2283_v47  ;;  %v4053_v37 = vpack.c.bf16 %v2410_v1, %v2406_v50  ;;  %v6749_v1 = vmov 0  }
 0x2a4   : > { %v2325_v62 = vmul.f32 %v2307_v17, %v2292_v21  ;;  %3269 = vmatpush1.bf16.msra.mxu0 %v6724_v34  ;;  %v4051_v17 = vpack.c.bf16 %v2408_v4, %v2404_v27  ;;  %v6741_v27 = vld [vmem:[#allocation124_spill] sm:$0xff] }
 0x2a5   : > { %3270 = vmatprep.subr.bf16.mxu0 %v4052_v40  ;;  %3312 = vmatpush1.bf16.msra.mxu1 %v6726_v61  ;;  %v6742_v6 = vpack.c.bf16 %v6740_v52, %v6741_v27  ;;  %v4180_v52 = vld [vmem:[%s4510_s19] sm:$0xff] }
 0x2a6   : > { %3313 = vmatprep.subr.bf16.mxu1 %v4054_v29  ;;  %v2287_v44 = vpop.permute.xlu1 %2286  ;;  %v4048_v3 = vpack.c.bf16 %v2325_v62, %v2321_v51 }
 0x2a7   : > { %v2290_v38 = vsel %vm2288_vm3, %v2283_v47, %v2287_v44  ;;  %v2296_v41 = vsel %vm2288_vm3, %v2287_v44, %v6062_v46  ;;  %v4047_v46 = vpack.c.bf16 %v2324_v18, %v2320_v12  ;;  %v6748_v47 = vpack.c.bf16 %v6746_v0, %v6747_v42 }
 0x2a8   : > { %v2326_v30 = vmul.f32 %v2311_v2, %v2290_v38  ;;  %v2327_v8 = vmul.f32 %v2315_v54, %v2296_v41  ;;  %3271 = vmatpush1.bf16.msra.mxu0 %v4051_v17  ;;  %v2941_v2 = vmul.f32 %v2926_v5, %v5995_v35  ;;  %v4088_v54 = vpack.c.bf16 %v2940_v36, %v2936_v39 }
 0x2a9   : > { %3272 = vmatprep.subr.bf16.mxu0 %v4048_v3  ;;  %3314 = vmatpush1.bf16.msra.mxu1 %v4053_v37  ;;  %v6730_v35 = vpack.c.bf16 %v5273_v59, %v5209_v20  ;;  %v6736_v36 = vpack.c.bf16 %v6734_v45, %v6735_v55  ;;  %v4178_v20 = vld [vmem:[%s6273_s4 + $0x8] ss:$16 sps:$4 sm:$0xff]   ;;  %v6743_v59 = vld [vmem:[#allocation122_spill] sm:$0xff] }
 0x2aa   : > { %v4049_v60 = vpack.c.bf16 %v2326_v30, %v2322_v24  ;;  %v4050_v16 = vpack.c.bf16 %v2327_v8, %v2323_v14  ;;  %v4089_v48 = vpack.c.bf16 %v2941_v2, %v2937_v31  ;;  %v6745_v4 = vpack.c.bf16 %v6743_v59, %v6744_v28  ;;  %v4181_v28 = vld [vmem:[%s4510_s19 + $0x10] sm:$0xff] }
 0x2ab   : > { %v3373_v38 = vpop.permute.xlu0 %3372 }
 0x2ac   : > { %3273 = vmatpush1.bf16.msra.mxu0 %v4047_v46  ;;  %3315 = vmatprep.subr.bf16.mxu1 %v4050_v16 }
 0x2ad   : > { %3284 = vmatprep.subr.bf16.mxu0 %v4088_v54  ;;  %3316 = vmatpush1.bf16.msra.mxu1 %v4049_v60 }
 0x2ae   : > { %3327 = vmatprep.subr.bf16.mxu1 %v4090_v53 }
 0x2af   : > { %v3407_v45 = vpop.permute.xlu0 %3406 }
 0x2b0   : > { %3285 = vmatpush2.bf16.msra.mxu0 %v4087_v25 }
 0x2b1   : > { %3286 = vmatprep.subr.bf16.mxu0 %v6729_v63  ;;  %3328 = vmatpush2.bf16.msra.mxu1 %v4089_v48 }
 0x2b2   : > { %3329 = vmatprep.subr.bf16.mxu1 %v6730_v35 }
 0x2b4   : > { %3287 = vmatpush2.bf16.msra.mxu0 %v6733_v32  ;;  %v4179_v32 = vld [vmem:[%s6275_s6] sm:$0xff]  }
 0x2b5   : > { %3288 = vmatprep.subr.bf16.mxu0 %v6736_v36  ;;  %3330 = vmatpush2.bf16.msra.mxu1 %v6739_v7 }
 0x2b6   : > { %3331 = vmatprep.subr.bf16.mxu1 %v6742_v6 }
 0x2b7   : > { %v3378_v44 = vpop.permute.xlu1 %3377 }
 0x2b8   : > { %3289 = vmatpush2.bf16.msra.mxu0 %v6745_v4 }
 0x2b9   : > { %3332 = vmatpush2.bf16.msra.mxu1 %v6748_v47 }
 0x2bb   : > { %3291 = vmatmul.mubr.bf16.vlgmr.msra.gmra.mxu0 %v4178_v20 }
 0x2bc   : > { %3334 = vmatmul.mubr.bf16.vlgmr.msra.gmra.mxu1 %v4178_v20  ;;  %3454 = vmatprep.mubr.bf16.mxu0 %v6749_v1 }
 0x2bd   : > { %3497 = vmatprep.mubr.bf16.mxu1 %v6749_v1  ;;  %v3412_v59 = vpop.permute.xlu1 %3411  ;;  %v4182_v1 = vld [vmem:[%s4510_s19 + $0x8] sm:$0xff] }
 0x34f   : > { %v2204_v19 = vpop.f32.mrf.mxu0 }
 0x350   : > { %v2247_v21 = vpop.f32.mrf.mxu1 }
 0x351   : > { %v2206_v40 = vpop.f32.mrf.mxu0 }
 0x352   : > { %v2249_v58 = vpop.f32.mrf.mxu1 }
 0x353   : > { %v2208_v51 = vpop.f32.mrf.mxu0 }
 0x354   : > { %v2251_v62 = vpop.f32.mrf.mxu1 }
 0x355   : > { %v2210_v34 = vpop.f32.mrf.mxu0 }
 0x356   : > { %v2253_v29 = vpop.f32.mrf.mxu1 }
 0x37b   : > { %v3292_v50 = vpop.f32.mrf.mxu0 }
 0x37c   : > { %v3335_v15 = vpop.f32.mrf.mxu1  ;;  %v3344_v49 = vadd.f32 %v3292_v50, %v2204_v19 }
 0x37d   : > { %v3294_v33 = vpop.f32.mrf.mxu0  ;;  %v3346_v3 = vadd.f32 %v3335_v15, %v2247_v21  ;;  %v4184_v15 = vld [vmem:[%s4510_s19 + $0x20] sm:$0xff] }
 0x37e   : > { %v3345_v10 = vadd.f32 %v3294_v33, %v2206_v40  ;;  %v3337_v61 = vpop.f32.mrf.mxu1  ;;  %v3380_v5 = vadd.f32 %v3373_v38, %v3344_v49 }
 0x37f   : > { %v3347_v17 = vadd.f32 %v3337_v61, %v2249_v58  ;;  %v3296_v18 = vpop.f32.mrf.mxu0  ;;  %v3382_v60 = vadd.f32 %v3373_v38, %v3346_v3 }
 0x380   : > { %v3348_v12 = vadd.f32 %v3296_v18, %v2208_v51  ;;  %v3339_v37 = vpop.f32.mrf.mxu1  ;;  %v3381_v14 = vadd.f32 %v3373_v38, %v3345_v10  ;;  %v3388_v25 = vmax.f32 %v3380_v5, 0.0  ;;  %v4183_v51 = vld [vmem:[%s4510_s19 + $0x18] sm:$0xff] }
 0x381   : > { %v3350_v41 = vadd.f32 %v3339_v37, %v2251_v62  ;;  %v3298_v24 = vpop.f32.mrf.mxu0  ;;  %v3383_v57 = vadd.f32 %v3373_v38, %v3347_v17  ;;  %v3390_v13 = vmax.f32 %v3382_v60, 0.0  ;;  %v4185_v17 = vld [vmem:[%s4510_s19 + $0x30] sm:$0xff] }
 0x382   : > { %v3384_v30 = vadd.f32 %v3378_v44, %v3348_v12  ;;  %v3349_v8 = vadd.f32 %v3298_v24, %v2210_v34  ;;  %v3341_v39 = vpop.f32.mrf.mxu1  ;;  %v3389_v9 = vmax.f32 %v3381_v14, 0.0  ;;  %v4186_v12 = vld [vmem:[%s4510_s19 + $0x28] sm:$0xff] }
 0x383   : > { %v3386_v26 = vadd.f32 %v3378_v44, %v3350_v41  ;;  %v3351_v46 = vadd.f32 %v3341_v39, %v2253_v29  ;;  %v3391_v48 = vmax.f32 %v3383_v57, 0.0  ;;  %v4187_v41 = vld [vmem:[%s4510_s19 + $0x38] sm:$0xff]  ;;  %s4334_s19 = smov [#allocation9]  }
 0x384   : > { %v3385_v16 = vadd.f32 %v3378_v44, %v3349_v8  ;;  %v3392_v2 = vmax.f32 %v3384_v30, 0.0  ;;  %s4246_s21 = sshll.u32 %s4334_s19, 4  ;;  %s4247_s21 = int_to_ptr.vmem [resolvable:$false] %s4246_s21 }
 0x385   : > { %v3387_v54 = vadd.f32 %v3378_v44, %v3351_v46  ;;  %v3394_v53 = vmax.f32 %v3386_v26, 0.0  ;;  %s4248_s14 = scalar_lea.vmem %s4247_s21, 2048  ;;  %p4249_p10 = scmp.lt.s32.totalorder %s6220_s24, %s4247_s21 }
 0x386   : > { %v3393_v31 = vmax.f32 %v3385_v16, 0.0  ;;  %v3398_v35 = vpack.c.bf16 %v3392_v2, %v3388_v25  ;;  %p4250_p12 = scmp.lt.s32.totalorder %s4248_s14, %s4242_s17 }
 0x387   : > { %v3395_v22 = vmax.f32 %v3387_v54, 0.0  ;;  %v3400_v43 = vpack.c.bf16 %v3394_v53, %v3390_v13 }
 0x388   : > { %v3399_v63 = vpack.c.bf16 %v3393_v31, %v3389_v9  ;;  %p4251_p13 = por %p4250_p12, %p4249_p10 }
 0x389   : > { %v3401_v11 = vpack.c.bf16 %v3395_v22, %v3391_v48 }
 0x38a   : > { %3436 = vmatprep.subr.bf16.mxu0 %v3399_v63  ;;  %p4252_p0 = pnand %p4251_p13, %p4245_p9 }
 0x38b   : > { %3437 = vmatpush1.bf16.msra.mxu0 %v3398_v35  ;;  %3479 = vmatprep.subr.bf16.mxu1 %v3401_v11 }
 0x38c   : > { %3480 = vmatpush1.bf16.msra.mxu1 %v3400_v43 }
 0x38e   : > { %3866 = vmatmul.mubr.msk.bf16.vlgmr.msra.gmra.mxu0 %vm371_vm0, %v4179_v32 }
 0x38f   : > { %3867 = vmatmul.mubr.msk.bf16.vlgmr.msra.gmra.mxu1 %vm371_vm0, %v4179_v32 }
 0x44e   : > { %v3456_v55 = vpop.f32.mrf.mxu0 }
 0x44f   : > { %v3457_v36 = vadd.f32 %v3456_v55, %v3407_v45  ;;  %v3499_v23 = vpop.f32.mrf.mxu1 }
 0x450   : > { %v3500_v56 = vadd.f32 %v3499_v23, %v3407_v45  ;;  %v3458_v7 = vpop.f32.mrf.mxu0 }
 0x451   : > { %v3508_v27 = vadd.f32 %v4180_v52, %v3457_v36  ;;  %v3459_v6 = vadd.f32 %v3458_v7, %v3407_v45  ;;  %v3501_v20 = vpop.f32.mrf.mxu1 }
 0x452   : > { %v3510_v4 = vadd.f32 %v4181_v28, %v3500_v56  ;;  %v3502_v0 = vadd.f32 %v3501_v20, %v3407_v45  ;;  %v3460_v42 = vpop.f32.mrf.mxu0 }
 0x453   : > { %v3516_v47 = vmax.f32 %v3508_v27, 0.0  ;;  %v3509_v19 = vadd.f32 %v4182_v1, %v3459_v6  ;;  %v3461_v21 = vadd.f32 %v3460_v42, %v3412_v59  ;;  %v3503_v40 = vpop.f32.mrf.mxu1 }
 0x454   : > { %v3518_v58 = vmax.f32 %v3510_v4, 0.0  ;;  %v3511_v62 = vadd.f32 %v4183_v51, %v3502_v0  ;;  %v3504_v34 = vadd.f32 %v3503_v40, %v3412_v59  ;;  %v3462_v29 = vpop.f32.mrf.mxu0 }
 0x455   : > { %3524 = vst [vmem:[%s338_s18] sm:$0xff] %v3516_v47  ;;  %v3517_v50 = vmax.f32 %v3509_v19, 0.0  ;;  %v3512_v33 = vadd.f32 %v4184_v15, %v3461_v21  ;;  %v3463_v10 = vadd.f32 %v3462_v29, %v3412_v59  ;;  %v3505_v61 = vpop.f32.mrf.mxu1 }
 0x456   : > { %3526 = vst [vmem:[%s338_s18 + $0x10] sm:$0xff] %v3518_v58  ;;  %v3519_v49 = vmax.f32 %v3511_v62, 0.0  ;;  %v3514_v18 = vadd.f32 %v4185_v17, %v3504_v34  ;;  %v3506_v44 = vadd.f32 %v3505_v61, %v3412_v59 }
 0x457   : > { %3525 = vst [vmem:[%s338_s18 + $0x8] sm:$0xff] %v3517_v50  ;;  %v3520_v3 = vmax.f32 %v3512_v33, 0.0  ;;  %v3513_v37 = vadd.f32 %v4186_v12, %v3463_v10 }
 0x458   : > { %3527 = vst [vmem:[%s338_s18 + $0x18] sm:$0xff] %v3519_v49  ;;  %v3522_v38 = vmax.f32 %v3514_v18, 0.0  ;;  %v3515_v24 = vadd.f32 %v4187_v41, %v3506_v44 }
 0x459   : > { %3528 = vst [vmem:[%s338_s18 + $0x20] sm:$0xff] %v3520_v3  ;;  %v3521_v14 = vmax.f32 %v3513_v37, 0.0 }
 0x45a   : > { %3530 = vst [vmem:[%s338_s18 + $0x30] sm:$0xff] %v3522_v38  ;;  %v3523_v30 = vmax.f32 %v3515_v24, 0.0 }
 0x45b   : > { %3529 = vst [vmem:[%s338_s18 + $0x28] sm:$0xff] %v3521_v14 }
 0x45c   : > { %3531 = vst [vmem:[%s338_s18 + $0x38] sm:$0xff] %v3523_v30 }
 0x45d   : > { %4255 = shalt.err (!%p4252_p0)
}
 0x45e   : > { %s4256_s16 = scalar_lea.hbm %s6226_s9, 1024  ;;  %s4260_s23 = scalar_lea.hbm %s6277_s8, 2048 }
 0x45f   : > { %p4257_p5 = scmp.ne.s32.totalorder %s6226_s9, %s4256_s16  ;;  %p4261_p4 = scmp.lt.s32.totalorder %s6226_s9, %s6277_s8 }
 0x460   : > { %p4262_p6 = scmp.lt.s32.totalorder %s4260_s23, %s4256_s16 }
 0x461   : > { %p4258_p2 = pnand %p4257_p5, %p6751_p11 }
 0x462   : > { %p4263_p8 = por %p4262_p6, %p4261_p4 }
 0x463   : > { %p4259_p1 = pneg %p4258_p2 }
 0x465   : > { %p4264_p3 = pnand %p4263_p8, %p4259_p1 }
 0x467   : > { %4267 = shalt.err (!%p4264_p3)
}
 0x468   : > { %s4335_s15 = smov 512   ;;  %s4336_s1 = smov 32  }
 0x469   : > { %4097 = dma.vmem_to_hbm [thread:$0]  (%p6751_p11), %s6220_s24, 1024, %s6226_s9, %s3533_s10, %s4335_s15, %s4335_s15, %s4336_s1  }
 0x46a PF: > { %s3561_s17 = sand.u32 1, %s4298_s27   ;;  %p6752_p7 = scmp.ne.s32.totalorder %s6432_s12, 0 }
 0x46b   : > { %p6753_p9 = scmp.ge.s32.totalorder %s4310_s30, 2  ;;  %s3562_s19 = scalar_lea.sflag [#allocation6], %s3561_s17 }
 0x46d   : > { %p4108_p10 = pnand %p6753_p9, %p6752_p7 }
 0x46f   : > { %p4109_p12 = pneg %p4108_p10 }
 0x471   : > { %4293 = dma.done.wait (%p4109_p12), %s3562_s19, 1024  }
 0x472   : > { %4295 = vsyncadd (%p4109_p12), %s3562_s19, 4294966272  ;;  %s6754_s30 = sld [smem:[#allocation13_spill]]  ;;  %s6755_s27 = smov %s4302_s28 }
 0x473   : > { %s6756_s28 = smov %s4306_s29  ;;  %s6757_s29 = smov %s4456_s25 }
 0x478   : > { %p22_p13 = scmp.ge.s32.totalorder %s6754_s30, 4  }
 0x47a   :  { %24 = sbr.rel (!%p22_p13) target bundleno = 8 (0x8), region = 126 }
 0x47f   :  { %3567 = vsyncpa [#allocation5], 1 }
 0x480   :  { %3569 = vsyncpa [#allocation5 + $0x1], 1 }
 0x481   :  { %3570 = vsyncpa [#allocation8], 1 }
 0x482   :  { %3571 = vsyncpa [#allocation6], 1 }
 0x483   :  { %3573 = vsyncpa [#allocation6 + $0x1], 1 }

</bundles_post_ra>
